<compile_context>
chip_gen: v5e
topology: v5e:2x2
jax: 0.10.0
libtpu: 0.0.40
codegen_flags: <defaults>
</compile_context>

<pallas_src>
import jax
import jax.numpy as jnp
from jax import lax
from jax.experimental import pallas as pl
from jax.experimental.pallas import tpu as pltpu

# ---------------- small synthetic configuration ----------------
B = 2                          # batch
CAM = 3                        # camera_num
T = 8                          # frame_num
FRAME_SHAPE = (3, 16, 16)      # scaled down from (3, 224, 224)
D_IN = FRAME_SHAPE[0] * FRAME_SHAPE[1] * FRAME_SHAPE[2]
CNN_FDIM = 32
V_HDIM = 64                    # bi-dir LSTM output dim = 2 * (V_HDIM // 2)
LSTM_H = V_HDIM // 2
MLP_DIMS = (128, 64)           # ResidualMLP hidden dims ('leaky')
OUT_DIM = 2
ITER = 100
SCHEDULED_K = 0.998
NEG_SLOPE = 0.01               # nn.LeakyReLU default

N = B * CAM                    # flattened (camera, batch) rows per frame
NP = 8                         # N padded to a full sublane group
OUT_WIDTH = 128                # lane-dense packed output width
NEG_INF = -1e30
GATE_W = 4 * LSTM_H            # 128
FUSED_W = 256                  # [gates_local(128) | local(32) | zero pad(96)]

assert NP >= N and NP % B == 0
assert MLP_DIMS[1] + OUT_DIM <= OUT_WIDTH
assert GATE_W + CNN_FDIM <= FUSED_W


# ---------------- the fused kernel ----------------
# Row layout inside every frame block of NP rows: camera-major, batch-minor
# (row n = cam * B + b), rows N..NP-1 are zero padding.
# LSTM gate column order is [i | f | o | g] (one sigmoid over 3H, one tanh).
def _dsnet_kernel(mask_ref,                        # (T,) int32  scalar prefetch (SMEM)
                  frames_ref, gt0_ref,             # (T*NP, D_IN) bf16, (T*NP, 1) f32
                  wfused_ref, bcnn_ref,            # (D_IN, FUSED_W) bf16, (1, Fc)
                  wihg_ref, whh_ref, blstm_ref,    # (Fc, 4H), (H, 4H), (1, 4H)
                  w1_ref, w1pd_ref, b1_ref,        # (2H, D1), (1, D1), (1, D1)
                  w2_ref, b2_ref,                  # (D1, D2), (1, D2)
                  w3_ref, b3_ref,                  # (D2, OUT), (1, OUT)
                  out_ref,                         # (T*NP, OUT_WIDTH)
                  seq_scr, h2_scr, gx_scr):        # VMEM (T*NP,2H), (T*NP,D2), (T*NP,128)
    Fc, H, D1, D2 = CNN_FDIM, LSTM_H, MLP_DIMS[0], MLP_DIMS[1]
    G = 4 * H

    # ---- stage 1: fused per-frame projection, one bf16 MXU matmul ----
    # TODO(synk): the ResNet18 backbone + SpatialSELayer + AdaptiveAvgPool of the
    # reference are approximated by a single linear projection of the flat frame.
    fused = jnp.dot(frames_ref[...], wfused_ref[...],
                    preferred_element_type=jnp.float32)          # (T*NP, FUSED_W) f32
    # gates_x contribution of the local feature (bcnn term folded into blstm);
    # park it in scratch right away to bound vreg pressure during stage 2.
    gx_scr[...] = fused[:, 0:G] + blstm_ref[...]
    local = fused[:, G:G + Fc] + bcnn_ref[...]                   # (T*NP, Fc)

    # ---- stage 2: camera-max "global" feature via per-block tree of rolls ----
    # Within a frame block rows with the same (row % B) are the CAM cameras of
    # one batch element (plus the masked pad rows): cyclic tree max over them.
    row_id = lax.broadcasted_iota(jnp.int32, (NP, Fc), 0)
    real_row = row_id < N
    glob_blocks = []
    for t in range(T):
        xm = jnp.where(real_row, local[t * NP:(t + 1) * NP], NEG_INF)
        g = jnp.maximum(xm, pltpu.roll(xm, B, 0))
        g = jnp.maximum(g, pltpu.roll(g, 2 * B, 0))              # all same-parity rows
        glob_blocks.append(g)
    glob = jnp.concatenate(glob_blocks, axis=0)                  # (T*NP, Fc)

    # ---- stage 3: complete the (hoisted) LSTM input projection ----
    gx_scr[...] = gx_scr[...] + jnp.dot(glob, wihg_ref[...],
                                        preferred_element_type=jnp.float32)

    # ---- stage 4: interleaved forward/backward recurrence (shared weights) ----
    # TODO(synk): ConvLSTM (3x3 kernels over a feature map) is approximated by a
    # standard LSTM since the spatial dims were folded away by the projection.
    # Backward outputs are kept in processing order (NOT re-reversed), matching
    # the reference concat of convlstm(x) and convlstm(x[::-1]).
    whh = whh_ref[...]
    h = jnp.zeros((2 * NP, H), jnp.float32)
    c = jnp.zeros((2 * NP, H), jnp.float32)
    for k in range(T):
        gx_f = gx_scr[k * NP:(k + 1) * NP, :]
        gx_b = gx_scr[(T - 1 - k) * NP:(T - k) * NP, :]
        gates = (jnp.concatenate([gx_f, gx_b], axis=0)
                 + jnp.dot(h, whh, preferred_element_type=jnp.float32))   # (16, 4H)
        sig = jax.nn.sigmoid(gates[:, 0:3 * H])                  # one EUP push: i,f,o
        i_g = sig[:, 0:H]
        f_g = sig[:, H:2 * H]
        o_g = sig[:, 2 * H:3 * H]
        g_g = jnp.tanh(gates[:, 3 * H:4 * H])
        c = f_g * c + i_g * g_g
        h = o_g * jnp.tanh(c)
        # fwd half -> lanes [0:H], bwd half -> lanes [H:2H] of the combined scratch
        seq_scr[k * NP:(k + 1) * NP, :] = jnp.concatenate(
            [h[0:NP], h[NP:2 * NP]], axis=1)

    # ---- stage 5a: hoisted AR feature matmul for all frames (reuses gx_scr) ----
    # b1 already includes the w1p[1] (== (1 - p0) coefficient) fold.
    gx_scr[...] = (jnp.dot(seq_scr[...], w1_ref[...],
                           preferred_element_type=jnp.float32) + b1_ref[...])

    # ---- stage 5b: autoregressive loop with scheduled sampling ----
    # TODO(synk): ResidualMLP internals are approximated by a plain 2-layer
    # leaky-ReLU MLP (dims V_HDIM+2 -> 128 -> 64).
    w1pd_b = jnp.broadcast_to(w1pd_ref[...], (NP, D1))           # hoisted broadcasts
    b2_b = jnp.broadcast_to(b2_ref[...], (NP, D2))
    w2 = w2_ref[...]
    w3 = w3_ref[...]
    b3 = b3_ref[...]
    w3d = w3[:, 0:1] - w3[:, 1:2]                                # (D2, 1)
    b3d = b3[:, 0:1] - b3[:, 1:2]                                # (1, 1)
    p0 = gt0_ref[0:NP, :]          # prev class-0 prob init = gt label of frame 0
    for frn in range(T):
        h1 = gx_scr[frn * NP:(frn + 1) * NP, :] + p0 * w1pd_b
        h1 = jnp.where(h1 > 0, h1, NEG_SLOPE * h1)               # leaky relu
        h2 = jnp.dot(h1, w2, preferred_element_type=jnp.float32) + b2_b
        h2 = jnp.where(h2 > 0, h2, NEG_SLOPE * h2)
        h2_scr[frn * NP:(frn + 1) * NP, :] = h2
        # exact 2-class softmax prob of class 0 == sigmoid(logit0 - logit1)
        z = jnp.dot(h2, w3d, preferred_element_type=jnp.float32) + b3d
        p_model = jax.nn.sigmoid(z)
        p0 = jnp.where(mask_ref[frn] == 1,
                       gt0_ref[frn * NP:(frn + 1) * NP, :], p_model)

    # ---- stage 5c: bulk logits + F.normalize + ONE full-width store ----
    h2_all = h2_scr[...]
    logits = jnp.dot(h2_all, w3, preferred_element_type=jnp.float32) + b3
    inv_n = lax.rsqrt(jnp.maximum(jnp.sum(h2_all * h2_all, axis=-1, keepdims=True),
                                  1e-24))
    featn = h2_all * inv_n
    pad = jnp.zeros((T * NP, OUT_WIDTH - D2 - OUT_DIM), jnp.float32)
    out_ref[...] = jnp.concatenate([featn, logits, pad], axis=-1)


def _zero_map(i, mask_ref):
    return (0, 0)


def _full(shape):
    return pl.BlockSpec(shape, _zero_map)


# ---------------- full forward ----------------
@jax.jit
def dsnet_convar_forward(params, inputs, gt_label, _iter, key):
    Bb, Cc, Tt = inputs.shape[0], inputs.shape[1], inputs.shape[2]
    assert (Bb, Cc, Tt) == (B, CAM, T)
    Fc, H, D1, D2 = CNN_FDIM, LSTM_H, MLP_DIMS[0], MLP_DIMS[1]

    # time-major, camera-major row layout, padded to NP rows per frame (bf16 for MXU).
    fr = inputs.reshape(Bb, Cc, Tt, D_IN)
    fr = jnp.transpose(fr, (2, 1, 0, 3)).reshape(Tt, N, D_IN)    # row n = cam*B + b
    fr = jnp.pad(fr, ((0, 0), (0, NP - N), (0, 0)))
    fr = fr.reshape(Tt * NP, D_IN).astype(jnp.bfloat16)

    # class-0 ground-truth probability per row (class-1 = 1 - class-0 is implicit).
    gt0 = jnp.transpose(gt_label.astype(jnp.float32), (2, 1, 0)).reshape(Tt, N, 1)
    gt0 = jnp.pad(gt0, ((0, 0), (0, NP - N), (0, 0))).reshape(Tt * NP, 1)

    # scheduled-sampling mask (one scalar per frame, like the reference loop).
    # TODO(synk): torch.distributions.Bernoulli replaced by jax.random.bernoulli.
    p = jnp.asarray(SCHEDULED_K, jnp.float32) ** _iter
    mask = jax.random.bernoulli(key, p=p, shape=(Tt,)).astype(jnp.int32)

    # ---- host-side weight fusion / folding (tiny, once per call) ----
    wcnn, bcnn = params["cnn_w"], params["cnn_b"]
    wih, whh, blstm = params["lstm_wih"], params["lstm_whh"], params["lstm_b"]
    wih_loc, wih_glob = wih[:Fc], wih[Fc:]
    wfused = jnp.zeros((D_IN, FUSED_W), jnp.float32)
    wfused = wfused.at[:, 0:GATE_W].set(wcnn @ wih_loc)          # fused CNN->gates
    wfused = wfused.at[:, GATE_W:GATE_W + Fc].set(wcnn)          # plain CNN features
    wfused = wfused.astype(jnp.bfloat16)
    blstm_adj = blstm + bcnn @ wih_loc                           # fold CNN bias term

    w1p = params["mlp_w1_prev"]
    b1_adj = params["mlp_b1"] + w1p[1:2]                         # fold (1 - p0) part
    w1pd = w1p[0:1] - w1p[1:2]                                   # rank-1 prev term

    out = pl.pallas_call(
        _dsnet_kernel,
        out_shape=jax.ShapeDtypeStruct((Tt * NP, OUT_WIDTH), jnp.float32),
        grid_spec=pltpu.PrefetchScalarGridSpec(
            num_scalar_prefetch=1, grid=(1,),
            in_specs=[
                _full((Tt * NP, D_IN)),                  # frames (bf16)
                _full((Tt * NP, 1)),                     # gt0
                _full((D_IN, FUSED_W)),                  # fused cnn/lstm weight (bf16)
                _full((1, CNN_FDIM)),                    # cnn_b
                _full((CNN_FDIM, GATE_W)),               # lstm_wih (glob half)
                _full((LSTM_H, GATE_W)),                 # lstm_whh
                _full((1, GATE_W)),                      # lstm_b (adjusted)
                _full((V_HDIM, D1)),                     # mlp_w1 (feature part)
                _full((1, D1)),                          # mlp_w1_prev diff
                _full((1, D1)),                          # mlp_b1 (adjusted)
                _full((D1, D2)),                         # mlp_w2
                _full((1, D2)),                          # mlp_b2
                _full((D2, OUT_DIM)),                    # lin_w
                _full((1, OUT_DIM)),                     # lin_b
            ],
            out_specs=pl.BlockSpec((Tt * NP, OUT_WIDTH), _zero_map),
            scratch_shapes=[pltpu.VMEM((Tt * NP, V_HDIM), jnp.float32),   # seq (fwd|bwd)
                            pltpu.VMEM((Tt * NP, D2), jnp.float32),       # h2 stash
                            pltpu.VMEM((Tt * NP, GATE_W), jnp.float32)]), # gates / base1
        compiler_params=pltpu.CompilerParams(
            dimension_semantics=("arbitrary",)),
    )(mask, fr, gt0,
      wfused, bcnn,
      wih_glob, whh, blstm_adj,
      params["mlp_w1"], w1pd, b1_adj,
      params["mlp_w2"], params["mlp_b2"],
      params["lin_w"], params["lin_b"])

    # unpack the lane-dense output and drop the pad rows / pad lanes
    out = out.reshape(Tt, NP, OUT_WIDTH)[:, :N, :]               # (T, N, 128) cam-major
    out = out.reshape(Tt, Cc, Bb, OUT_WIDTH)
    features = jnp.transpose(out[..., :D2], (2, 1, 0, 3))                   # (B,CAM,T,64)
    logits = jnp.transpose(out[..., D2:D2 + OUT_DIM], (2, 1, 0, 3))         # (B,CAM,T,2)
    return logits, features


# ---------------- deterministic parameter init ----------------
def init_params(key):
    ks = jax.random.split(key, 12)
    s = 0.1
    nrm = jax.random.normal
    return {
        "cnn_w": nrm(ks[0], (D_IN, CNN_FDIM), jnp.float32) * 0.02,
        "cnn_b": nrm(ks[1], (1, CNN_FDIM), jnp.float32) * 0.02,
        # single (shared) LSTM, used for both directions as in the reference.
        # gate column order convention: [i | f | o | g]
        "lstm_wih": nrm(ks[2], (2 * CNN_FDIM, 4 * LSTM_H), jnp.float32) * s,
        "lstm_whh": nrm(ks[3], (LSTM_H, 4 * LSTM_H), jnp.float32) * s,
        "lstm_b": nrm(ks[4], (1, 4 * LSTM_H), jnp.float32) * s,
        # W1 split: sequence-feature part (V_HDIM rows) and prev-prediction part (2 rows)
        "mlp_w1": nrm(ks[5], (V_HDIM, MLP_DIMS[0]), jnp.float32) * s,
        "mlp_w1_prev": nrm(ks[6], (2, MLP_DIMS[0]), jnp.float32) * s,
        "mlp_b1": nrm(ks[7], (1, MLP_DIMS[0]), jnp.float32) * s,
        "mlp_w2": nrm(ks[8], (MLP_DIMS[0], MLP_DIMS[1]), jnp.float32) * s,
        "mlp_b2": nrm(ks[9], (1, MLP_DIMS[1]), jnp.float32) * s,
        "lin_w": nrm(ks[10], (MLP_DIMS[1], OUT_DIM), jnp.float32) * s,
        "lin_b": nrm(ks[11], (1, OUT_DIM), jnp.float32) * s,
    }


if __name__ == "__main__":
    key = jax.random.PRNGKey(0)
    k_in, k_gt, k_par, k_mask = jax.random.split(key, 4)
    inputs = jax.random.normal(k_in, (B, CAM, T) + FRAME_SHAPE, jnp.float32)
    gt_label = jax.random.bernoulli(k_gt, 0.5, (B, CAM, T)).astype(jnp.float32)
    params = init_params(k_par)

    logits, features = dsnet_convar_forward(params, inputs, gt_label, ITER, k_mask)
    jax.block_until_ready((logits, features))

    assert logits.shape == (B, CAM, T, OUT_DIM)
    assert features.shape == (B, CAM, T, MLP_DIMS[1])
    assert bool(jnp.all(jnp.isfinite(logits)))
    assert bool(jnp.all(jnp.isfinite(features)))
    print("KERNEL_OK")
</pallas_src>

<mosaic_0001>
module attributes {stable_mosaic.version = 11 : i64} {
  func.func @_dsnet_kernel(%arg0: i32, %arg1: memref<8xi32, #tpu.memory_space<smem>>, %arg2: memref<64x768xbf16, #tpu.memory_space<vmem>>, %arg3: memref<64x1xf32, #tpu.memory_space<vmem>>, %arg4: memref<768x256xbf16, #tpu.memory_space<vmem>>, %arg5: memref<1x32xf32, #tpu.memory_space<vmem>>, %arg6: memref<32x128xf32, #tpu.memory_space<vmem>>, %arg7: memref<32x128xf32, #tpu.memory_space<vmem>>, %arg8: memref<1x128xf32, #tpu.memory_space<vmem>>, %arg9: memref<64x128xf32, #tpu.memory_space<vmem>>, %arg10: memref<1x128xf32, #tpu.memory_space<vmem>>, %arg11: memref<1x128xf32, #tpu.memory_space<vmem>>, %arg12: memref<128x64xf32, #tpu.memory_space<vmem>>, %arg13: memref<1x64xf32, #tpu.memory_space<vmem>>, %arg14: memref<64x2xf32, #tpu.memory_space<vmem>>, %arg15: memref<1x2xf32, #tpu.memory_space<vmem>>, %arg16: memref<64x128xf32, #tpu.memory_space<vmem>>, %arg17: memref<64x64xf32, #tpu.memory_space<vmem>>, %arg18: memref<64x64xf32, #tpu.memory_space<vmem>>, %arg19: memref<64x128xf32, #tpu.memory_space<vmem>>) attributes {dimension_semantics = [#tpu.dimension_semantics<arbitrary>], iteration_bounds = array<i64: 1>, scalar_prefetch = 1 : i64, scratch_operands = 3 : i64, tpu.core_type = #tpu.core_type<tc>, window_params = [{pipeline_mode = #tpu.pipeline_mode<synchronous>, transform_indices = @transform_0, window_bounds = array<i64: 64, 768>}, {pipeline_mode = #tpu.pipeline_mode<synchronous>, transform_indices = @transform_1, window_bounds = array<i64: 64, 1>}, {pipeline_mode = #tpu.pipeline_mode<synchronous>, transform_indices = @transform_2, window_bounds = array<i64: 768, 256>}, {pipeline_mode = #tpu.pipeline_mode<synchronous>, transform_indices = @transform_3, window_bounds = array<i64: 1, 32>}, {pipeline_mode = #tpu.pipeline_mode<synchronous>, transform_indices = @transform_4, window_bounds = array<i64: 32, 128>}, {pipeline_mode = #tpu.pipeline_mode<synchronous>, transform_indices = @transform_5, window_bounds = array<i64: 32, 128>}, {pipeline_mode = #tpu.pipeline_mode<synchronous>, transform_indices = @transform_6, window_bounds = array<i64: 1, 128>}, {pipeline_mode = #tpu.pipeline_mode<synchronous>, transform_indices = @transform_7, window_bounds = array<i64: 64, 128>}, {pipeline_mode = #tpu.pipeline_mode<synchronous>, transform_indices = @transform_8, window_bounds = array<i64: 1, 128>}, {pipeline_mode = #tpu.pipeline_mode<synchronous>, transform_indices = @transform_9, window_bounds = array<i64: 1, 128>}, {pipeline_mode = #tpu.pipeline_mode<synchronous>, transform_indices = @transform_10, window_bounds = array<i64: 128, 64>}, {pipeline_mode = #tpu.pipeline_mode<synchronous>, transform_indices = @transform_11, window_bounds = array<i64: 1, 64>}, {pipeline_mode = #tpu.pipeline_mode<synchronous>, transform_indices = @transform_12, window_bounds = array<i64: 64, 2>}, {pipeline_mode = #tpu.pipeline_mode<synchronous>, transform_indices = @transform_13, window_bounds = array<i64: 1, 2>}, {pipeline_mode = #tpu.pipeline_mode<synchronous>, transform_indices = @transform_14, window_bounds = array<i64: 64, 128>}]} {
    %c0 = arith.constant 0 : index
    %c0_0 = arith.constant 0 : index
    %0 = vector.load %arg2[%c0, %c0_0] : memref<64x768xbf16, #tpu.memory_space<vmem>>, vector<64x768xbf16>
    %c0_1 = arith.constant 0 : index
    %c0_2 = arith.constant 0 : index
    %1 = vector.load %arg4[%c0_1, %c0_2] : memref<768x256xbf16, #tpu.memory_space<vmem>>, vector<768x256xbf16>
    %cst = arith.constant dense<0.000000e+00> : vector<64x256xf32>
    %2 = tpu.matmul %0, %1, %cst {dimension_numbers = #tpu.dot_dimension_numbers<[1], [0], [0], [1], [0, 0, 1, 1], [], []>} : vector<64x768xbf16>, vector<768x256xbf16>, vector<64x256xf32> -> vector<64x256xf32>
    %3 = vector.extract_strided_slice %2 {offsets = [0, 0], sizes = [64, 128], strides = [1, 1]} : vector<64x256xf32> to vector<64x128xf32>
    %c0_3 = arith.constant 0 : index
    %c0_4 = arith.constant 0 : index
    %4 = vector.load %arg8[%c0_3, %c0_4] : memref<1x128xf32, #tpu.memory_space<vmem>>, vector<1x128xf32>
    %5 = vector.broadcast %4 : vector<1x128xf32> to vector<64x128xf32>
    %6 = arith.addf %3, %5 : vector<64x128xf32>
    %c0_5 = arith.constant 0 : index
    %c0_6 = arith.constant 0 : index
    %7 = vector.load %arg19[%c0_5, %c0_6] : memref<64x128xf32, #tpu.memory_space<vmem>>, vector<64x128xf32>
    tpu.vector_store %arg19[%c0_5, %c0_6], %6 {strides = array<i32>} : memref<64x128xf32, #tpu.memory_space<vmem>>, vector<64x128xf32>,
    %8 = vector.extract_strided_slice %2 {offsets = [0, 128], sizes = [64, 32], strides = [1, 1]} : vector<64x256xf32> to vector<64x32xf32>
    %c0_7 = arith.constant 0 : index
    %c0_8 = arith.constant 0 : index
    %9 = vector.load %arg5[%c0_7, %c0_8] : memref<1x32xf32, #tpu.memory_space<vmem>>, vector<1x32xf32>
    %10 = vector.broadcast %9 : vector<1x32xf32> to vector<64x32xf32>
    %11 = arith.addf %8, %10 : vector<64x32xf32>
    %12 = tpu.iota {dimensions = array<i32: 0>} : vector<8x32xi32>
    %c6_i32 = arith.constant 6 : i32
    %13 = vector.broadcast %c6_i32 : i32 to vector<8x32xi32>
    %14 = arith.cmpi slt, %12, %13 : vector<8x32xi32>
    %15 = vector.extract_strided_slice %11 {offsets = [0, 0], sizes = [8, 32], strides = [1, 1]} : vector<64x32xf32> to vector<8x32xf32>
    %cst_9 = arith.constant -1.000000e+30 : f32
    %16 = vector.broadcast %cst_9 : f32 to vector<8x32xf32>
    %17 = arith.select %14, %15, %16 : vector<8x32xi1>, vector<8x32xf32>
    %c2_i32 = arith.constant 2 : i32
    %18 = tpu.dynamic_rotate %17 by %c2_i32 dim 0 : vector<8x32xf32>, i32 -> vector<8x32xf32>
    %19 = arith.maximumf %17, %18 : vector<8x32xf32>
    %c4_i32 = arith.constant 4 : i32
    %20 = tpu.dynamic_rotate %19 by %c4_i32 dim 0 : vector<8x32xf32>, i32 -> vector<8x32xf32>
    %21 = arith.maximumf %19, %20 : vector<8x32xf32>
    %22 = vector.extract_strided_slice %11 {offsets = [8, 0], sizes = [8, 32], strides = [1, 1]} : vector<64x32xf32> to vector<8x32xf32>
    %cst_10 = arith.constant -1.000000e+30 : f32
    %23 = vector.broadcast %cst_10 : f32 to vector<8x32xf32>
    %24 = arith.select %14, %22, %23 : vector<8x32xi1>, vector<8x32xf32>
    %c2_i32_11 = arith.constant 2 : i32
    %25 = tpu.dynamic_rotate %24 by %c2_i32_11 dim 0 : vector<8x32xf32>, i32 -> vector<8x32xf32>
    %26 = arith.maximumf %24, %25 : vector<8x32xf32>
    %c4_i32_12 = arith.constant 4 : i32
    %27 = tpu.dynamic_rotate %26 by %c4_i32_12 dim 0 : vector<8x32xf32>, i32 -> vector<8x32xf32>
    %28 = arith.maximumf %26, %27 : vector<8x32xf32>
    %29 = vector.extract_strided_slice %11 {offsets = [16, 0], sizes = [8, 32], strides = [1, 1]} : vector<64x32xf32> to vector<8x32xf32>
    %cst_13 = arith.constant -1.000000e+30 : f32
    %30 = vector.broadcast %cst_13 : f32 to vector<8x32xf32>
    %31 = arith.select %14, %29, %30 : vector<8x32xi1>, vector<8x32xf32>
    %c2_i32_14 = arith.constant 2 : i32
    %32 = tpu.dynamic_rotate %31 by %c2_i32_14 dim 0 : vector<8x32xf32>, i32 -> vector<8x32xf32>
    %33 = arith.maximumf %31, %32 : vector<8x32xf32>
    %c4_i32_15 = arith.constant 4 : i32
    %34 = tpu.dynamic_rotate %33 by %c4_i32_15 dim 0 : vector<8x32xf32>, i32 -> vector<8x32xf32>
    %35 = arith.maximumf %33, %34 : vector<8x32xf32>
    %36 = vector.extract_strided_slice %11 {offsets = [24, 0], sizes = [8, 32], strides = [1, 1]} : vector<64x32xf32> to vector<8x32xf32>
    %cst_16 = arith.constant -1.000000e+30 : f32
    %37 = vector.broadcast %cst_16 : f32 to vector<8x32xf32>
    %38 = arith.select %14, %36, %37 : vector<8x32xi1>, vector<8x32xf32>
    %c2_i32_17 = arith.constant 2 : i32
    %39 = tpu.dynamic_rotate %38 by %c2_i32_17 dim 0 : vector<8x32xf32>, i32 -> vector<8x32xf32>
    %40 = arith.maximumf %38, %39 : vector<8x32xf32>
    %c4_i32_18 = arith.constant 4 : i32
    %41 = tpu.dynamic_rotate %40 by %c4_i32_18 dim 0 : vector<8x32xf32>, i32 -> vector<8x32xf32>
    %42 = arith.maximumf %40, %41 : vector<8x32xf32>
    %43 = vector.extract_strided_slice %11 {offsets = [32, 0], sizes = [8, 32], strides = [1, 1]} : vector<64x32xf32> to vector<8x32xf32>
    %cst_19 = arith.constant -1.000000e+30 : f32
    %44 = vector.broadcast %cst_19 : f32 to vector<8x32xf32>
    %45 = arith.select %14, %43, %44 : vector<8x32xi1>, vector<8x32xf32>
    %c2_i32_20 = arith.constant 2 : i32
    %46 = tpu.dynamic_rotate %45 by %c2_i32_20 dim 0 : vector<8x32xf32>, i32 -> vector<8x32xf32>
    %47 = arith.maximumf %45, %46 : vector<8x32xf32>
    %c4_i32_21 = arith.constant 4 : i32
    %48 = tpu.dynamic_rotate %47 by %c4_i32_21 dim 0 : vector<8x32xf32>, i32 -> vector<8x32xf32>
    %49 = arith.maximumf %47, %48 : vector<8x32xf32>
    %50 = vector.extract_strided_slice %11 {offsets = [40, 0], sizes = [8, 32], strides = [1, 1]} : vector<64x32xf32> to vector<8x32xf32>
    %cst_22 = arith.constant -1.000000e+30 : f32
    %51 = vector.broadcast %cst_22 : f32 to vector<8x32xf32>
    %52 = arith.select %14, %50, %51 : vector<8x32xi1>, vector<8x32xf32>
    %c2_i32_23 = arith.constant 2 : i32
    %53 = tpu.dynamic_rotate %52 by %c2_i32_23 dim 0 : vector<8x32xf32>, i32 -> vector<8x32xf32>
    %54 = arith.maximumf %52, %53 : vector<8x32xf32>
    %c4_i32_24 = arith.constant 4 : i32
    %55 = tpu.dynamic_rotate %54 by %c4_i32_24 dim 0 : vector<8x32xf32>, i32 -> vector<8x32xf32>
    %56 = arith.maximumf %54, %55 : vector<8x32xf32>
    %57 = vector.extract_strided_slice %11 {offsets = [48, 0], sizes = [8, 32], strides = [1, 1]} : vector<64x32xf32> to vector<8x32xf32>
    %cst_25 = arith.constant -1.000000e+30 : f32
    %58 = vector.broadcast %cst_25 : f32 to vector<8x32xf32>
    %59 = arith.select %14, %57, %58 : vector<8x32xi1>, vector<8x32xf32>
    %c2_i32_26 = arith.constant 2 : i32
    %60 = tpu.dynamic_rotate %59 by %c2_i32_26 dim 0 : vector<8x32xf32>, i32 -> vector<8x32xf32>
    %61 = arith.maximumf %59, %60 : vector<8x32xf32>
    %c4_i32_27 = arith.constant 4 : i32
    %62 = tpu.dynamic_rotate %61 by %c4_i32_27 dim 0 : vector<8x32xf32>, i32 -> vector<8x32xf32>
    %63 = arith.maximumf %61, %62 : vector<8x32xf32>
    %64 = vector.extract_strided_slice %11 {offsets = [56, 0], sizes = [8, 32], strides = [1, 1]} : vector<64x32xf32> to vector<8x32xf32>
    %cst_28 = arith.constant -1.000000e+30 : f32
    %65 = vector.broadcast %cst_28 : f32 to vector<8x32xf32>
    %66 = arith.select %14, %64, %65 : vector<8x32xi1>, vector<8x32xf32>
    %c2_i32_29 = arith.constant 2 : i32
    %67 = tpu.dynamic_rotate %66 by %c2_i32_29 dim 0 : vector<8x32xf32>, i32 -> vector<8x32xf32>
    %68 = arith.maximumf %66, %67 : vector<8x32xf32>
    %c4_i32_30 = arith.constant 4 : i32
    %69 = tpu.dynamic_rotate %68 by %c4_i32_30 dim 0 : vector<8x32xf32>, i32 -> vector<8x32xf32>
    %70 = arith.maximumf %68, %69 : vector<8x32xf32>
    %71 = tpu.concatenate %21, %28, %35, %42, %49, %56, %63, %70 in 0 : vector<8x32xf32>, vector<8x32xf32>, vector<8x32xf32>, vector<8x32xf32>, vector<8x32xf32>, vector<8x32xf32>, vector<8x32xf32>, vector<8x32xf32> -> vector<64x32xf32>
    %c0_31 = arith.constant 0 : index
    %c0_32 = arith.constant 0 : index
    %72 = vector.load %arg19[%c0_31, %c0_32] : memref<64x128xf32, #tpu.memory_space<vmem>>, vector<64x128xf32>
    %c0_33 = arith.constant 0 : index
    %c0_34 = arith.constant 0 : index
    %73 = vector.load %arg6[%c0_33, %c0_34] : memref<32x128xf32, #tpu.memory_space<vmem>>, vector<32x128xf32>
    %cst_35 = arith.constant dense<0.000000e+00> : vector<64x128xf32>
    %74 = tpu.matmul %71, %73, %cst_35 {dimension_numbers = #tpu.dot_dimension_numbers<[1], [0], [0], [1], [0, 0, 1, 1], [], []>} : vector<64x32xf32>, vector<32x128xf32>, vector<64x128xf32> -> vector<64x128xf32>
    %75 = arith.addf %72, %74 : vector<64x128xf32>
    %c0_36 = arith.constant 0 : index
    %c0_37 = arith.constant 0 : index
    %76 = vector.load %arg19[%c0_36, %c0_37] : memref<64x128xf32, #tpu.memory_space<vmem>>, vector<64x128xf32>
    tpu.vector_store %arg19[%c0_36, %c0_37], %75 {strides = array<i32>} : memref<64x128xf32, #tpu.memory_space<vmem>>, vector<64x128xf32>,
    %c0_38 = arith.constant 0 : index
    %c0_39 = arith.constant 0 : index
    %77 = vector.load %arg7[%c0_38, %c0_39] : memref<32x128xf32, #tpu.memory_space<vmem>>, vector<32x128xf32>
    %cst_40 = arith.constant 0.000000e+00 : f32
    %78 = vector.broadcast %cst_40 : f32 to vector<16x32xf32>
    %cst_41 = arith.constant 0.000000e+00 : f32
    %79 = vector.broadcast %cst_41 : f32 to vector<16x32xf32>
    %c0_42 = arith.constant 0 : index
    %c0_43 = arith.constant 0 : index
    %80 = vector.load %arg19[%c0_42, %c0_43] : memref<64x128xf32, #tpu.memory_space<vmem>>, vector<8x128xf32>
    %c56 = arith.constant 56 : index
    %c0_44 = arith.constant 0 : index
    %81 = vector.load %arg19[%c56, %c0_44] : memref<64x128xf32, #tpu.memory_space<vmem>>, vector<8x128xf32>
    %82 = tpu.concatenate %80, %81 in 0 : vector<8x128xf32>, vector<8x128xf32> -> vector<16x128xf32>
    %cst_45 = arith.constant dense<0.000000e+00> : vector<16x128xf32>
    %83 = tpu.matmul %78, %77, %cst_45 {dimension_numbers = #tpu.dot_dimension_numbers<[1], [0], [0], [1], [0, 0, 1, 1], [], []>} : vector<16x32xf32>, vector<32x128xf32>, vector<16x128xf32> -> vector<16x128xf32>
    %84 = arith.addf %82, %83 : vector<16x128xf32>
    %85 = vector.extract_strided_slice %84 {offsets = [0, 0], sizes = [16, 96], strides = [1, 1]} : vector<16x128xf32> to vector<16x96xf32>
    %86 = arith.negf %85 : vector<16x96xf32>
    %87 = math.exp %86 : vector<16x96xf32>
    %cst_46 = arith.constant 1.000000e+00 : f32
    %88 = vector.broadcast %cst_46 : f32 to vector<16x96xf32>
    %89 = arith.addf %88, %87 : vector<16x96xf32>
    %90 = arith.divf %88, %89 : vector<16x96xf32>
    %91 = vector.extract_strided_slice %90 {offsets = [0, 0], sizes = [16, 32], strides = [1, 1]} : vector<16x96xf32> to vector<16x32xf32>
    %92 = vector.extract_strided_slice %90 {offsets = [0, 32], sizes = [16, 32], strides = [1, 1]} : vector<16x96xf32> to vector<16x32xf32>
    %93 = vector.extract_strided_slice %90 {offsets = [0, 64], sizes = [16, 32], strides = [1, 1]} : vector<16x96xf32> to vector<16x32xf32>
    %94 = vector.extract_strided_slice %84 {offsets = [0, 96], sizes = [16, 32], strides = [1, 1]} : vector<16x128xf32> to vector<16x32xf32>
    %95 = math.tanh %94 : vector<16x32xf32>
    %96 = arith.mulf %92, %79 : vector<16x32xf32>
    %97 = arith.mulf %91, %95 : vector<16x32xf32>
    %98 = arith.addf %96, %97 : vector<16x32xf32>
    %99 = math.tanh %98 : vector<16x32xf32>
    %100 = arith.mulf %93, %99 : vector<16x32xf32>
    %101 = vector.extract_strided_slice %100 {offsets = [0, 0], sizes = [8, 32], strides = [1, 1]} : vector<16x32xf32> to vector<8x32xf32>
    %102 = vector.extract_strided_slice %100 {offsets = [8, 0], sizes = [8, 32], strides = [1, 1]} : vector<16x32xf32> to vector<8x32xf32>
    %103 = tpu.concatenate %101, %102 in 1 : vector<8x32xf32>, vector<8x32xf32> -> vector<8x64xf32>
    %c0_47 = arith.constant 0 : index
    %c0_48 = arith.constant 0 : index
    %104 = vector.load %arg17[%c0_47, %c0_48] : memref<64x64xf32, #tpu.memory_space<vmem>>, vector<8x64xf32>
    tpu.vector_store %arg17[%c0_47, %c0_48], %103 {strides = array<i32>} : memref<64x64xf32, #tpu.memory_space<vmem>>, vector<8x64xf32>,
    %c8 = arith.constant 8 : index
    %c0_49 = arith.constant 0 : index
    %105 = vector.load %arg19[%c8, %c0_49] : memref<64x128xf32, #tpu.memory_space<vmem>>, vector<8x128xf32>
    %c48 = arith.constant 48 : index
    %c0_50 = arith.constant 0 : index
    %106 = vector.load %arg19[%c48, %c0_50] : memref<64x128xf32, #tpu.memory_space<vmem>>, vector<8x128xf32>
    %107 = tpu.concatenate %105, %106 in 0 : vector<8x128xf32>, vector<8x128xf32> -> vector<16x128xf32>
    %cst_51 = arith.constant dense<0.000000e+00> : vector<16x128xf32>
    %108 = tpu.matmul %100, %77, %cst_51 {dimension_numbers = #tpu.dot_dimension_numbers<[1], [0], [0], [1], [0, 0, 1, 1], [], []>} : vector<16x32xf32>, vector<32x128xf32>, vector<16x128xf32> -> vector<16x128xf32>
    %109 = arith.addf %107, %108 : vector<16x128xf32>
    %110 = vector.extract_strided_slice %109 {offsets = [0, 0], sizes = [16, 96], strides = [1, 1]} : vector<16x128xf32> to vector<16x96xf32>
    %111 = arith.negf %110 : vector<16x96xf32>
    %112 = math.exp %111 : vector<16x96xf32>
    %cst_52 = arith.constant 1.000000e+00 : f32
    %113 = vector.broadcast %cst_52 : f32 to vector<16x96xf32>
    %114 = arith.addf %113, %112 : vector<16x96xf32>
    %115 = arith.divf %113, %114 : vector<16x96xf32>
    %116 = vector.extract_strided_slice %115 {offsets = [0, 0], sizes = [16, 32], strides = [1, 1]} : vector<16x96xf32> to vector<16x32xf32>
    %117 = vector.extract_strided_slice %115 {offsets = [0, 32], sizes = [16, 32], strides = [1, 1]} : vector<16x96xf32> to vector<16x32xf32>
    %118 = vector.extract_strided_slice %115 {offsets = [0, 64], sizes = [16, 32], strides = [1, 1]} : vector<16x96xf32> to vector<16x32xf32>
    %119 = vector.extract_strided_slice %109 {offsets = [0, 96], sizes = [16, 32], strides = [1, 1]} : vector<16x128xf32> to vector<16x32xf32>
    %120 = math.tanh %119 : vector<16x32xf32>
    %121 = arith.mulf %117, %98 : vector<16x32xf32>
    %122 = arith.mulf %116, %120 : vector<16x32xf32>
    %123 = arith.addf %121, %122 : vector<16x32xf32>
    %124 = math.tanh %123 : vector<16x32xf32>
    %125 = arith.mulf %118, %124 : vector<16x32xf32>
    %126 = vector.extract_strided_slice %125 {offsets = [0, 0], sizes = [8, 32], strides = [1, 1]} : vector<16x32xf32> to vector<8x32xf32>
    %127 = vector.extract_strided_slice %125 {offsets = [8, 0], sizes = [8, 32], strides = [1, 1]} : vector<16x32xf32> to vector<8x32xf32>
    %128 = tpu.concatenate %126, %127 in 1 : vector<8x32xf32>, vector<8x32xf32> -> vector<8x64xf32>
    %c8_53 = arith.constant 8 : index
    %c0_54 = arith.constant 0 : index
    %129 = vector.load %arg17[%c8_53, %c0_54] : memref<64x64xf32, #tpu.memory_space<vmem>>, vector<8x64xf32>
    tpu.vector_store %arg17[%c8_53, %c0_54], %128 {strides = array<i32>} : memref<64x64xf32, #tpu.memory_space<vmem>>, vector<8x64xf32>,
    %c16 = arith.constant 16 : index
    %c0_55 = arith.constant 0 : index
    %130 = vector.load %arg19[%c16, %c0_55] : memref<64x128xf32, #tpu.memory_space<vmem>>, vector<8x128xf32>
    %c40 = arith.constant 40 : index
    %c0_56 = arith.constant 0 : index
    %131 = vector.load %arg19[%c40, %c0_56] : memref<64x128xf32, #tpu.memory_space<vmem>>, vector<8x128xf32>
    %132 = tpu.concatenate %130, %131 in 0 : vector<8x128xf32>, vector<8x128xf32> -> vector<16x128xf32>
    %cst_57 = arith.constant dense<0.000000e+00> : vector<16x128xf32>
    %133 = tpu.matmul %125, %77, %cst_57 {dimension_numbers = #tpu.dot_dimension_numbers<[1], [0], [0], [1], [0, 0, 1, 1], [], []>} : vector<16x32xf32>, vector<32x128xf32>, vector<16x128xf32> -> vector<16x128xf32>
    %134 = arith.addf %132, %133 : vector<16x128xf32>
    %135 = vector.extract_strided_slice %134 {offsets = [0, 0], sizes = [16, 96], strides = [1, 1]} : vector<16x128xf32> to vector<16x96xf32>
    %136 = arith.negf %135 : vector<16x96xf32>
    %137 = math.exp %136 : vector<16x96xf32>
    %cst_58 = arith.constant 1.000000e+00 : f32
    %138 = vector.broadcast %cst_58 : f32 to vector<16x96xf32>
    %139 = arith.addf %138, %137 : vector<16x96xf32>
    %140 = arith.divf %138, %139 : vector<16x96xf32>
    %141 = vector.extract_strided_slice %140 {offsets = [0, 0], sizes = [16, 32], strides = [1, 1]} : vector<16x96xf32> to vector<16x32xf32>
    %142 = vector.extract_strided_slice %140 {offsets = [0, 32], sizes = [16, 32], strides = [1, 1]} : vector<16x96xf32> to vector<16x32xf32>
    %143 = vector.extract_strided_slice %140 {offsets = [0, 64], sizes = [16, 32], strides = [1, 1]} : vector<16x96xf32> to vector<16x32xf32>
    %144 = vector.extract_strided_slice %134 {offsets = [0, 96], sizes = [16, 32], strides = [1, 1]} : vector<16x128xf32> to vector<16x32xf32>
    %145 = math.tanh %144 : vector<16x32xf32>
    %146 = arith.mulf %142, %123 : vector<16x32xf32>
    %147 = arith.mulf %141, %145 : vector<16x32xf32>
    %148 = arith.addf %146, %147 : vector<16x32xf32>
    %149 = math.tanh %148 : vector<16x32xf32>
    %150 = arith.mulf %143, %149 : vector<16x32xf32>
    %151 = vector.extract_strided_slice %150 {offsets = [0, 0], sizes = [8, 32], strides = [1, 1]} : vector<16x32xf32> to vector<8x32xf32>
    %152 = vector.extract_strided_slice %150 {offsets = [8, 0], sizes = [8, 32], strides = [1, 1]} : vector<16x32xf32> to vector<8x32xf32>
    %153 = tpu.concatenate %151, %152 in 1 : vector<8x32xf32>, vector<8x32xf32> -> vector<8x64xf32>
    %c16_59 = arith.constant 16 : index
    %c0_60 = arith.constant 0 : index
    %154 = vector.load %arg17[%c16_59, %c0_60] : memref<64x64xf32, #tpu.memory_space<vmem>>, vector<8x64xf32>
    tpu.vector_store %arg17[%c16_59, %c0_60], %153 {strides = array<i32>} : memref<64x64xf32, #tpu.memory_space<vmem>>, vector<8x64xf32>,
    %c24 = arith.constant 24 : index
    %c0_61 = arith.constant 0 : index
    %155 = vector.load %arg19[%c24, %c0_61] : memref<64x128xf32, #tpu.memory_space<vmem>>, vector<8x128xf32>
    %c32 = arith.constant 32 : index
    %c0_62 = arith.constant 0 : index
    %156 = vector.load %arg19[%c32, %c0_62] : memref<64x128xf32, #tpu.memory_space<vmem>>, vector<8x128xf32>
    %157 = tpu.concatenate %155, %156 in 0 : vector<8x128xf32>, vector<8x128xf32> -> vector<16x128xf32>
    %cst_63 = arith.constant dense<0.000000e+00> : vector<16x128xf32>
    %158 = tpu.matmul %150, %77, %cst_63 {dimension_numbers = #tpu.dot_dimension_numbers<[1], [0], [0], [1], [0, 0, 1, 1], [], []>} : vector<16x32xf32>, vector<32x128xf32>, vector<16x128xf32> -> vector<16x128xf32>
    %159 = arith.addf %157, %158 : vector<16x128xf32>
    %160 = vector.extract_strided_slice %159 {offsets = [0, 0], sizes = [16, 96], strides = [1, 1]} : vector<16x128xf32> to vector<16x96xf32>
    %161 = arith.negf %160 : vector<16x96xf32>
    %162 = math.exp %161 : vector<16x96xf32>
    %cst_64 = arith.constant 1.000000e+00 : f32
    %163 = vector.broadcast %cst_64 : f32 to vector<16x96xf32>
    %164 = arith.addf %163, %162 : vector<16x96xf32>
    %165 = arith.divf %163, %164 : vector<16x96xf32>
    %166 = vector.extract_strided_slice %165 {offsets = [0, 0], sizes = [16, 32], strides = [1, 1]} : vector<16x96xf32> to vector<16x32xf32>
    %167 = vector.extract_strided_slice %165 {offsets = [0, 32], sizes = [16, 32], strides = [1, 1]} : vector<16x96xf32> to vector<16x32xf32>
    %168 = vector.extract_strided_slice %165 {offsets = [0, 64], sizes = [16, 32], strides = [1, 1]} : vector<16x96xf32> to vector<16x32xf32>
    %169 = vector.extract_strided_slice %159 {offsets = [0, 96], sizes = [16, 32], strides = [1, 1]} : vector<16x128xf32> to vector<16x32xf32>
    %170 = math.tanh %169 : vector<16x32xf32>
    %171 = arith.mulf %167, %148 : vector<16x32xf32>
    %172 = arith.mulf %166, %170 : vector<16x32xf32>
    %173 = arith.addf %171, %172 : vector<16x32xf32>
    %174 = math.tanh %173 : vector<16x32xf32>
    %175 = arith.mulf %168, %174 : vector<16x32xf32>
    %176 = vector.extract_strided_slice %175 {offsets = [0, 0], sizes = [8, 32], strides = [1, 1]} : vector<16x32xf32> to vector<8x32xf32>
    %177 = vector.extract_strided_slice %175 {offsets = [8, 0], sizes = [8, 32], strides = [1, 1]} : vector<16x32xf32> to vector<8x32xf32>
    %178 = tpu.concatenate %176, %177 in 1 : vector<8x32xf32>, vector<8x32xf32> -> vector<8x64xf32>
    %c24_65 = arith.constant 24 : index
    %c0_66 = arith.constant 0 : index
    %179 = vector.load %arg17[%c24_65, %c0_66] : memref<64x64xf32, #tpu.memory_space<vmem>>, vector<8x64xf32>
    tpu.vector_store %arg17[%c24_65, %c0_66], %178 {strides = array<i32>} : memref<64x64xf32, #tpu.memory_space<vmem>>, vector<8x64xf32>,
    %c32_67 = arith.constant 32 : index
    %c0_68 = arith.constant 0 : index
    %180 = vector.load %arg19[%c32_67, %c0_68] : memref<64x128xf32, #tpu.memory_space<vmem>>, vector<8x128xf32>
    %c24_69 = arith.constant 24 : index
    %c0_70 = arith.constant 0 : index
    %181 = vector.load %arg19[%c24_69, %c0_70] : memref<64x128xf32, #tpu.memory_space<vmem>>, vector<8x128xf32>
    %182 = tpu.concatenate %180, %181 in 0 : vector<8x128xf32>, vector<8x128xf32> -> vector<16x128xf32>
    %cst_71 = arith.constant dense<0.000000e+00> : vector<16x128xf32>
    %183 = tpu.matmul %175, %77, %cst_71 {dimension_numbers = #tpu.dot_dimension_numbers<[1], [0], [0], [1], [0, 0, 1, 1], [], []>} : vector<16x32xf32>, vector<32x128xf32>, vector<16x128xf32> -> vector<16x128xf32>
    %184 = arith.addf %182, %183 : vector<16x128xf32>
    %185 = vector.extract_strided_slice %184 {offsets = [0, 0], sizes = [16, 96], strides = [1, 1]} : vector<16x128xf32> to vector<16x96xf32>
    %186 = arith.negf %185 : vector<16x96xf32>
    %187 = math.exp %186 : vector<16x96xf32>
    %cst_72 = arith.constant 1.000000e+00 : f32
    %188 = vector.broadcast %cst_72 : f32 to vector<16x96xf32>
    %189 = arith.addf %188, %187 : vector<16x96xf32>
    %190 = arith.divf %188, %189 : vector<16x96xf32>
    %191 = vector.extract_strided_slice %190 {offsets = [0, 0], sizes = [16, 32], strides = [1, 1]} : vector<16x96xf32> to vector<16x32xf32>
    %192 = vector.extract_strided_slice %190 {offsets = [0, 32], sizes = [16, 32], strides = [1, 1]} : vector<16x96xf32> to vector<16x32xf32>
    %193 = vector.extract_strided_slice %190 {offsets = [0, 64], sizes = [16, 32], strides = [1, 1]} : vector<16x96xf32> to vector<16x32xf32>
    %194 = vector.extract_strided_slice %184 {offsets = [0, 96], sizes = [16, 32], strides = [1, 1]} : vector<16x128xf32> to vector<16x32xf32>
    %195 = math.tanh %194 : vector<16x32xf32>
    %196 = arith.mulf %192, %173 : vector<16x32xf32>
    %197 = arith.mulf %191, %195 : vector<16x32xf32>
    %198 = arith.addf %196, %197 : vector<16x32xf32>
    %199 = math.tanh %198 : vector<16x32xf32>
    %200 = arith.mulf %193, %199 : vector<16x32xf32>
    %201 = vector.extract_strided_slice %200 {offsets = [0, 0], sizes = [8, 32], strides = [1, 1]} : vector<16x32xf32> to vector<8x32xf32>
    %202 = vector.extract_strided_slice %200 {offsets = [8, 0], sizes = [8, 32], strides = [1, 1]} : vector<16x32xf32> to vector<8x32xf32>
    %203 = tpu.concatenate %201, %202 in 1 : vector<8x32xf32>, vector<8x32xf32> -> vector<8x64xf32>
    %c32_73 = arith.constant 32 : index
    %c0_74 = arith.constant 0 : index
    %204 = vector.load %arg17[%c32_73, %c0_74] : memref<64x64xf32, #tpu.memory_space<vmem>>, vector<8x64xf32>
    tpu.vector_store %arg17[%c32_73, %c0_74], %203 {strides = array<i32>} : memref<64x64xf32, #tpu.memory_space<vmem>>, vector<8x64xf32>,
    %c40_75 = arith.constant 40 : index
    %c0_76 = arith.constant 0 : index
    %205 = vector.load %arg19[%c40_75, %c0_76] : memref<64x128xf32, #tpu.memory_space<vmem>>, vector<8x128xf32>
    %c16_77 = arith.constant 16 : index
    %c0_78 = arith.constant 0 : index
    %206 = vector.load %arg19[%c16_77, %c0_78] : memref<64x128xf32, #tpu.memory_space<vmem>>, vector<8x128xf32>
    %207 = tpu.concatenate %205, %206 in 0 : vector<8x128xf32>, vector<8x128xf32> -> vector<16x128xf32>
    %cst_79 = arith.constant dense<0.000000e+00> : vector<16x128xf32>
    %208 = tpu.matmul %200, %77, %cst_79 {dimension_numbers = #tpu.dot_dimension_numbers<[1], [0], [0], [1], [0, 0, 1, 1], [], []>} : vector<16x32xf32>, vector<32x128xf32>, vector<16x128xf32> -> vector<16x128xf32>
    %209 = arith.addf %207, %208 : vector<16x128xf32>
    %210 = vector.extract_strided_slice %209 {offsets = [0, 0], sizes = [16, 96], strides = [1, 1]} : vector<16x128xf32> to vector<16x96xf32>
    %211 = arith.negf %210 : vector<16x96xf32>
    %212 = math.exp %211 : vector<16x96xf32>
    %cst_80 = arith.constant 1.000000e+00 : f32
    %213 = vector.broadcast %cst_80 : f32 to vector<16x96xf32>
    %214 = arith.addf %213, %212 : vector<16x96xf32>
    %215 = arith.divf %213, %214 : vector<16x96xf32>
    %216 = vector.extract_strided_slice %215 {offsets = [0, 0], sizes = [16, 32], strides = [1, 1]} : vector<16x96xf32> to vector<16x32xf32>
    %217 = vector.extract_strided_slice %215 {offsets = [0, 32], sizes = [16, 32], strides = [1, 1]} : vector<16x96xf32> to vector<16x32xf32>
    %218 = vector.extract_strided_slice %215 {offsets = [0, 64], sizes = [16, 32], strides = [1, 1]} : vector<16x96xf32> to vector<16x32xf32>
    %219 = vector.extract_strided_slice %209 {offsets = [0, 96], sizes = [16, 32], strides = [1, 1]} : vector<16x128xf32> to vector<16x32xf32>
    %220 = math.tanh %219 : vector<16x32xf32>
    %221 = arith.mulf %217, %198 : vector<16x32xf32>
    %222 = arith.mulf %216, %220 : vector<16x32xf32>
    %223 = arith.addf %221, %222 : vector<16x32xf32>
    %224 = math.tanh %223 : vector<16x32xf32>
    %225 = arith.mulf %218, %224 : vector<16x32xf32>
    %226 = vector.extract_strided_slice %225 {offsets = [0, 0], sizes = [8, 32], strides = [1, 1]} : vector<16x32xf32> to vector<8x32xf32>
    %227 = vector.extract_strided_slice %225 {offsets = [8, 0], sizes = [8, 32], strides = [1, 1]} : vector<16x32xf32> to vector<8x32xf32>
    %228 = tpu.concatenate %226, %227 in 1 : vector<8x32xf32>, vector<8x32xf32> -> vector<8x64xf32>
    %c40_81 = arith.constant 40 : index
    %c0_82 = arith.constant 0 : index
    %229 = vector.load %arg17[%c40_81, %c0_82] : memref<64x64xf32, #tpu.memory_space<vmem>>, vector<8x64xf32>
    tpu.vector_store %arg17[%c40_81, %c0_82], %228 {strides = array<i32>} : memref<64x64xf32, #tpu.memory_space<vmem>>, vector<8x64xf32>,
    %c48_83 = arith.constant 48 : index
    %c0_84 = arith.constant 0 : index
    %230 = vector.load %arg19[%c48_83, %c0_84] : memref<64x128xf32, #tpu.memory_space<vmem>>, vector<8x128xf32>
    %c8_85 = arith.constant 8 : index
    %c0_86 = arith.constant 0 : index
    %231 = vector.load %arg19[%c8_85, %c0_86] : memref<64x128xf32, #tpu.memory_space<vmem>>, vector<8x128xf32>
    %232 = tpu.concatenate %230, %231 in 0 : vector<8x128xf32>, vector<8x128xf32> -> vector<16x128xf32>
    %cst_87 = arith.constant dense<0.000000e+00> : vector<16x128xf32>
    %233 = tpu.matmul %225, %77, %cst_87 {dimension_numbers = #tpu.dot_dimension_numbers<[1], [0], [0], [1], [0, 0, 1, 1], [], []>} : vector<16x32xf32>, vector<32x128xf32>, vector<16x128xf32> -> vector<16x128xf32>
    %234 = arith.addf %232, %233 : vector<16x128xf32>
    %235 = vector.extract_strided_slice %234 {offsets = [0, 0], sizes = [16, 96], strides = [1, 1]} : vector<16x128xf32> to vector<16x96xf32>
    %236 = arith.negf %235 : vector<16x96xf32>
    %237 = math.exp %236 : vector<16x96xf32>
    %cst_88 = arith.constant 1.000000e+00 : f32
    %238 = vector.broadcast %cst_88 : f32 to vector<16x96xf32>
    %239 = arith.addf %238, %237 : vector<16x96xf32>
    %240 = arith.divf %238, %239 : vector<16x96xf32>
    %241 = vector.extract_strided_slice %240 {offsets = [0, 0], sizes = [16, 32], strides = [1, 1]} : vector<16x96xf32> to vector<16x32xf32>
    %242 = vector.extract_strided_slice %240 {offsets = [0, 32], sizes = [16, 32], strides = [1, 1]} : vector<16x96xf32> to vector<16x32xf32>
    %243 = vector.extract_strided_slice %240 {offsets = [0, 64], sizes = [16, 32], strides = [1, 1]} : vector<16x96xf32> to vector<16x32xf32>
    %244 = vector.extract_strided_slice %234 {offsets = [0, 96], sizes = [16, 32], strides = [1, 1]} : vector<16x128xf32> to vector<16x32xf32>
    %245 = math.tanh %244 : vector<16x32xf32>
    %246 = arith.mulf %242, %223 : vector<16x32xf32>
    %247 = arith.mulf %241, %245 : vector<16x32xf32>
    %248 = arith.addf %246, %247 : vector<16x32xf32>
    %249 = math.tanh %248 : vector<16x32xf32>
    %250 = arith.mulf %243, %249 : vector<16x32xf32>
    %251 = vector.extract_strided_slice %250 {offsets = [0, 0], sizes = [8, 32], strides = [1, 1]} : vector<16x32xf32> to vector<8x32xf32>
    %252 = vector.extract_strided_slice %250 {offsets = [8, 0], sizes = [8, 32], strides = [1, 1]} : vector<16x32xf32> to vector<8x32xf32>
    %253 = tpu.concatenate %251, %252 in 1 : vector<8x32xf32>, vector<8x32xf32> -> vector<8x64xf32>
    %c48_89 = arith.constant 48 : index
    %c0_90 = arith.constant 0 : index
    %254 = vector.load %arg17[%c48_89, %c0_90] : memref<64x64xf32, #tpu.memory_space<vmem>>, vector<8x64xf32>
    tpu.vector_store %arg17[%c48_89, %c0_90], %253 {strides = array<i32>} : memref<64x64xf32, #tpu.memory_space<vmem>>, vector<8x64xf32>,
    %c56_91 = arith.constant 56 : index
    %c0_92 = arith.constant 0 : index
    %255 = vector.load %arg19[%c56_91, %c0_92] : memref<64x128xf32, #tpu.memory_space<vmem>>, vector<8x128xf32>
    %c0_93 = arith.constant 0 : index
    %c0_94 = arith.constant 0 : index
    %256 = vector.load %arg19[%c0_93, %c0_94] : memref<64x128xf32, #tpu.memory_space<vmem>>, vector<8x128xf32>
    %257 = tpu.concatenate %255, %256 in 0 : vector<8x128xf32>, vector<8x128xf32> -> vector<16x128xf32>
    %cst_95 = arith.constant dense<0.000000e+00> : vector<16x128xf32>
    %258 = tpu.matmul %250, %77, %cst_95 {dimension_numbers = #tpu.dot_dimension_numbers<[1], [0], [0], [1], [0, 0, 1, 1], [], []>} : vector<16x32xf32>, vector<32x128xf32>, vector<16x128xf32> -> vector<16x128xf32>
    %259 = arith.addf %257, %258 : vector<16x128xf32>
    %260 = vector.extract_strided_slice %259 {offsets = [0, 0], sizes = [16, 96], strides = [1, 1]} : vector<16x128xf32> to vector<16x96xf32>
    %261 = arith.negf %260 : vector<16x96xf32>
    %262 = math.exp %261 : vector<16x96xf32>
    %cst_96 = arith.constant 1.000000e+00 : f32
    %263 = vector.broadcast %cst_96 : f32 to vector<16x96xf32>
    %264 = arith.addf %263, %262 : vector<16x96xf32>
    %265 = arith.divf %263, %264 : vector<16x96xf32>
    %266 = vector.extract_strided_slice %265 {offsets = [0, 0], sizes = [16, 32], strides = [1, 1]} : vector<16x96xf32> to vector<16x32xf32>
    %267 = vector.extract_strided_slice %265 {offsets = [0, 32], sizes = [16, 32], strides = [1, 1]} : vector<16x96xf32> to vector<16x32xf32>
    %268 = vector.extract_strided_slice %265 {offsets = [0, 64], sizes = [16, 32], strides = [1, 1]} : vector<16x96xf32> to vector<16x32xf32>
    %269 = vector.extract_strided_slice %259 {offsets = [0, 96], sizes = [16, 32], strides = [1, 1]} : vector<16x128xf32> to vector<16x32xf32>
    %270 = math.tanh %269 : vector<16x32xf32>
    %271 = arith.mulf %267, %248 : vector<16x32xf32>
    %272 = arith.mulf %266, %270 : vector<16x32xf32>
    %273 = arith.addf %271, %272 : vector<16x32xf32>
    %274 = math.tanh %273 : vector<16x32xf32>
    %275 = arith.mulf %268, %274 : vector<16x32xf32>
    %276 = vector.extract_strided_slice %275 {offsets = [0, 0], sizes = [8, 32], strides = [1, 1]} : vector<16x32xf32> to vector<8x32xf32>
    %277 = vector.extract_strided_slice %275 {offsets = [8, 0], sizes = [8, 32], strides = [1, 1]} : vector<16x32xf32> to vector<8x32xf32>
    %278 = tpu.concatenate %276, %277 in 1 : vector<8x32xf32>, vector<8x32xf32> -> vector<8x64xf32>
    %c56_97 = arith.constant 56 : index
    %c0_98 = arith.constant 0 : index
    %279 = vector.load %arg17[%c56_97, %c0_98] : memref<64x64xf32, #tpu.memory_space<vmem>>, vector<8x64xf32>
    tpu.vector_store %arg17[%c56_97, %c0_98], %278 {strides = array<i32>} : memref<64x64xf32, #tpu.memory_space<vmem>>, vector<8x64xf32>,
    %c0_99 = arith.constant 0 : index
    %c0_100 = arith.constant 0 : index
    %280 = vector.load %arg17[%c0_99, %c0_100] : memref<64x64xf32, #tpu.memory_space<vmem>>, vector<64x64xf32>
    %c0_101 = arith.constant 0 : index
    %c0_102 = arith.constant 0 : index
    %281 = vector.load %arg9[%c0_101, %c0_102] : memref<64x128xf32, #tpu.memory_space<vmem>>, vector<64x128xf32>
    %cst_103 = arith.constant dense<0.000000e+00> : vector<64x128xf32>
    %282 = tpu.matmul %280, %281, %cst_103 {dimension_numbers = #tpu.dot_dimension_numbers<[1], [0], [0], [1], [0, 0, 1, 1], [], []>} : vector<64x64xf32>, vector<64x128xf32>, vector<64x128xf32> -> vector<64x128xf32>
    %c0_104 = arith.constant 0 : index
    %c0_105 = arith.constant 0 : index
    %283 = vector.load %arg11[%c0_104, %c0_105] : memref<1x128xf32, #tpu.memory_space<vmem>>, vector<1x128xf32>
    %284 = vector.broadcast %283 : vector<1x128xf32> to vector<64x128xf32>
    %285 = arith.addf %282, %284 : vector<64x128xf32>
    %c0_106 = arith.constant 0 : index
    %c0_107 = arith.constant 0 : index
    %286 = vector.load %arg19[%c0_106, %c0_107] : memref<64x128xf32, #tpu.memory_space<vmem>>, vector<64x128xf32>
    tpu.vector_store %arg19[%c0_106, %c0_107], %285 {strides = array<i32>} : memref<64x128xf32, #tpu.memory_space<vmem>>, vector<64x128xf32>,
    %c0_108 = arith.constant 0 : index
    %c0_109 = arith.constant 0 : index
    %287 = vector.load %arg10[%c0_108, %c0_109] : memref<1x128xf32, #tpu.memory_space<vmem>>, vector<1x128xf32>
    %288 = vector.shape_cast %287 : vector<1x128xf32> to vector<1x128xf32>
    %289 = vector.broadcast %288 : vector<1x128xf32> to vector<8x128xf32>
    %c0_110 = arith.constant 0 : index
    %c0_111 = arith.constant 0 : index
    %290 = vector.load %arg13[%c0_110, %c0_111] : memref<1x64xf32, #tpu.memory_space<vmem>>, vector<1x64xf32>
    %291 = vector.shape_cast %290 : vector<1x64xf32> to vector<1x64xf32>
    %292 = vector.broadcast %291 : vector<1x64xf32> to vector<8x64xf32>
    %c0_112 = arith.constant 0 : index
    %c0_113 = arith.constant 0 : index
    %293 = vector.load %arg12[%c0_112, %c0_113] : memref<128x64xf32, #tpu.memory_space<vmem>>, vector<128x64xf32>
    %c0_114 = arith.constant 0 : index
    %c0_115 = arith.constant 0 : index
    %294 = vector.load %arg14[%c0_114, %c0_115] : memref<64x2xf32, #tpu.memory_space<vmem>>, vector<64x2xf32>
    %c0_116 = arith.constant 0 : index
    %c0_117 = arith.constant 0 : index
    %295 = vector.load %arg15[%c0_116, %c0_117] : memref<1x2xf32, #tpu.memory_space<vmem>>, vector<1x2xf32>
    %296 = vector.extract_strided_slice %294 {offsets = [0, 0], sizes = [64, 1], strides = [1, 1]} : vector<64x2xf32> to vector<64x1xf32>
    %297 = vector.extract_strided_slice %294 {offsets = [0, 1], sizes = [64, 1], strides = [1, 1]} : vector<64x2xf32> to vector<64x1xf32>
    %298 = arith.subf %296, %297 : vector<64x1xf32>
    %299 = vector.extract_strided_slice %295 {offsets = [0, 0], sizes = [1, 1], strides = [1, 1]} : vector<1x2xf32> to vector<1x1xf32>
    %300 = vector.extract_strided_slice %295 {offsets = [0, 1], sizes = [1, 1], strides = [1, 1]} : vector<1x2xf32> to vector<1x1xf32>
    %301 = arith.subf %299, %300 : vector<1x1xf32>
    %c0_118 = arith.constant 0 : index
    %c0_119 = arith.constant 0 : index
    %302 = vector.load %arg3[%c0_118, %c0_119] : memref<64x1xf32, #tpu.memory_space<vmem>>, vector<8x1xf32>
    %c0_120 = arith.constant 0 : index
    %c0_121 = arith.constant 0 : index
    %303 = vector.load %arg19[%c0_120, %c0_121] : memref<64x128xf32, #tpu.memory_space<vmem>>, vector<8x128xf32>
    %304 = vector.broadcast %302 : vector<8x1xf32> to vector<8x128xf32>
    %305 = arith.mulf %304, %289 : vector<8x128xf32>
    %306 = arith.addf %303, %305 : vector<8x128xf32>
    %cst_122 = arith.constant 0.000000e+00 : f32
    %307 = vector.broadcast %cst_122 : f32 to vector<8x128xf32>
    %308 = arith.cmpf ogt, %306, %307 : vector<8x128xf32>
    %cst_123 = arith.constant 0.00999999977 : f32
    %309 = vector.broadcast %cst_123 : f32 to vector<8x128xf32>
    %310 = arith.mulf %309, %306 : vector<8x128xf32>
    %311 = arith.select %308, %306, %310 : vector<8x128xi1>, vector<8x128xf32>
    %cst_124 = arith.constant dense<0.000000e+00> : vector<8x64xf32>
    %312 = tpu.matmul %311, %293, %cst_124 {dimension_numbers = #tpu.dot_dimension_numbers<[1], [0], [0], [1], [0, 0, 1, 1], [], []>} : vector<8x128xf32>, vector<128x64xf32>, vector<8x64xf32> -> vector<8x64xf32>
    %313 = arith.addf %312, %292 : vector<8x64xf32>
    %cst_125 = arith.constant 0.000000e+00 : f32
    %314 = vector.broadcast %cst_125 : f32 to vector<8x64xf32>
    %315 = arith.cmpf ogt, %313, %314 : vector<8x64xf32>
    %cst_126 = arith.constant 0.00999999977 : f32
    %316 = vector.broadcast %cst_126 : f32 to vector<8x64xf32>
    %317 = arith.mulf %316, %313 : vector<8x64xf32>
    %318 = arith.select %315, %313, %317 : vector<8x64xi1>, vector<8x64xf32>
    %c0_127 = arith.constant 0 : index
    %c0_128 = arith.constant 0 : index
    %319 = vector.load %arg18[%c0_127, %c0_128] : memref<64x64xf32, #tpu.memory_space<vmem>>, vector<8x64xf32>
    tpu.vector_store %arg18[%c0_127, %c0_128], %318 {strides = array<i32>} : memref<64x64xf32, #tpu.memory_space<vmem>>, vector<8x64xf32>,
    %cst_129 = arith.constant dense<0.000000e+00> : vector<8x1xf32>
    %320 = tpu.matmul %318, %298, %cst_129 {dimension_numbers = #tpu.dot_dimension_numbers<[1], [0], [0], [1], [0, 0, 1, 1], [], []>} : vector<8x64xf32>, vector<64x1xf32>, vector<8x1xf32> -> vector<8x1xf32>
    %321 = vector.broadcast %301 : vector<1x1xf32> to vector<8x1xf32>
    %322 = arith.addf %320, %321 : vector<8x1xf32>
    %323 = arith.negf %322 : vector<8x1xf32>
    %324 = math.exp %323 : vector<8x1xf32>
    %cst_130 = arith.constant 1.000000e+00 : f32
    %325 = vector.broadcast %cst_130 : f32 to vector<8x1xf32>
    %326 = arith.addf %325, %324 : vector<8x1xf32>
    %327 = arith.divf %325, %326 : vector<8x1xf32>
    %c0_131 = arith.constant 0 : index
    %328 = memref.load %arg1[%c0_131] : memref<8xi32, #tpu.memory_space<smem>>
    %c1_i32 = arith.constant 1 : i32
    %329 = arith.cmpi eq, %328, %c1_i32 : i32
    %c0_132 = arith.constant 0 : index
    %c0_133 = arith.constant 0 : index
    %330 = vector.load %arg3[%c0_132, %c0_133] : memref<64x1xf32, #tpu.memory_space<vmem>>, vector<8x1xf32>
    %331 = arith.select %329, %330, %327 : vector<8x1xf32>
    %c8_134 = arith.constant 8 : index
    %c0_135 = arith.constant 0 : index
    %332 = vector.load %arg19[%c8_134, %c0_135] : memref<64x128xf32, #tpu.memory_space<vmem>>, vector<8x128xf32>
    %333 = vector.broadcast %331 : vector<8x1xf32> to vector<8x128xf32>
    %334 = arith.mulf %333, %289 : vector<8x128xf32>
    %335 = arith.addf %332, %334 : vector<8x128xf32>
    %cst_136 = arith.constant 0.000000e+00 : f32
    %336 = vector.broadcast %cst_136 : f32 to vector<8x128xf32>
    %337 = arith.cmpf ogt, %335, %336 : vector<8x128xf32>
    %cst_137 = arith.constant 0.00999999977 : f32
    %338 = vector.broadcast %cst_137 : f32 to vector<8x128xf32>
    %339 = arith.mulf %338, %335 : vector<8x128xf32>
    %340 = arith.select %337, %335, %339 : vector<8x128xi1>, vector<8x128xf32>
    %cst_138 = arith.constant dense<0.000000e+00> : vector<8x64xf32>
    %341 = tpu.matmul %340, %293, %cst_138 {dimension_numbers = #tpu.dot_dimension_numbers<[1], [0], [0], [1], [0, 0, 1, 1], [], []>} : vector<8x128xf32>, vector<128x64xf32>, vector<8x64xf32> -> vector<8x64xf32>
    %342 = arith.addf %341, %292 : vector<8x64xf32>
    %cst_139 = arith.constant 0.000000e+00 : f32
    %343 = vector.broadcast %cst_139 : f32 to vector<8x64xf32>
    %344 = arith.cmpf ogt, %342, %343 : vector<8x64xf32>
    %cst_140 = arith.constant 0.00999999977 : f32
    %345 = vector.broadcast %cst_140 : f32 to vector<8x64xf32>
    %346 = arith.mulf %345, %342 : vector<8x64xf32>
    %347 = arith.select %344, %342, %346 : vector<8x64xi1>, vector<8x64xf32>
    %c8_141 = arith.constant 8 : index
    %c0_142 = arith.constant 0 : index
    %348 = vector.load %arg18[%c8_141, %c0_142] : memref<64x64xf32, #tpu.memory_space<vmem>>, vector<8x64xf32>
    tpu.vector_store %arg18[%c8_141, %c0_142], %347 {strides = array<i32>} : memref<64x64xf32, #tpu.memory_space<vmem>>, vector<8x64xf32>,
    %cst_143 = arith.constant dense<0.000000e+00> : vector<8x1xf32>
    %349 = tpu.matmul %347, %298, %cst_143 {dimension_numbers = #tpu.dot_dimension_numbers<[1], [0], [0], [1], [0, 0, 1, 1], [], []>} : vector<8x64xf32>, vector<64x1xf32>, vector<8x1xf32> -> vector<8x1xf32>
    %350 = vector.broadcast %301 : vector<1x1xf32> to vector<8x1xf32>
    %351 = arith.addf %349, %350 : vector<8x1xf32>
    %352 = arith.negf %351 : vector<8x1xf32>
    %353 = math.exp %352 : vector<8x1xf32>
    %cst_144 = arith.constant 1.000000e+00 : f32
    %354 = vector.broadcast %cst_144 : f32 to vector<8x1xf32>
    %355 = arith.addf %354, %353 : vector<8x1xf32>
    %356 = arith.divf %354, %355 : vector<8x1xf32>
    %c1 = arith.constant 1 : index
    %357 = memref.load %arg1[%c1] : memref<8xi32, #tpu.memory_space<smem>>
    %c1_i32_145 = arith.constant 1 : i32
    %358 = arith.cmpi eq, %357, %c1_i32_145 : i32
    %c8_146 = arith.constant 8 : index
    %c0_147 = arith.constant 0 : index
    %359 = vector.load %arg3[%c8_146, %c0_147] : memref<64x1xf32, #tpu.memory_space<vmem>>, vector<8x1xf32>
    %360 = arith.select %358, %359, %356 : vector<8x1xf32>
    %c16_148 = arith.constant 16 : index
    %c0_149 = arith.constant 0 : index
    %361 = vector.load %arg19[%c16_148, %c0_149] : memref<64x128xf32, #tpu.memory_space<vmem>>, vector<8x128xf32>
    %362 = vector.broadcast %360 : vector<8x1xf32> to vector<8x128xf32>
    %363 = arith.mulf %362, %289 : vector<8x128xf32>
    %364 = arith.addf %361, %363 : vector<8x128xf32>
    %cst_150 = arith.constant 0.000000e+00 : f32
    %365 = vector.broadcast %cst_150 : f32 to vector<8x128xf32>
    %366 = arith.cmpf ogt, %364, %365 : vector<8x128xf32>
    %cst_151 = arith.constant 0.00999999977 : f32
    %367 = vector.broadcast %cst_151 : f32 to vector<8x128xf32>
    %368 = arith.mulf %367, %364 : vector<8x128xf32>
    %369 = arith.select %366, %364, %368 : vector<8x128xi1>, vector<8x128xf32>
    %cst_152 = arith.constant dense<0.000000e+00> : vector<8x64xf32>
    %370 = tpu.matmul %369, %293, %cst_152 {dimension_numbers = #tpu.dot_dimension_numbers<[1], [0], [0], [1], [0, 0, 1, 1], [], []>} : vector<8x128xf32>, vector<128x64xf32>, vector<8x64xf32> -> vector<8x64xf32>
    %371 = arith.addf %370, %292 : vector<8x64xf32>
    %cst_153 = arith.constant 0.000000e+00 : f32
    %372 = vector.broadcast %cst_153 : f32 to vector<8x64xf32>
    %373 = arith.cmpf ogt, %371, %372 : vector<8x64xf32>
    %cst_154 = arith.constant 0.00999999977 : f32
    %374 = vector.broadcast %cst_154 : f32 to vector<8x64xf32>
    %375 = arith.mulf %374, %371 : vector<8x64xf32>
    %376 = arith.select %373, %371, %375 : vector<8x64xi1>, vector<8x64xf32>
    %c16_155 = arith.constant 16 : index
    %c0_156 = arith.constant 0 : index
    %377 = vector.load %arg18[%c16_155, %c0_156] : memref<64x64xf32, #tpu.memory_space<vmem>>, vector<8x64xf32>
    tpu.vector_store %arg18[%c16_155, %c0_156], %376 {strides = array<i32>} : memref<64x64xf32, #tpu.memory_space<vmem>>, vector<8x64xf32>,
    %cst_157 = arith.constant dense<0.000000e+00> : vector<8x1xf32>
    %378 = tpu.matmul %376, %298, %cst_157 {dimension_numbers = #tpu.dot_dimension_numbers<[1], [0], [0], [1], [0, 0, 1, 1], [], []>} : vector<8x64xf32>, vector<64x1xf32>, vector<8x1xf32> -> vector<8x1xf32>
    %379 = vector.broadcast %301 : vector<1x1xf32> to vector<8x1xf32>
    %380 = arith.addf %378, %379 : vector<8x1xf32>
    %381 = arith.negf %380 : vector<8x1xf32>
    %382 = math.exp %381 : vector<8x1xf32>
    %cst_158 = arith.constant 1.000000e+00 : f32
    %383 = vector.broadcast %cst_158 : f32 to vector<8x1xf32>
    %384 = arith.addf %383, %382 : vector<8x1xf32>
    %385 = arith.divf %383, %384 : vector<8x1xf32>
    %c2 = arith.constant 2 : index
    %386 = memref.load %arg1[%c2] : memref<8xi32, #tpu.memory_space<smem>>
    %c1_i32_159 = arith.constant 1 : i32
    %387 = arith.cmpi eq, %386, %c1_i32_159 : i32
    %c16_160 = arith.constant 16 : index
    %c0_161 = arith.constant 0 : index
    %388 = vector.load %arg3[%c16_160, %c0_161] : memref<64x1xf32, #tpu.memory_space<vmem>>, vector<8x1xf32>
    %389 = arith.select %387, %388, %385 : vector<8x1xf32>
    %c24_162 = arith.constant 24 : index
    %c0_163 = arith.constant 0 : index
    %390 = vector.load %arg19[%c24_162, %c0_163] : memref<64x128xf32, #tpu.memory_space<vmem>>, vector<8x128xf32>
    %391 = vector.broadcast %389 : vector<8x1xf32> to vector<8x128xf32>
    %392 = arith.mulf %391, %289 : vector<8x128xf32>
    %393 = arith.addf %390, %392 : vector<8x128xf32>
    %cst_164 = arith.constant 0.000000e+00 : f32
    %394 = vector.broadcast %cst_164 : f32 to vector<8x128xf32>
    %395 = arith.cmpf ogt, %393, %394 : vector<8x128xf32>
    %cst_165 = arith.constant 0.00999999977 : f32
    %396 = vector.broadcast %cst_165 : f32 to vector<8x128xf32>
    %397 = arith.mulf %396, %393 : vector<8x128xf32>
    %398 = arith.select %395, %393, %397 : vector<8x128xi1>, vector<8x128xf32>
    %cst_166 = arith.constant dense<0.000000e+00> : vector<8x64xf32>
    %399 = tpu.matmul %398, %293, %cst_166 {dimension_numbers = #tpu.dot_dimension_numbers<[1], [0], [0], [1], [0, 0, 1, 1], [], []>} : vector<8x128xf32>, vector<128x64xf32>, vector<8x64xf32> -> vector<8x64xf32>
    %400 = arith.addf %399, %292 : vector<8x64xf32>
    %cst_167 = arith.constant 0.000000e+00 : f32
    %401 = vector.broadcast %cst_167 : f32 to vector<8x64xf32>
    %402 = arith.cmpf ogt, %400, %401 : vector<8x64xf32>
    %cst_168 = arith.constant 0.00999999977 : f32
    %403 = vector.broadcast %cst_168 : f32 to vector<8x64xf32>
    %404 = arith.mulf %403, %400 : vector<8x64xf32>
    %405 = arith.select %402, %400, %404 : vector<8x64xi1>, vector<8x64xf32>
    %c24_169 = arith.constant 24 : index
    %c0_170 = arith.constant 0 : index
    %406 = vector.load %arg18[%c24_169, %c0_170] : memref<64x64xf32, #tpu.memory_space<vmem>>, vector<8x64xf32>
    tpu.vector_store %arg18[%c24_169, %c0_170], %405 {strides = array<i32>} : memref<64x64xf32, #tpu.memory_space<vmem>>, vector<8x64xf32>,
    %cst_171 = arith.constant dense<0.000000e+00> : vector<8x1xf32>
    %407 = tpu.matmul %405, %298, %cst_171 {dimension_numbers = #tpu.dot_dimension_numbers<[1], [0], [0], [1], [0, 0, 1, 1], [], []>} : vector<8x64xf32>, vector<64x1xf32>, vector<8x1xf32> -> vector<8x1xf32>
    %408 = vector.broadcast %301 : vector<1x1xf32> to vector<8x1xf32>
    %409 = arith.addf %407, %408 : vector<8x1xf32>
    %410 = arith.negf %409 : vector<8x1xf32>
    %411 = math.exp %410 : vector<8x1xf32>
    %cst_172 = arith.constant 1.000000e+00 : f32
    %412 = vector.broadcast %cst_172 : f32 to vector<8x1xf32>
    %413 = arith.addf %412, %411 : vector<8x1xf32>
    %414 = arith.divf %412, %413 : vector<8x1xf32>
    %c3 = arith.constant 3 : index
    %415 = memref.load %arg1[%c3] : memref<8xi32, #tpu.memory_space<smem>>
    %c1_i32_173 = arith.constant 1 : i32
    %416 = arith.cmpi eq, %415, %c1_i32_173 : i32
    %c24_174 = arith.constant 24 : index
    %c0_175 = arith.constant 0 : index
    %417 = vector.load %arg3[%c24_174, %c0_175] : memref<64x1xf32, #tpu.memory_space<vmem>>, vector<8x1xf32>
    %418 = arith.select %416, %417, %414 : vector<8x1xf32>
    %c32_176 = arith.constant 32 : index
    %c0_177 = arith.constant 0 : index
    %419 = vector.load %arg19[%c32_176, %c0_177] : memref<64x128xf32, #tpu.memory_space<vmem>>, vector<8x128xf32>
    %420 = vector.broadcast %418 : vector<8x1xf32> to vector<8x128xf32>
    %421 = arith.mulf %420, %289 : vector<8x128xf32>
    %422 = arith.addf %419, %421 : vector<8x128xf32>
    %cst_178 = arith.constant 0.000000e+00 : f32
    %423 = vector.broadcast %cst_178 : f32 to vector<8x128xf32>
    %424 = arith.cmpf ogt, %422, %423 : vector<8x128xf32>
    %cst_179 = arith.constant 0.00999999977 : f32
    %425 = vector.broadcast %cst_179 : f32 to vector<8x128xf32>
    %426 = arith.mulf %425, %422 : vector<8x128xf32>
    %427 = arith.select %424, %422, %426 : vector<8x128xi1>, vector<8x128xf32>
    %cst_180 = arith.constant dense<0.000000e+00> : vector<8x64xf32>
    %428 = tpu.matmul %427, %293, %cst_180 {dimension_numbers = #tpu.dot_dimension_numbers<[1], [0], [0], [1], [0, 0, 1, 1], [], []>} : vector<8x128xf32>, vector<128x64xf32>, vector<8x64xf32> -> vector<8x64xf32>
    %429 = arith.addf %428, %292 : vector<8x64xf32>
    %cst_181 = arith.constant 0.000000e+00 : f32
    %430 = vector.broadcast %cst_181 : f32 to vector<8x64xf32>
    %431 = arith.cmpf ogt, %429, %430 : vector<8x64xf32>
    %cst_182 = arith.constant 0.00999999977 : f32
    %432 = vector.broadcast %cst_182 : f32 to vector<8x64xf32>
    %433 = arith.mulf %432, %429 : vector<8x64xf32>
    %434 = arith.select %431, %429, %433 : vector<8x64xi1>, vector<8x64xf32>
    %c32_183 = arith.constant 32 : index
    %c0_184 = arith.constant 0 : index
    %435 = vector.load %arg18[%c32_183, %c0_184] : memref<64x64xf32, #tpu.memory_space<vmem>>, vector<8x64xf32>
    tpu.vector_store %arg18[%c32_183, %c0_184], %434 {strides = array<i32>} : memref<64x64xf32, #tpu.memory_space<vmem>>, vector<8x64xf32>,
    %cst_185 = arith.constant dense<0.000000e+00> : vector<8x1xf32>
    %436 = tpu.matmul %434, %298, %cst_185 {dimension_numbers = #tpu.dot_dimension_numbers<[1], [0], [0], [1], [0, 0, 1, 1], [], []>} : vector<8x64xf32>, vector<64x1xf32>, vector<8x1xf32> -> vector<8x1xf32>
    %437 = vector.broadcast %301 : vector<1x1xf32> to vector<8x1xf32>
    %438 = arith.addf %436, %437 : vector<8x1xf32>
    %439 = arith.negf %438 : vector<8x1xf32>
    %440 = math.exp %439 : vector<8x1xf32>
    %cst_186 = arith.constant 1.000000e+00 : f32
    %441 = vector.broadcast %cst_186 : f32 to vector<8x1xf32>
    %442 = arith.addf %441, %440 : vector<8x1xf32>
    %443 = arith.divf %441, %442 : vector<8x1xf32>
    %c4 = arith.constant 4 : index
    %444 = memref.load %arg1[%c4] : memref<8xi32, #tpu.memory_space<smem>>
    %c1_i32_187 = arith.constant 1 : i32
    %445 = arith.cmpi eq, %444, %c1_i32_187 : i32
    %c32_188 = arith.constant 32 : index
    %c0_189 = arith.constant 0 : index
    %446 = vector.load %arg3[%c32_188, %c0_189] : memref<64x1xf32, #tpu.memory_space<vmem>>, vector<8x1xf32>
    %447 = arith.select %445, %446, %443 : vector<8x1xf32>
    %c40_190 = arith.constant 40 : index
    %c0_191 = arith.constant 0 : index
    %448 = vector.load %arg19[%c40_190, %c0_191] : memref<64x128xf32, #tpu.memory_space<vmem>>, vector<8x128xf32>
    %449 = vector.broadcast %447 : vector<8x1xf32> to vector<8x128xf32>
    %450 = arith.mulf %449, %289 : vector<8x128xf32>
    %451 = arith.addf %448, %450 : vector<8x128xf32>
    %cst_192 = arith.constant 0.000000e+00 : f32
    %452 = vector.broadcast %cst_192 : f32 to vector<8x128xf32>
    %453 = arith.cmpf ogt, %451, %452 : vector<8x128xf32>
    %cst_193 = arith.constant 0.00999999977 : f32
    %454 = vector.broadcast %cst_193 : f32 to vector<8x128xf32>
    %455 = arith.mulf %454, %451 : vector<8x128xf32>
    %456 = arith.select %453, %451, %455 : vector<8x128xi1>, vector<8x128xf32>
    %cst_194 = arith.constant dense<0.000000e+00> : vector<8x64xf32>
    %457 = tpu.matmul %456, %293, %cst_194 {dimension_numbers = #tpu.dot_dimension_numbers<[1], [0], [0], [1], [0, 0, 1, 1], [], []>} : vector<8x128xf32>, vector<128x64xf32>, vector<8x64xf32> -> vector<8x64xf32>
    %458 = arith.addf %457, %292 : vector<8x64xf32>
    %cst_195 = arith.constant 0.000000e+00 : f32
    %459 = vector.broadcast %cst_195 : f32 to vector<8x64xf32>
    %460 = arith.cmpf ogt, %458, %459 : vector<8x64xf32>
    %cst_196 = arith.constant 0.00999999977 : f32
    %461 = vector.broadcast %cst_196 : f32 to vector<8x64xf32>
    %462 = arith.mulf %461, %458 : vector<8x64xf32>
    %463 = arith.select %460, %458, %462 : vector<8x64xi1>, vector<8x64xf32>
    %c40_197 = arith.constant 40 : index
    %c0_198 = arith.constant 0 : index
    %464 = vector.load %arg18[%c40_197, %c0_198] : memref<64x64xf32, #tpu.memory_space<vmem>>, vector<8x64xf32>
    tpu.vector_store %arg18[%c40_197, %c0_198], %463 {strides = array<i32>} : memref<64x64xf32, #tpu.memory_space<vmem>>, vector<8x64xf32>,
    %cst_199 = arith.constant dense<0.000000e+00> : vector<8x1xf32>
    %465 = tpu.matmul %463, %298, %cst_199 {dimension_numbers = #tpu.dot_dimension_numbers<[1], [0], [0], [1], [0, 0, 1, 1], [], []>} : vector<8x64xf32>, vector<64x1xf32>, vector<8x1xf32> -> vector<8x1xf32>
    %466 = vector.broadcast %301 : vector<1x1xf32> to vector<8x1xf32>
    %467 = arith.addf %465, %466 : vector<8x1xf32>
    %468 = arith.negf %467 : vector<8x1xf32>
    %469 = math.exp %468 : vector<8x1xf32>
    %cst_200 = arith.constant 1.000000e+00 : f32
    %470 = vector.broadcast %cst_200 : f32 to vector<8x1xf32>
    %471 = arith.addf %470, %469 : vector<8x1xf32>
    %472 = arith.divf %470, %471 : vector<8x1xf32>
    %c5 = arith.constant 5 : index
    %473 = memref.load %arg1[%c5] : memref<8xi32, #tpu.memory_space<smem>>
    %c1_i32_201 = arith.constant 1 : i32
    %474 = arith.cmpi eq, %473, %c1_i32_201 : i32
    %c40_202 = arith.constant 40 : index
    %c0_203 = arith.constant 0 : index
    %475 = vector.load %arg3[%c40_202, %c0_203] : memref<64x1xf32, #tpu.memory_space<vmem>>, vector<8x1xf32>
    %476 = arith.select %474, %475, %472 : vector<8x1xf32>
    %c48_204 = arith.constant 48 : index
    %c0_205 = arith.constant 0 : index
    %477 = vector.load %arg19[%c48_204, %c0_205] : memref<64x128xf32, #tpu.memory_space<vmem>>, vector<8x128xf32>
    %478 = vector.broadcast %476 : vector<8x1xf32> to vector<8x128xf32>
    %479 = arith.mulf %478, %289 : vector<8x128xf32>
    %480 = arith.addf %477, %479 : vector<8x128xf32>
    %cst_206 = arith.constant 0.000000e+00 : f32
    %481 = vector.broadcast %cst_206 : f32 to vector<8x128xf32>
    %482 = arith.cmpf ogt, %480, %481 : vector<8x128xf32>
    %cst_207 = arith.constant 0.00999999977 : f32
    %483 = vector.broadcast %cst_207 : f32 to vector<8x128xf32>
    %484 = arith.mulf %483, %480 : vector<8x128xf32>
    %485 = arith.select %482, %480, %484 : vector<8x128xi1>, vector<8x128xf32>
    %cst_208 = arith.constant dense<0.000000e+00> : vector<8x64xf32>
    %486 = tpu.matmul %485, %293, %cst_208 {dimension_numbers = #tpu.dot_dimension_numbers<[1], [0], [0], [1], [0, 0, 1, 1], [], []>} : vector<8x128xf32>, vector<128x64xf32>, vector<8x64xf32> -> vector<8x64xf32>
    %487 = arith.addf %486, %292 : vector<8x64xf32>
    %cst_209 = arith.constant 0.000000e+00 : f32
    %488 = vector.broadcast %cst_209 : f32 to vector<8x64xf32>
    %489 = arith.cmpf ogt, %487, %488 : vector<8x64xf32>
    %cst_210 = arith.constant 0.00999999977 : f32
    %490 = vector.broadcast %cst_210 : f32 to vector<8x64xf32>
    %491 = arith.mulf %490, %487 : vector<8x64xf32>
    %492 = arith.select %489, %487, %491 : vector<8x64xi1>, vector<8x64xf32>
    %c48_211 = arith.constant 48 : index
    %c0_212 = arith.constant 0 : index
    %493 = vector.load %arg18[%c48_211, %c0_212] : memref<64x64xf32, #tpu.memory_space<vmem>>, vector<8x64xf32>
    tpu.vector_store %arg18[%c48_211, %c0_212], %492 {strides = array<i32>} : memref<64x64xf32, #tpu.memory_space<vmem>>, vector<8x64xf32>,
    %cst_213 = arith.constant dense<0.000000e+00> : vector<8x1xf32>
    %494 = tpu.matmul %492, %298, %cst_213 {dimension_numbers = #tpu.dot_dimension_numbers<[1], [0], [0], [1], [0, 0, 1, 1], [], []>} : vector<8x64xf32>, vector<64x1xf32>, vector<8x1xf32> -> vector<8x1xf32>
    %495 = vector.broadcast %301 : vector<1x1xf32> to vector<8x1xf32>
    %496 = arith.addf %494, %495 : vector<8x1xf32>
    %497 = arith.negf %496 : vector<8x1xf32>
    %498 = math.exp %497 : vector<8x1xf32>
    %cst_214 = arith.constant 1.000000e+00 : f32
    %499 = vector.broadcast %cst_214 : f32 to vector<8x1xf32>
    %500 = arith.addf %499, %498 : vector<8x1xf32>
    %501 = arith.divf %499, %500 : vector<8x1xf32>
    %c6 = arith.constant 6 : index
    %502 = memref.load %arg1[%c6] : memref<8xi32, #tpu.memory_space<smem>>
    %c1_i32_215 = arith.constant 1 : i32
    %503 = arith.cmpi eq, %502, %c1_i32_215 : i32
    %c48_216 = arith.constant 48 : index
    %c0_217 = arith.constant 0 : index
    %504 = vector.load %arg3[%c48_216, %c0_217] : memref<64x1xf32, #tpu.memory_space<vmem>>, vector<8x1xf32>
    %505 = arith.select %503, %504, %501 : vector<8x1xf32>
    %c56_218 = arith.constant 56 : index
    %c0_219 = arith.constant 0 : index
    %506 = vector.load %arg19[%c56_218, %c0_219] : memref<64x128xf32, #tpu.memory_space<vmem>>, vector<8x128xf32>
    %507 = vector.broadcast %505 : vector<8x1xf32> to vector<8x128xf32>
    %508 = arith.mulf %507, %289 : vector<8x128xf32>
    %509 = arith.addf %506, %508 : vector<8x128xf32>
    %cst_220 = arith.constant 0.000000e+00 : f32
    %510 = vector.broadcast %cst_220 : f32 to vector<8x128xf32>
    %511 = arith.cmpf ogt, %509, %510 : vector<8x128xf32>
    %cst_221 = arith.constant 0.00999999977 : f32
    %512 = vector.broadcast %cst_221 : f32 to vector<8x128xf32>
    %513 = arith.mulf %512, %509 : vector<8x128xf32>
    %514 = arith.select %511, %509, %513 : vector<8x128xi1>, vector<8x128xf32>
    %cst_222 = arith.constant dense<0.000000e+00> : vector<8x64xf32>
    %515 = tpu.matmul %514, %293, %cst_222 {dimension_numbers = #tpu.dot_dimension_numbers<[1], [0], [0], [1], [0, 0, 1, 1], [], []>} : vector<8x128xf32>, vector<128x64xf32>, vector<8x64xf32> -> vector<8x64xf32>
    %516 = arith.addf %515, %292 : vector<8x64xf32>
    %cst_223 = arith.constant 0.000000e+00 : f32
    %517 = vector.broadcast %cst_223 : f32 to vector<8x64xf32>
    %518 = arith.cmpf ogt, %516, %517 : vector<8x64xf32>
    %cst_224 = arith.constant 0.00999999977 : f32
    %519 = vector.broadcast %cst_224 : f32 to vector<8x64xf32>
    %520 = arith.mulf %519, %516 : vector<8x64xf32>
    %521 = arith.select %518, %516, %520 : vector<8x64xi1>, vector<8x64xf32>
    %c56_225 = arith.constant 56 : index
    %c0_226 = arith.constant 0 : index
    %522 = vector.load %arg18[%c56_225, %c0_226] : memref<64x64xf32, #tpu.memory_space<vmem>>, vector<8x64xf32>
    tpu.vector_store %arg18[%c56_225, %c0_226], %521 {strides = array<i32>} : memref<64x64xf32, #tpu.memory_space<vmem>>, vector<8x64xf32>,
    %c0_227 = arith.constant 0 : index
    %c0_228 = arith.constant 0 : index
    %523 = vector.load %arg18[%c0_227, %c0_228] : memref<64x64xf32, #tpu.memory_space<vmem>>, vector<64x64xf32>
    %cst_229 = arith.constant dense<0.000000e+00> : vector<64x2xf32>
    %524 = tpu.matmul %523, %294, %cst_229 {dimension_numbers = #tpu.dot_dimension_numbers<[1], [0], [0], [1], [0, 0, 1, 1], [], []>} : vector<64x64xf32>, vector<64x2xf32>, vector<64x2xf32> -> vector<64x2xf32>
    %525 = vector.broadcast %295 : vector<1x2xf32> to vector<64x2xf32>
    %526 = arith.addf %524, %525 : vector<64x2xf32>
    %527 = arith.mulf %523, %523 : vector<64x64xf32>
    %cst_230 = arith.constant dense<0.000000e+00> : vector<64xf32>
    %528 = vector.multi_reduction <add>, %527, %cst_230 [1] : vector<64x64xf32> to vector<64xf32>
    %529 = vector.shape_cast %528 : vector<64xf32> to vector<64x1xf32>
    %cst_231 = arith.constant 1.000000e-24 : f32
    %530 = vector.broadcast %cst_231 : f32 to vector<64x1xf32>
    %531 = arith.maximumf %529, %530 : vector<64x1xf32>
    %532 = math.rsqrt %531 : vector<64x1xf32>
    %533 = vector.broadcast %532 : vector<64x1xf32> to vector<64x64xf32>
    %534 = arith.mulf %523, %533 : vector<64x64xf32>
    %cst_232 = arith.constant 0.000000e+00 : f32
    %535 = vector.broadcast %cst_232 : f32 to vector<64x62xf32>
    %536 = tpu.concatenate %534, %526, %535 in 1 : vector<64x64xf32>, vector<64x2xf32>, vector<64x62xf32> -> vector<64x128xf32>
    %c0_233 = arith.constant 0 : index
    %c0_234 = arith.constant 0 : index
    %537 = vector.load %arg16[%c0_233, %c0_234] : memref<64x128xf32, #tpu.memory_space<vmem>>, vector<64x128xf32>
    tpu.vector_store %arg16[%c0_233, %c0_234], %536 {strides = array<i32>} : memref<64x128xf32, #tpu.memory_space<vmem>>, vector<64x128xf32>,
    return
  }
  func.func @transform_0(%arg0: i32, %arg1: memref<8xi32, #tpu.memory_space<smem>>) -> (i32, i32) {
    %c0_i32 = arith.constant 0 : i32
    %c0_i32_0 = arith.constant 0 : i32
    %c0_i32_1 = arith.constant 0 : i32
    return %c0_i32, %c0_i32_0 : i32, i32
  }
  func.func @transform_1(%arg0: i32, %arg1: memref<8xi32, #tpu.memory_space<smem>>) -> (i32, i32) {
    %c0_i32 = arith.constant 0 : i32
    %c0_i32_0 = arith.constant 0 : i32
    %c0_i32_1 = arith.constant 0 : i32
    return %c0_i32, %c0_i32_0 : i32, i32
  }
  func.func @transform_2(%arg0: i32, %arg1: memref<8xi32, #tpu.memory_space<smem>>) -> (i32, i32) {
    %c0_i32 = arith.constant 0 : i32
    %c0_i32_0 = arith.constant 0 : i32
    %c0_i32_1 = arith.constant 0 : i32
    return %c0_i32, %c0_i32_0 : i32, i32
  }
  func.func @transform_3(%arg0: i32, %arg1: memref<8xi32, #tpu.memory_space<smem>>) -> (i32, i32) {
    %c0_i32 = arith.constant 0 : i32
    %c0_i32_0 = arith.constant 0 : i32
    %c0_i32_1 = arith.constant 0 : i32
    return %c0_i32, %c0_i32_0 : i32, i32
  }
  func.func @transform_4(%arg0: i32, %arg1: memref<8xi32, #tpu.memory_space<smem>>) -> (i32, i32) {
    %c0_i32 = arith.constant 0 : i32
    %c0_i32_0 = arith.constant 0 : i32
    %c0_i32_1 = arith.constant 0 : i32
    return %c0_i32, %c0_i32_0 : i32, i32
  }
  func.func @transform_5(%arg0: i32, %arg1: memref<8xi32, #tpu.memory_space<smem>>) -> (i32, i32) {
    %c0_i32 = arith.constant 0 : i32
    %c0_i32_0 = arith.constant 0 : i32
    %c0_i32_1 = arith.constant 0 : i32
    return %c0_i32, %c0_i32_0 : i32, i32
  }
  func.func @transform_6(%arg0: i32, %arg1: memref<8xi32, #tpu.memory_space<smem>>) -> (i32, i32) {
    %c0_i32 = arith.constant 0 : i32
    %c0_i32_0 = arith.constant 0 : i32
    %c0_i32_1 = arith.constant 0 : i32
    return %c0_i32, %c0_i32_0 : i32, i32
  }
  func.func @transform_7(%arg0: i32, %arg1: memref<8xi32, #tpu.memory_space<smem>>) -> (i32, i32) {
    %c0_i32 = arith.constant 0 : i32
    %c0_i32_0 = arith.constant 0 : i32
    %c0_i32_1 = arith.constant 0 : i32
    return %c0_i32, %c0_i32_0 : i32, i32
  }
  func.func @transform_8(%arg0: i32, %arg1: memref<8xi32, #tpu.memory_space<smem>>) -> (i32, i32) {
    %c0_i32 = arith.constant 0 : i32
    %c0_i32_0 = arith.constant 0 : i32
    %c0_i32_1 = arith.constant 0 : i32
    return %c0_i32, %c0_i32_0 : i32, i32
  }
  func.func @transform_9(%arg0: i32, %arg1: memref<8xi32, #tpu.memory_space<smem>>) -> (i32, i32) {
    %c0_i32 = arith.constant 0 : i32
    %c0_i32_0 = arith.constant 0 : i32
    %c0_i32_1 = arith.constant 0 : i32
    return %c0_i32, %c0_i32_0 : i32, i32
  }
  func.func @transform_10(%arg0: i32, %arg1: memref<8xi32, #tpu.memory_space<smem>>) -> (i32, i32) {
    %c0_i32 = arith.constant 0 : i32
    %c0_i32_0 = arith.constant 0 : i32
    %c0_i32_1 = arith.constant 0 : i32
    return %c0_i32, %c0_i32_0 : i32, i32
  }
  func.func @transform_11(%arg0: i32, %arg1: memref<8xi32, #tpu.memory_space<smem>>) -> (i32, i32) {
    %c0_i32 = arith.constant 0 : i32
    %c0_i32_0 = arith.constant 0 : i32
    %c0_i32_1 = arith.constant 0 : i32
    return %c0_i32, %c0_i32_0 : i32, i32
  }
  func.func @transform_12(%arg0: i32, %arg1: memref<8xi32, #tpu.memory_space<smem>>) -> (i32, i32) {
    %c0_i32 = arith.constant 0 : i32
    %c0_i32_0 = arith.constant 0 : i32
    %c0_i32_1 = arith.constant 0 : i32
    return %c0_i32, %c0_i32_0 : i32, i32
  }
  func.func @transform_13(%arg0: i32, %arg1: memref<8xi32, #tpu.memory_space<smem>>) -> (i32, i32) {
    %c0_i32 = arith.constant 0 : i32
    %c0_i32_0 = arith.constant 0 : i32
    %c0_i32_1 = arith.constant 0 : i32
    return %c0_i32, %c0_i32_0 : i32, i32
  }
  func.func @transform_14(%arg0: i32, %arg1: memref<8xi32, #tpu.memory_space<smem>>) -> (i32, i32) {
    %c0_i32 = arith.constant 0 : i32
    %c0_i32_0 = arith.constant 0 : i32
    %c0_i32_1 = arith.constant 0 : i32
    return %c0_i32, %c0_i32_0 : i32, i32
  }
}

</mosaic_0001>

<bundles_post_ra>
// kernel: dsnet_convar_forward.1
= control target key start
LH: loop header
LB: loop body
LE: loop exit
PB: predicated region body
PF: predicated region fallthrough
CT: control target
= control target key end

     0   :  { %s4212_s21 = smov [#allocation6]   ;;  %s6265_s0 = inlined_call_operand.vmem [shape: s32[8], index: 0, kind: input, shape index: {}]   ;;  %s6266_s1 = inlined_call_operand.vmem [shape: bf16[64,768], index: 1, kind: input, shape index: {}]   ;;  %s6267_s2 = inlined_call_operand.vmem [shape: f32[64,1], index: 2, kind: input, shape index: {}]   ;;  %s6268_s3 = inlined_call_operand.vmem [shape: bf16[768,256], index: 3, kind: input, shape index: {}]   ;;  %s6269_s4 = inlined_call_operand.vmem [shape: f32[1,32], index: 4, kind: input, shape index: {}]   ;;  %s6270_s5 = inlined_call_operand.vmem [shape: f32[32,128], index: 5, kind: input, shape index: {}]   ;;  %s6271_s6 = inlined_call_operand.vmem [shape: f32[32,128], index: 6, kind: input, shape index: {}]   ;;  %s6272_s7 = inlined_call_operand.vmem [shape: f32[1,128], index: 7, kind: input, shape index: {}]   ;;  %s6273_s8 = inlined_call_operand.vmem [shape: f32[64,128], index: 8, kind: input, shape index: {}]   ;;  %s6274_s9 = inlined_call_operand.vmem [shape: f32[1,128], index: 9, kind: input, shape index: {}]   ;;  %s6275_s10 = inlined_call_operand.vmem [shape: f32[1,128], index: 10, kind: input, shape index: {}]   ;;  %s6276_s11 = inlined_call_operand.vmem [shape: f32[128,64], index: 11, kind: input, shape index: {}]   ;;  %s6277_s12 = inlined_call_operand.vmem [shape: f32[1,64], index: 12, kind: input, shape index: {}]   ;;  %s6278_s13 = inlined_call_operand.vmem [shape: f32[64,2], index: 13, kind: input, shape index: {}]   ;;  %s6279_s14 = inlined_call_operand.vmem [shape: f32[1,2], index: 14, kind: input, shape index: {}]   ;;  %s6280_s15 = inlined_call_operand.vmem [shape: f32[64,128], index: 15, kind: output, shape index: {}]  }
   0x1   :  { %s21_s20 = sshll.u32 %s6265_s0, 4  ;;  %s22_s20 = int_to_ptr.vmem [resolvable:$true] %s21_s20 }
   0x2   :  { %24 = dma.vmem_to_smem %s22_s20, 16, %s4212_s21, [#allocation5] }
   0x3   :  { %4210 = dma.done.wait [#allocation5], 16 }
   0x4   :  { %4211 = vsyncadd [#allocation5], 4294967280 }
   0x5   :  { %27 = sfence }
   0x6   :  { %v3447_v0 = vld [vmem:[%s6268_s3 + $0x70] sm:$0xf]  ;;  %v3886_v1 = vld [vmem:[%s6268_s3 + $0x74] sm:$0xf0]  ;;  %v3439_v2 = vld [vmem:[%s6268_s3 + $0x60] sm:$0xf] }
   0x7   :  { %v3448_v3 = vor.u32 %v3886_v1, %v3447_v0  ;;  %v3884_v4 = vld [vmem:[%s6268_s3 + $0x64] sm:$0xf0]  ;;  %v3431_v6 = vld [vmem:[%s6268_s3 + $0x50] sm:$0xf]  ;;  %v3882_v7 = vld [vmem:[%s6268_s3 + $0x54] sm:$0xf0] }
   0x8   :  { %v3440_v5 = vor.u32 %v3884_v4, %v3439_v2  ;;  %v3575_v8 = vld [vmem:[%s6268_s3 + $0x170] sm:$0xf]  ;;  %v3918_v9 = vld [vmem:[%s6268_s3 + $0x174] sm:$0xf0]  ;;  %v3567_v14 = vld [vmem:[%s6268_s3 + $0x160] sm:$0xf]  ;;  %v3432_v17 = vor.u32 %v3882_v7, %v3431_v6 }
   0x9   :  { %776 = vmatpush.bf16.msra.mxu0 %v3448_v3  ;;  %3967 = vmatpush.bf16.msra.mxu1 %v3448_v3  ;;  %v3639_v10 = vld [vmem:[%s6268_s3 + $0x1f0] sm:$0xf]  ;;  %v3576_v11 = vor.u32 %v3918_v9, %v3575_v8  ;;  %v3934_v12 = vld [vmem:[%s6268_s3 + $0x1f4] sm:$0xf0]  ;;  %v3916_v15 = vld [vmem:[%s6268_s3 + $0x164] sm:$0xf0] }
   0xa   :  { %v3640_v13 = vor.u32 %v3934_v12, %v3639_v10  ;;  %v3631_v16 = vld [vmem:[%s6268_s3 + $0x1e0] sm:$0xf]  ;;  %v3932_v18 = vld [vmem:[%s6268_s3 + $0x1e4] sm:$0xf0]  ;;  %v3568_v21 = vor.u32 %v3916_v15, %v3567_v14  ;;  %v3559_v23 = vld [vmem:[%s6268_s3 + $0x150] sm:$0xf] }
   0xb   :  { %v3423_v19 = vld [vmem:[%s6268_s3 + $0x40] sm:$0xf]  ;;  %v3880_v20 = vld [vmem:[%s6268_s3 + $0x44] sm:$0xf0]  ;;  %834 = vmatpush.bf16.msra.mxu2 %v3576_v11  ;;  %v3632_v22 = vor.u32 %v3932_v18, %v3631_v16  ;;  %v3914_v24 = vld [vmem:[%s6268_s3 + $0x154] sm:$0xf0] }
   0xc   :  { %863 = vmatpush.bf16.msra.mxu3 %v3640_v13  ;;  %v3623_v25 = vld [vmem:[%s6268_s3 + $0x1d0] sm:$0xf]  ;;  %v3930_v26 = vld [vmem:[%s6268_s3 + $0x1d4] sm:$0xf0]  ;;  %v3424_v27 = vor.u32 %v3880_v20, %v3423_v19  ;;  %v3560_v30 = vor.u32 %v3914_v24, %v3559_v23  ;;  %v3551_v32 = vld [vmem:[%s6268_s3 + $0x140] sm:$0xf] }
   0xd   :  { %777 = vmatpush.bf16.msra.mxu0 %v3440_v5  ;;  %3968 = vmatpush.bf16.msra.mxu1 %v3440_v5  ;;  %v3415_v28 = vld [vmem:[%s6268_s3 + $0x30] sm:$0xf]  ;;  %v3878_v29 = vld [vmem:[%s6268_s3 + $0x34] sm:$0xf0]  ;;  %v3624_v31 = vor.u32 %v3930_v26, %v3623_v25  ;;  %v3912_v33 = vld [vmem:[%s6268_s3 + $0x144] sm:$0xf0] }
   0xe   :  { %v3615_v34 = vld [vmem:[%s6268_s3 + $0x1c0] sm:$0xf]  ;;  %v3928_v35 = vld [vmem:[%s6268_s3 + $0x1c4] sm:$0xf0]  ;;  %v3416_v36 = vor.u32 %v3878_v29, %v3415_v28  ;;  %v3552_v39 = vor.u32 %v3912_v33, %v3551_v32  ;;  %v3543_v41 = vld [vmem:[%s6268_s3 + $0x130] sm:$0xf] }
   0xf   :  { %835 = vmatpush.bf16.msra.mxu2 %v3568_v21  ;;  %v3407_v37 = vld [vmem:[%s6268_s3 + $0x20] sm:$0xf]  ;;  %v3876_v38 = vld [vmem:[%s6268_s3 + $0x24] sm:$0xf0]  ;;  %v3616_v40 = vor.u32 %v3928_v35, %v3615_v34  ;;  %v3910_v42 = vld [vmem:[%s6268_s3 + $0x134] sm:$0xf0] }
  0x10   :  { %864 = vmatpush.bf16.msra.mxu3 %v3632_v22  ;;  %v3607_v43 = vld [vmem:[%s6268_s3 + $0x1b0] sm:$0xf]  ;;  %v3926_v44 = vld [vmem:[%s6268_s3 + $0x1b4] sm:$0xf0]  ;;  %v3408_v45 = vor.u32 %v3876_v38, %v3407_v37  ;;  %v3544_v48 = vor.u32 %v3910_v42, %v3543_v41  ;;  %v3535_v50 = vld [vmem:[%s6268_s3 + $0x120] sm:$0xf] }
  0x11   :  { %778 = vmatpush.bf16.msra.mxu0 %v3432_v17  ;;  %3969 = vmatpush.bf16.msra.mxu1 %v3432_v17  ;;  %v3399_v46 = vld [vmem:[%s6268_s3 + $0x10] sm:$0xf]  ;;  %v3874_v47 = vld [vmem:[%s6268_s3 + $0x14] sm:$0xf0]  ;;  %v3608_v49 = vor.u32 %v3926_v44, %v3607_v43  ;;  %v3908_v51 = vld [vmem:[%s6268_s3 + $0x124] sm:$0xf0] }
  0x12   :  { %v3599_v52 = vld [vmem:[%s6268_s3 + $0x1a0] sm:$0xf]  ;;  %v3924_v53 = vld [vmem:[%s6268_s3 + $0x1a4] sm:$0xf0]  ;;  %v3400_v54 = vor.u32 %v3874_v47, %v3399_v46  ;;  %v3511_v57 = vld [vmem:[%s6268_s3 + $0xf0] sm:$0xf]  ;;  %v3536_v59 = vor.u32 %v3908_v51, %v3535_v50 }
  0x13   :  { %836 = vmatpush.bf16.msra.mxu2 %v3560_v30  ;;  %v3391_v55 = vld [vmem:[%s6268_s3] sm:$0xf]  ;;  %v3872_v56 = vld [vmem:[%s6268_s3 + $0x4] sm:$0xf0]  ;;  %v3902_v58 = vld [vmem:[%s6268_s3 + $0xf4] sm:$0xf0]  ;;  %v3600_v60 = vor.u32 %v3924_v53, %v3599_v52 }
  0x14   :  { %865 = vmatpush.bf16.msra.mxu3 %v3624_v31  ;;  %v3295_v61 = vld [vmem:[%s6266_s1] sm:$0xf]  ;;  %v3703_v62 = vld [vmem:[%s6268_s3 + $0x270] sm:$0xf]  ;;  %v3950_v63 = vld [vmem:[%s6268_s3 + $0x274] sm:$0xf0]  ;;  %v3392_v4 = vor.u32 %v3872_v56, %v3391_v55  ;;  %v3512_v8 = vor.u32 %v3902_v58, %v3511_v57 }
  0x15   :  { %779 = vmatpush.bf16.msra.mxu0 %v3424_v27  ;;  %3970 = vmatpush.bf16.msra.mxu1 %v3424_v27  ;;  %v3527_v0 = vld [vmem:[%s6268_s3 + $0x110] sm:$0xf]  ;;  %v3906_v1 = vld [vmem:[%s6268_s3 + $0x114] sm:$0xf0]  ;;  %v3343_v6 = vld [vmem:[%s6266_s1 + $0x60] sm:$0xf]  ;;  %v3704_v9 = vor.u32 %v3950_v63, %v3703_v62 }
  0x16   :  { %v3591_v2 = vld [vmem:[%s6268_s3 + $0x190] sm:$0xf]  ;;  %v3922_v3 = vld [vmem:[%s6268_s3 + $0x194] sm:$0xf0]  ;;  %v3503_v10 = vld [vmem:[%s6268_s3 + $0xe0] sm:$0xf]  ;;  %v3528_v14 = vor.u32 %v3906_v1, %v3527_v0 }
  0x17   :  { %837 = vmatpush.bf16.msra.mxu2 %v3552_v39  ;;  %v3850_v5 = vld [vmem:[%s6266_s1 + $0x14] sm:$0xf0]  ;;  %v3900_v11 = vld [vmem:[%s6268_s3 + $0xe4] sm:$0xf0]  ;;  %v3695_v12 = vld [vmem:[%s6268_s3 + $0x260] sm:$0xf]  ;;  %v3592_v15 = vor.u32 %v3922_v3, %v3591_v2 }
  0x18   :  { %866 = vmatpush.bf16.msra.mxu3 %v3616_v40  ;;  %v3862_v7 = vld [vmem:[%s6266_s1 + $0x74] sm:$0xf0]  ;;  %v3948_v13 = vld [vmem:[%s6268_s3 + $0x264] sm:$0xf0]  ;;  %v3519_v16 = vld [vmem:[%s6268_s3 + $0x100] sm:$0xf]  ;;  %v4476_v18 = vor.u32 %v3850_v5, %v3295_v61  ;;  %v3504_v27 = vor.u32 %v3900_v11, %v3503_v10 }
  0x19   :  { %780 = vmatpush.bf16.msra.mxu0 %v3416_v36  ;;  %3971 = vmatpush.bf16.msra.mxu1 %v3416_v36  ;;  %v3904_v17 = vld [vmem:[%s6268_s3 + $0x104] sm:$0xf0]  ;;  %v4478_v19 = vor.u32 %v3862_v7, %v3343_v6  ;;  %v3583_v20 = vld [vmem:[%s6268_s3 + $0x180] sm:$0xf]  ;;  %v3885_v22 = vld [vmem:[%s6268_s3 + $0x74] sm:$0xf]  ;;  %v3696_v28 = vor.u32 %v3948_v13, %v3695_v12 }
  0x1a   :  { %v3920_v21 = vld [vmem:[%s6268_s3 + $0x184] sm:$0xf0]  ;;  %v3495_v23 = vld [vmem:[%s6268_s3 + $0xd0] sm:$0xf]  ;;  %v3449_v24 = vld [vmem:[%s6268_s3 + $0x78] sm:$0xf0]  ;;  %v3520_v32 = vor.u32 %v3904_v17, %v3519_v16 }
  0x1b   :  { %838 = vmatpush.bf16.msra.mxu2 %v3544_v48  ;;  %v3901_v25 = vld [vmem:[%s6268_s3 + $0xf4] sm:$0xf]  ;;  %v3513_v26 = vld [vmem:[%s6268_s3 + $0xf8] sm:$0xf0]  ;;  %v3898_v29 = vld [vmem:[%s6268_s3 + $0xd4] sm:$0xf0]  ;;  %v3584_v33 = vor.u32 %v3920_v21, %v3583_v20  ;;  %v3452_v38 = vor.u32 %v3885_v22, %v3449_v24 }
  0x1c   :  { %867 = vmatpush.bf16.msra.mxu3 %v3608_v49  ;;  %v3687_v30 = vld [vmem:[%s6268_s3 + $0x250] sm:$0xf]  ;;  %v3946_v31 = vld [vmem:[%s6268_s3 + $0x254] sm:$0xf0]  ;;  %v3303_v34 = vld [vmem:[%s6266_s1 + $0x8] sm:$0xf]  ;;  %v3516_v39 = vor.u32 %v3901_v25, %v3513_v26  ;;  %v3496_v42 = vor.u32 %v3898_v29, %v3495_v23 }
  0x1d   :  { %781 = vmatpush.bf16.msra.mxu0 %v3408_v45  ;;  %3972 = vmatpush.bf16.msra.mxu1 %v3408_v45  ;;  %v3851_v35 = vld [vmem:[%s6266_s1 + $0x1c] sm:$0xf0]  ;;  %v3848_v36 = vld [vmem:[%s6266_s1 + $0xc] sm:$0xf]  ;;  %v3305_v37 = vld [vmem:[%s6266_s1 + $0x20] sm:$0xf0]  ;;  %v3688_v43 = vor.u32 %v3946_v31, %v3687_v30 }
  0x1e   :  { %v3487_v40 = vld [vmem:[%s6268_s3 + $0xc0] sm:$0xf]  ;;  %v3896_v41 = vld [vmem:[%s6268_s3 + $0xc4] sm:$0xf0]  ;;  %v3883_v44 = vld [vmem:[%s6268_s3 + $0x64] sm:$0xf]  ;;  %v4545_v49 = vor.u32 %v3851_v35, %v3303_v34  ;;  %v4547_v50 = vor.u32 %v3848_v36, %v3305_v37 }
  0x1f   :  { %839 = vmatpush.bf16.msra.mxu2 %v3536_v59  ;;  %v3441_v45 = vld [vmem:[%s6268_s3 + $0x68] sm:$0xf0]  ;;  %v3899_v46 = vld [vmem:[%s6268_s3 + $0xe4] sm:$0xf]  ;;  %v3679_v47 = vld [vmem:[%s6268_s3 + $0x240] sm:$0xf]  ;;  %v3488_v59 = vor.u32 %v3896_v41, %v3487_v40 }
  0x20   :  { %868 = vmatpush.bf16.msra.mxu3 %v3600_v60  ;;  %v3944_v48 = vld [vmem:[%s6268_s3 + $0x244] sm:$0xf0]  ;;  %v3505_v51 = vld [vmem:[%s6268_s3 + $0xe8] sm:$0xf0]  ;;  %v3444_v52 = vor.u32 %v3883_v44, %v3441_v45  ;;  %v3479_v55 = vld [vmem:[%s6268_s3 + $0xb0] sm:$0xf] }
  0x21   :  { %782 = vmatpush.bf16.msra.mxu0 %v3400_v54  ;;  %3973 = vmatpush.bf16.msra.mxu1 %v3400_v54  ;;  %v3508_v53 = vor.u32 %v3899_v46, %v3505_v51  ;;  %v3881_v54 = vld [vmem:[%s6268_s3 + $0x54] sm:$0xf]  ;;  %v3433_v56 = vld [vmem:[%s6268_s3 + $0x58] sm:$0xf0]  ;;  %v3680_v60 = vor.u32 %v3944_v48, %v3679_v47  ;;  %v3894_v61 = vld [vmem:[%s6268_s3 + $0xb4] sm:$0xf0] }
  0x22   :  { %v3897_v57 = vld [vmem:[%s6268_s3 + $0xd4] sm:$0xf]  ;;  %v3497_v58 = vld [vmem:[%s6268_s3 + $0xd8] sm:$0xf0]  ;;  %v3671_v62 = vld [vmem:[%s6268_s3 + $0x230] sm:$0xf]  ;;  %v3436_v1 = vor.u32 %v3881_v54, %v3433_v56  ;;  %v3480_v6 = vor.u32 %v3894_v61, %v3479_v55 }
  0x23   :  { %840 = vmatpush.bf16.msra.mxu2 %v3528_v14  ;;  %v3942_v63 = vld [vmem:[%s6268_s3 + $0x234] sm:$0xf0]  ;;  %v3319_v0 = vld [vmem:[%s6266_s1 + $0x30] sm:$0xf]  ;;  %v3500_v2 = vor.u32 %v3897_v57, %v3497_v58  ;;  %v3856_v3 = vld [vmem:[%s6266_s1 + $0x44] sm:$0xf0] }
  0x24   :  { %869 = vmatpush.bf16.msra.mxu3 %v3592_v15  ;;  %v3868_v5 = vld [vmem:[%s6266_s1 + $0xa4] sm:$0xf0]  ;;  %v3672_v7 = vor.u32 %v3942_v63, %v3671_v62  ;;  %v3663_v10 = vld [vmem:[%s6268_s3 + $0x220] sm:$0xf]  ;;  %v4602_v12 = vor.u32 %v3856_v3, %v3319_v0  ;;  %v3463_v16 = vld [vmem:[%s6268_s3 + $0x90] sm:$0xf] }
  0x25   :  { %783 = vmatpush.bf16.msra.mxu0 %v3392_v4  ;;  %3974 = vmatpush.bf16.msra.mxu1 %v3392_v4  ;;  %v3367_v4 = vld [vmem:[%s6266_s1 + $0x90] sm:$0xf]  ;;  %v3940_v11 = vld [vmem:[%s6268_s3 + $0x224] sm:$0xf0]  ;;  %v3890_v17 = vld [vmem:[%s6268_s3 + $0x94] sm:$0xf0] }
  0x26   :  { %v4604_v13 = vor.u32 %v3868_v5, %v3367_v4  ;;  %v3664_v15 = vor.u32 %v3940_v11, %v3663_v10  ;;  %v3655_v20 = vld [vmem:[%s6268_s3 + $0x210] sm:$0xf]  ;;  %v3938_v21 = vld [vmem:[%s6268_s3 + $0x214] sm:$0xf0]  ;;  %v3854_v24 = vld [vmem:[%s6266_s1 + $0x3c] sm:$0xf]  ;;  %v3464_v29 = vor.u32 %v3890_v17, %v3463_v16 }
  0x27   :  { %841 = vmatpush.bf16.msra.mxu2 %v3520_v32  ;;  %v3327_v22 = vld [vmem:[%s6266_s1 + $0x38] sm:$0xf]  ;;  %v3857_v23 = vld [vmem:[%s6266_s1 + $0x4c] sm:$0xf0]  ;;  %v3329_v25 = vld [vmem:[%s6266_s1 + $0x50] sm:$0xf0]  ;;  %v3656_v30 = vor.u32 %v3938_v21, %v3655_v20 }
  0x28   :  { %784 = vmatmul.bf16.vlgmr.msra.gmra.mxu0 %v4476_v18  ;;  %794 = vmatmul.bf16.vlgmr.msra.gmra.mxu1 %v4478_v19  ;;  %v3455_v26 = vld [vmem:[%s6268_s3 + $0x80] sm:$0xf]  ;;  %v3879_v31 = vld [vmem:[%s6268_s3 + $0x44] sm:$0xf]  ;;  %v3425_v32 = vld [vmem:[%s6268_s3 + $0x48] sm:$0xf0]  ;;  %v4656_v36 = vor.u32 %v3857_v23, %v3327_v22  ;;  %v4658_v37 = vor.u32 %v3854_v24, %v3329_v25 }
  0x29   :  { %805 = vmatpush.bf16.msrb.mxu1 %v3512_v8  ;;  %892 = vmatpush.bf16.msrb.mxu0 %v3704_v9  ;;  %v3471_v8 = vld [vmem:[%s6268_s3 + $0xa0] sm:$0xf]  ;;  %v3892_v9 = vld [vmem:[%s6268_s3 + $0xa4] sm:$0xf0]  ;;  %v3767_v35 = vld [vmem:[%s6268_s3 + $0x2f0] sm:$0xf] }
  0x2a   :  { %870 = vmatpush.bf16.msra.mxu3 %v3584_v33  ;;  %842 = vmatmul.bf16.vlgmr.msra.gmra.mxu2 %v4545_v49  ;;  %v3472_v14 = vor.u32 %v3892_v9, %v3471_v8  ;;  %v3895_v33 = vld [vmem:[%s6268_s3 + $0xc4] sm:$0xf]  ;;  %v3936_v34 = vld [vmem:[%s6268_s3 + $0x204] sm:$0xf0]  ;;  %v3966_v40 = vld [vmem:[%s6268_s3 + $0x2f4] sm:$0xf0] }
  0x2b   :  { %950 = vmatpush.bf16.msrb.mxu2 %v3452_v38  ;;  %v3428_v38 = vor.u32 %v3879_v31, %v3425_v32  ;;  %v3893_v45 = vld [vmem:[%s6268_s3 + $0xb4] sm:$0xf]  ;;  %v3481_v46 = vld [vmem:[%s6268_s3 + $0xb8] sm:$0xf0]  ;;  %v3768_v51 = vor.u32 %v3966_v40, %v3767_v35  ;;  %v3964_v54 = vld [vmem:[%s6268_s3 + $0x2e4] sm:$0xf0] }
  0x2c   :  { %v3484_v55 = vor.u32 %v3893_v45, %v3481_v46  ;;  %v3297_v56 = vld [vmem:[%s6266_s1 + $0x18] sm:$0xf0]  ;;  %v3311_v57 = vld [vmem:[%s6266_s1 + $0x10] sm:$0xf]  ;;  %v3852_v58 = vld [vmem:[%s6266_s1 + $0x24] sm:$0xf0] }
  0x2d   :  { %806 = vmatpush.bf16.msrb.mxu1 %v3504_v27  ;;  %893 = vmatpush.bf16.msrb.mxu0 %v3696_v28  ;;  %v3888_v27 = vld [vmem:[%s6268_s3 + $0x84] sm:$0xf0]  ;;  %v3647_v28 = vld [vmem:[%s6268_s3 + $0x200] sm:$0xf]  ;;  %v4700_v61 = vor.u32 %v3852_v58, %v3311_v57  ;;  %v3751_v62 = vld [vmem:[%s6268_s3 + $0x2d0] sm:$0xf] }
  0x2e   :  { %979 = vmatpush.bf16.msrb.mxu3 %v3516_v39  ;;  %v3489_v39 = vld [vmem:[%s6268_s3 + $0xc8] sm:$0xf0]  ;;  %v3456_v47 = vor.u32 %v3888_v27, %v3455_v26  ;;  %v3648_v48 = vor.u32 %v3936_v34, %v3647_v28  ;;  %v3962_v63 = vld [vmem:[%s6268_s3 + $0x2d4] sm:$0xf0]  ;;  %v3917_v0 = vld [vmem:[%s6268_s3 + $0x174] sm:$0xf] }
  0x2f   :  { %871 = vmatmul.bf16.vlgmr.msra.gmra.mxu3 %v4547_v50  ;;  %951 = vmatpush.bf16.msrb.mxu2 %v3444_v52  ;;  %v3492_v41 = vor.u32 %v3895_v33, %v3489_v39  ;;  %v3847_v52 = vld [vmem:[%s6266_s1 + $0x4] sm:$0xf]  ;;  %v3351_v3 = vld [vmem:[%s6266_s1 + $0x68] sm:$0xf]  ;;  %v3863_v5 = vld [vmem:[%s6266_s1 + $0x7c] sm:$0xf0] }
  0x30   :  { %v3743_v8 = vld [vmem:[%s6268_s3 + $0x2c0] sm:$0xf]  ;;  %v3960_v9 = vld [vmem:[%s6268_s3 + $0x2c4] sm:$0xf0]  ;;  %v3875_v10 = vld [vmem:[%s6268_s3 + $0x24] sm:$0xf] }
  0x31   :  { %807 = vmatpush.bf16.msrb.mxu1 %v3496_v42  ;;  %894 = vmatpush.bf16.msrb.mxu0 %v3688_v43  ;;  %v3877_v42 = vld [vmem:[%s6268_s3 + $0x34] sm:$0xf]  ;;  %v3417_v43 = vld [vmem:[%s6268_s3 + $0x38] sm:$0xf0]  ;;  %v3409_v11 = vld [vmem:[%s6268_s3 + $0x28] sm:$0xf0]  ;;  %v3744_v23 = vor.u32 %v3960_v9, %v3743_v8 }
  0x32   :  { %980 = vmatpush.bf16.msrb.mxu3 %v3508_v53  ;;  %v3420_v44 = vor.u32 %v3877_v42, %v3417_v43  ;;  %v3759_v53 = vld [vmem:[%s6268_s3 + $0x2e0] sm:$0xf]  ;;  %v3412_v17 = vor.u32 %v3875_v10, %v3409_v11  ;;  %v3569_v20 = vld [vmem:[%s6268_s3 + $0x168] sm:$0xf0]  ;;  %v3891_v21 = vld [vmem:[%s6268_s3 + $0xa4] sm:$0xf] }
  0x33   :  { %952 = vmatpush.bf16.msrb.mxu2 %v3436_v1  ;;  %v3577_v1 = vld [vmem:[%s6268_s3 + $0x178] sm:$0xf0]  ;;  %v3473_v22 = vld [vmem:[%s6268_s3 + $0xa8] sm:$0xf0]  ;;  %v3735_v24 = vld [vmem:[%s6268_s3 + $0x2b0] sm:$0xf] }
  0x34   :  { %v3580_v4 = vor.u32 %v3917_v0, %v3577_v1  ;;  %v3958_v25 = vld [vmem:[%s6268_s3 + $0x2b4] sm:$0xf0]  ;;  %v3476_v27 = vor.u32 %v3891_v21, %v3473_v22  ;;  %v3913_v28 = vld [vmem:[%s6268_s3 + $0x154] sm:$0xf]  ;;  %v3401_v31 = vld [vmem:[%s6268_s3 + $0x18] sm:$0xf0] }
  0x35   :  { %808 = vmatpush.bf16.msrb.mxu1 %v3488_v59  ;;  %895 = vmatpush.bf16.msrb.mxu0 %v3680_v60  ;;  %v3760_v59 = vor.u32 %v3964_v54, %v3759_v53  ;;  %v4698_v60 = vor.u32 %v3847_v52, %v3297_v56  ;;  %v3889_v34 = vld [vmem:[%s6268_s3 + $0x94] sm:$0xf]  ;;  %v3465_v35 = vld [vmem:[%s6268_s3 + $0x98] sm:$0xf0]  ;;  %v3911_v39 = vld [vmem:[%s6268_s3 + $0x144] sm:$0xf]  ;;  %v3736_v42 = vor.u32 %v3958_v25, %v3735_v24 }
  0x36   :  { %981 = vmatpush.bf16.msrb.mxu3 %v3500_v2  ;;  %v3752_v2 = vor.u32 %v3962_v63, %v3751_v62  ;;  %v3553_v40 = vld [vmem:[%s6268_s3 + $0x148] sm:$0xf0]  ;;  %v3858_v45 = vld [vmem:[%s6266_s1 + $0x54] sm:$0xf0]  ;;  %v3727_v46 = vld [vmem:[%s6268_s3 + $0x2a0] sm:$0xf] }
  0x37   :  { %953 = vmatpush.bf16.msrb.mxu2 %v3428_v38  ;;  %v3468_v38 = vor.u32 %v3889_v34, %v3465_v35  ;;  %v3321_v43 = vld [vmem:[%s6266_s1 + $0x48] sm:$0xf0]  ;;  %v3375_v54 = vld [vmem:[%s6266_s1 + $0x98] sm:$0xf]  ;;  %v3866_v56 = vld [vmem:[%s6266_s1 + $0x9c] sm:$0xf] }
  0x38   :  { %789 = vmatmul.bf16.gmra.mxu0 %v4602_v12  ;;  %799 = vmatmul.bf16.gmra.mxu1 %v4604_v13  ;;  %v3377_v57 = vld [vmem:[%s6266_s1 + $0xb0] sm:$0xf0]  ;;  %v3871_v58 = vld [vmem:[%s6268_s3 + $0x4] sm:$0xf]  ;;  %v3457_v0 = vld [vmem:[%s6268_s3 + $0x88] sm:$0xf0] }
  0x39   :  { %809 = vmatpush.bf16.msrb.mxu1 %v3480_v6  ;;  %896 = vmatpush.bf16.msrb.mxu0 %v3672_v7  ;;  %v3860_v6 = vld [vmem:[%s6266_s1 + $0x6c] sm:$0xf]  ;;  %v3353_v7 = vld [vmem:[%s6266_s1 + $0x80] sm:$0xf0]  ;;  %v3909_v1 = vld [vmem:[%s6268_s3 + $0x134] sm:$0xf]  ;;  %v4865_v21 = vor.u32 %v3866_v56, %v3377_v57 }
  0x3a   :  { %847 = vmatmul.bf16.gmra.mxu2 %v4656_v36  ;;  %982 = vmatpush.bf16.msrb.mxu3 %v3492_v41  ;;  %v4745_v16 = vor.u32 %v3860_v6, %v3353_v7  ;;  %v3853_v41 = vld [vmem:[%s6266_s1 + $0x34] sm:$0xf]  ;;  %v3887_v62 = vld [vmem:[%s6268_s3 + $0x84] sm:$0xf]  ;;  %v3537_v9 = vld [vmem:[%s6268_s3 + $0x128] sm:$0xf0] }
  0x3b   :  { %954 = vmatpush.bf16.msrb.mxu2 %v3420_v44  ;;  %v3335_v44 = vld [vmem:[%s6266_s1 + $0x40] sm:$0xf]  ;;  %v3907_v7 = vld [vmem:[%s6268_s3 + $0x124] sm:$0xf]  ;;  %v3905_v22 = vld [vmem:[%s6268_s3 + $0x114] sm:$0xf] }
  0x3c   :  { %v4808_v52 = vor.u32 %v3858_v45, %v3335_v44  ;;  %v3540_v10 = vor.u32 %v3907_v7, %v3537_v9  ;;  %v3711_v11 = vld [vmem:[%s6268_s3 + $0x280] sm:$0xf]  ;;  %v3705_v24 = vld [vmem:[%s6268_s3 + $0x278] sm:$0xf0]  ;;  %v3359_v35 = vld [vmem:[%s6266_s1 + $0x70] sm:$0xf] }
  0x3d   :  { %810 = vmatpush.bf16.msrb.mxu1 %v3472_v14  ;;  %897 = vmatpush.bf16.msrb.mxu0 %v3664_v15  ;;  %v3915_v14 = vld [vmem:[%s6268_s3 + $0x164] sm:$0xf]  ;;  %v4743_v15 = vor.u32 %v3863_v5, %v3351_v3  ;;  %v3719_v3 = vld [vmem:[%s6268_s3 + $0x290] sm:$0xf]  ;;  %v3460_v5 = vor.u32 %v3887_v62, %v3457_v0  ;;  %v3345_v34 = vld [vmem:[%s6266_s1 + $0x78] sm:$0xf0] }
  0x3e   :  { %983 = vmatpush.bf16.msrb.mxu3 %v3484_v55  ;;  %v3572_v26 = vor.u32 %v3915_v14, %v3569_v20  ;;  %v3869_v55 = vld [vmem:[%s6266_s1 + $0xac] sm:$0xf0]  ;;  %v3952_v14 = vld [vmem:[%s6268_s3 + $0x284] sm:$0xf0]  ;;  %v3947_v44 = vld [vmem:[%s6268_s3 + $0x264] sm:$0xf] }
  0x3f   :  { %876 = vmatmul.bf16.gmra.mxu3 %v4658_v37  ;;  %955 = vmatpush.bf16.msrb.mxu2 %v3412_v17  ;;  %v3949_v17 = vld [vmem:[%s6268_s3 + $0x274] sm:$0xf]  ;;  %v4863_v20 = vor.u32 %v3869_v55, %v3375_v54  ;;  %v3931_v55 = vld [vmem:[%s6268_s3 + $0x1e4] sm:$0xf]  ;;  %v3633_v56 = vld [vmem:[%s6268_s3 + $0x1e8] sm:$0xf0] }
  0x40   :  { %v3708_v25 = vor.u32 %v3949_v17, %v3705_v24  ;;  %v3945_v57 = vld [vmem:[%s6268_s3 + $0x254] sm:$0xf]  ;;  %v3753_v62 = vld [vmem:[%s6268_s3 + $0x2d8] sm:$0xf0]  ;;  %v3617_v24 = vld [vmem:[%s6268_s3 + $0x1c8] sm:$0xf0] }
  0x41   :  { %811 = vmatpush.bf16.msrb.mxu1 %v3464_v29  ;;  %898 = vmatpush.bf16.msrb.mxu0 %v3656_v30  ;;  %v3561_v29 = vld [vmem:[%s6268_s3 + $0x158] sm:$0xf0]  ;;  %v3873_v30 = vld [vmem:[%s6268_s3 + $0x14] sm:$0xf]  ;;  %vm1211_vm1 = vcmask 261120   ;;  %s4215_s20 = smov 64  }
  0x42   :  { %984 = vmatpush.bf16.msrb.mxu3 %v3476_v27  ;;  %v3564_v32 = vor.u32 %v3913_v28, %v3561_v29  ;;  %v3404_v33 = vor.u32 %v3873_v30, %v3401_v31  ;;  %v3769_v27 = vld [vmem:[%s6268_s3 + $0x2f8] sm:$0xf0]  ;;  %v3712_v28 = vor.u32 %v3952_v14, %v3711_v11  ;;  %v3903_v31 = vld [vmem:[%s6268_s3 + $0x104] sm:$0xf]  ;;  %v3745_v14 = vld [vmem:[%s6268_s3 + $0x2c8] sm:$0xf0] }
  0x43   :  { %v3625_v7 = vld [vmem:[%s6268_s3 + $0x1d8] sm:$0xf0]  ;;  %v3959_v11 = vld [vmem:[%s6268_s3 + $0x2c4] sm:$0xf]  ;;  %s2483_s18 = sld [smem:[#allocation6]] }
  0x44   :  { %956 = vmatpush.bf16.msrb.mxu2 %v3404_v33  ;;  %v3859_v33 = vld [vmem:[%s6266_s1 + $0x64] sm:$0xf]  ;;  %s3823_s19 = sld [smem:[#allocation6 + $0x1]] }
  0x45   :  { %812 = vmatpush.bf16.msrb.mxu1 %v3456_v47  ;;  %899 = vmatpush.bf16.msrb.mxu0 %v3648_v48  ;;  %v3956_v47 = vld [vmem:[%s6268_s3 + $0x2a4] sm:$0xf0]  ;;  %v3556_v48 = vor.u32 %v3911_v39, %v3553_v40  ;;  %v4902_v40 = vor.u32 %v3859_v33, %v3345_v34  ;;  %v3925_v33 = vld [vmem:[%s6268_s3 + $0x1b4] sm:$0xf]  ;;  %v3609_v34 = vld [vmem:[%s6268_s3 + $0x1b8] sm:$0xf0] }
  0x46   :  { %985 = vmatpush.bf16.msrb.mxu3 %v3468_v38  ;;  %v3728_v53 = vor.u32 %v3956_v47, %v3727_v46  ;;  %v3864_v38 = vld [vmem:[%s6266_s1 + $0x84] sm:$0xf0]  ;;  %v3697_v46 = vld [vmem:[%s6268_s3 + $0x268] sm:$0xf0]  ;;  %v3963_v47 = vld [vmem:[%s6268_s3 + $0x2e4] sm:$0xf] }
  0x48   :  { %813 = vmatmul.bf16.vlgmr.msrb.gmra.mxu1 %v4698_v60  ;;  %900 = vmatmul.bf16.vlgmr.msrb.gmra.mxu0 %v4700_v61 }
  0x49   :  { %921 = vmatpush.bf16.msra.mxu1 %v3768_v51  ;;  %1008 = vmatpush.bf16.msra.mxu0 %v3580_v4  ;;  %v4806_v51 = vor.u32 %v3853_v41, %v3321_v43  ;;  %v3954_v4 = vld [vmem:[%s6268_s3 + $0x294] sm:$0xf0]  ;;  %v4904_v41 = vor.u32 %v3864_v38, %v3359_v35  ;;  %v3641_v43 = vld [vmem:[%s6268_s3 + $0x1f8] sm:$0xf0]  ;;  %v3939_v35 = vld [vmem:[%s6268_s3 + $0x224] sm:$0xf]  ;;  %v3612_v38 = vor.u32 %v3925_v33, %v3609_v34 }
  0x4a   :  { %852 = vmatmul.bf16.gmra.mxu2 %v4743_v15  ;;  %v3720_v8 = vor.u32 %v3954_v4, %v3719_v3  ;;  %986 = vmatpush.bf16.msrb.mxu3 %v3460_v5  ;;  %v3369_v3 = vld [vmem:[%s6266_s1 + $0xa8] sm:$0xf0]  ;;  %v3383_v4 = vld [vmem:[%s6266_s1 + $0xa0] sm:$0xf]  ;;  %p2484_p0 = scmp.eq.s32.totalorder %s2483_s18, 1  ;;  %p2568_p1 = scmp.eq.s32.totalorder %s3823_s19, 1 }
  0x4b   :  { %s3832_s18 = sld [smem:[#allocation6 + $0x4]] }
  0x4d   :  { %922 = vmatpush.bf16.msra.mxu1 %v3760_v59  ;;  %1009 = vmatpush.bf16.msra.mxu0 %v3572_v26  ;;  %v3393_v59 = vld [vmem:[%s6268_s3 + $0x8] sm:$0xf0]  ;;  %v3965_v26 = vld [vmem:[%s6268_s3 + $0x2f4] sm:$0xf] }
  0x4e   :  { %v3396_v63 = vor.u32 %v3871_v58, %v3393_v59  ;;  %v3772_v29 = vor.u32 %v3965_v26, %v3769_v27  ;;  %v3689_v58 = vld [vmem:[%s6268_s3 + $0x258] sm:$0xf0]  ;;  %v3961_v59 = vld [vmem:[%s6268_s3 + $0x2d4] sm:$0xf] }
  0x4f   :  { %881 = vmatmul.bf16.gmra.mxu3 %v4745_v16  ;;  %v3692_v0 = vor.u32 %v3945_v57, %v3689_v58  ;;  %v3673_v26 = vld [vmem:[%s6268_s3 + $0x238] sm:$0xf0] }
  0x50   :  { %957 = vmatpush.bf16.msrb.mxu2 %v3396_v63  ;;  %1095 = vmatpush.bf16.msra.mxu3 %v3772_v29  ;;  %v3636_v63 = vor.u32 %v3931_v55, %v3633_v56  ;;  %v3849_v29 = vld [vmem:[%s6266_s1 + $0x14] sm:$0xf]  ;;  %v3855_v55 = vld [vmem:[%s6266_s1 + $0x44] sm:$0xf]  ;;  %v3337_v56 = vld [vmem:[%s6266_s1 + $0x58] sm:$0xf0] }
  0x51   :  { %923 = vmatpush.bf16.msra.mxu1 %v3752_v2  ;;  %1010 = vmatpush.bf16.msra.mxu0 %v3564_v32  ;;  %v3545_v2 = vld [vmem:[%s6268_s3 + $0x138] sm:$0xf0]  ;;  %v3521_v32 = vld [vmem:[%s6268_s3 + $0x108] sm:$0xf0]  ;;  %v3340_v57 = vor.u32 %v3855_v55, %v3337_v56  ;;  %p2820_p4 = scmp.eq.s32.totalorder %s3832_s18, 1 }
  0x52   :  { %v3548_v6 = vor.u32 %v3909_v1, %v3545_v2  ;;  %v3524_v39 = vor.u32 %v3903_v31, %v3521_v32  ;;  %v3756_v1 = vor.u32 %v3961_v59, %v3753_v62  ;;  %v3865_v2 = vld [vmem:[%s6266_s1 + $0x94] sm:$0xf]  ;;  %v3935_v59 = vld [vmem:[%s6268_s3 + $0x204] sm:$0xf]  ;;  %v3649_v62 = vld [vmem:[%s6268_s3 + $0x208] sm:$0xf0] }
  0x53   :  { %v3957_v32 = vld [vmem:[%s6268_s3 + $0x2b4] sm:$0xf] }
  0x54   :  { %1066 = vmatpush.bf16.msra.mxu2 %v3708_v25  ;;  %v3941_v25 = vld [vmem:[%s6268_s3 + $0x234] sm:$0xf] }
  0x55   :  { %924 = vmatpush.bf16.msra.mxu1 %v3744_v23  ;;  %1011 = vmatpush.bf16.msra.mxu0 %v3556_v48  ;;  %v3529_v23 = vld [vmem:[%s6268_s3 + $0x118] sm:$0xf0]  ;;  %v3761_v48 = vld [vmem:[%s6268_s3 + $0x2e8] sm:$0xf0] }
  0x56   :  { %v3532_v30 = vor.u32 %v3905_v22, %v3529_v23  ;;  %v3764_v54 = vor.u32 %v3963_v47, %v3761_v48  ;;  %v3748_v22 = vor.u32 %v3959_v11, %v3745_v14  ;;  %v3927_v23 = vld [vmem:[%s6268_s3 + $0x1c4] sm:$0xf]  ;;  %v3937_v47 = vld [vmem:[%s6268_s3 + $0x214] sm:$0xf]  ;;  %v3657_v48 = vld [vmem:[%s6268_s3 + $0x218] sm:$0xf0] }
  0x57   :  { %v3620_v27 = vor.u32 %v3927_v23, %v3617_v24 }
  0x58   :  { %818 = vmatmul.bf16.gmra.mxu1 %v4806_v51  ;;  %905 = vmatmul.bf16.gmra.mxu0 %v4808_v52 }
  0x59   :  { %925 = vmatpush.bf16.msra.mxu1 %v3736_v42  ;;  %1012 = vmatpush.bf16.msra.mxu0 %v3548_v6  ;;  %v3933_v42 = vld [vmem:[%s6268_s3 + $0x1f4] sm:$0xf] }
  0x5a   :  { %857 = vmatmul.bf16.gmra.mxu2 %v4863_v20  ;;  %v3644_v45 = vor.u32 %v3933_v42, %v3641_v43  ;;  %1096 = vmatpush.bf16.msra.mxu3 %v3764_v54  ;;  %v3929_v6 = vld [vmem:[%s6268_s3 + $0x1d4] sm:$0xf]  ;;  %v3729_v43 = vld [vmem:[%s6268_s3 + $0x2a8] sm:$0xf0]  ;;  %v3660_v54 = vor.u32 %v3937_v47, %v3657_v48 }
  0x5b   :  { %v3628_v9 = vor.u32 %v3929_v6, %v3625_v7  ;;  %v3585_v6 = vld [vmem:[%s6268_s3 + $0x188] sm:$0xf0] }
  0x5d   :  { %926 = vmatpush.bf16.msra.mxu1 %v3728_v53  ;;  %1013 = vmatpush.bf16.msra.mxu0 %v3540_v10  ;;  %v3700_v53 = vor.u32 %v3947_v44, %v3697_v46  ;;  %v3681_v10 = vld [vmem:[%s6268_s3 + $0x248] sm:$0xf0]  ;;  %v3923_v44 = vld [vmem:[%s6268_s3 + $0x1a4] sm:$0xf] }
  0x5e   :  { %1097 = vmatpush.bf16.msra.mxu3 %v3756_v1  ;;  %v3601_v46 = vld [vmem:[%s6268_s3 + $0x1a8] sm:$0xf0]  ;;  %v3593_v1 = vld [vmem:[%s6268_s3 + $0x198] sm:$0xf0] }
  0x5f   :  { %886 = vmatmul.bf16.gmra.mxu3 %v4865_v21  ;;  %1067 = vmatpush.bf16.msra.mxu2 %v3700_v53  ;;  %v3604_v53 = vor.u32 %v3923_v44, %v3601_v46 }
  0x61   :  { %927 = vmatpush.bf16.msra.mxu1 %v3720_v8  ;;  %1014 = vmatpush.bf16.msra.mxu0 %v3532_v30  ;;  %v3943_v8 = vld [vmem:[%s6268_s3 + $0x244] sm:$0xf]  ;;  %v3313_v30 = vld [vmem:[%s6266_s1 + $0x28] sm:$0xf0] }
  0x62   :  { %v3684_v17 = vor.u32 %v3943_v8, %v3681_v10  ;;  %1098 = vmatpush.bf16.msra.mxu3 %v3748_v22  ;;  %v5002_v31 = vor.u32 %v3849_v29, %v3313_v30  ;;  %v3861_v8 = vld [vmem:[%s6266_s1 + $0x74] sm:$0xf] }
  0x63   :  { %1068 = vmatpush.bf16.msra.mxu2 %v3692_v0  ;;  %v3921_v0 = vld [vmem:[%s6268_s3 + $0x194] sm:$0xf] }
  0x65   :  { %928 = vmatpush.bf16.msra.mxu1 %v3712_v28  ;;  %1015 = vmatpush.bf16.msra.mxu0 %v3524_v39  ;;  %v3676_v28 = vor.u32 %v3941_v25, %v3673_v26  ;;  %v3665_v39 = vld [vmem:[%s6268_s3 + $0x228] sm:$0xf0] }
  0x66   :  { %v3668_v42 = vor.u32 %v3939_v35, %v3665_v39 }
  0x67   :  { %1069 = vmatpush.bf16.msra.mxu2 %v3684_v17 }
  0x68   :  { %823 = vmatmul.bf16.gmra.mxu1 %v4902_v40  ;;  %910 = vmatmul.bf16.gmra.mxu0 %v4904_v41 }
  0x69   :  { %1037 = vmatpush.bf16.msrb.mxu1 %v3644_v45 }
  0x6a   :  { %958 = vmatmul.bf16.vlgmr.msrb.gmra.mxu2 %v4476_v18  ;;  %v3870_v18 = vld [vmem:[%s6266_s1 + $0xb4] sm:$0xf0] }
  0x6b   :  { %v4960_v5 = vor.u32 %v3870_v18, %v3383_v4  ;;  %1070 = vmatpush.bf16.msra.mxu2 %v3676_v28  ;;  %v3713_v4 = vld [vmem:[%s6268_s3 + $0x288] sm:$0xf0] }
  0x6d   :  { %1038 = vmatpush.bf16.msrb.mxu1 %v3636_v63  ;;  %v3652_v63 = vor.u32 %v3935_v59, %v3649_v62 }
  0x6f   :  { %987 = vmatmul.bf16.vlgmr.msrb.gmra.mxu3 %v4698_v60  ;;  %v4958_v60 = vor.u32 %v3865_v2, %v3369_v3  ;;  %1071 = vmatpush.bf16.msra.mxu2 %v3668_v42  ;;  %v3951_v2 = vld [vmem:[%s6268_s3 + $0x284] sm:$0xf]  ;;  %v3596_v3 = vor.u32 %v3921_v0, %v3593_v1 }
  0x70   :  { %v3716_v18 = vor.u32 %v3951_v2, %v3713_v4 }
  0x71   :  { %1039 = vmatpush.bf16.msrb.mxu1 %v3628_v9  ;;  %v3361_v9 = vld [vmem:[%s6266_s1 + $0x88] sm:$0xf0] }
  0x72   :  { %v3364_v10 = vor.u32 %v3861_v8, %v3361_v9  ;;  %v5167_v8 = vld [vmem:[%s6272_s7] ss:$0 sm:$0xff]  ;;  %s3826_s7 = sld [smem:[#allocation6 + $0x2]] }
  0x73   :  { %1072 = vmatpush.bf16.msra.mxu2 %v3660_v54 }
  0x75   :  { %1040 = vmatpush.bf16.msrb.mxu1 %v3620_v27 }
  0x77   :  { %1073 = vmatpush.bf16.msra.mxu2 %v3652_v63 }
  0x78   :  { %828 = vmatmul.bf16.gmra.mxu1 %v4958_v60  ;;  %915 = vmatmul.bf16.gmra.mxu0 %v4960_v5  ;;  %p2652_p2 = scmp.eq.s32.totalorder %s3826_s7, 1 }
  0x79   :  { %1041 = vmatpush.bf16.msrb.mxu1 %v3612_v38 }
  0x7a   :  { %963 = vmatmul.bf16.gmra.mxu2 %v4602_v12  ;;  %v3737_v12 = vld [vmem:[%s6268_s3 + $0x2b8] sm:$0xf0]  ;;  %s2654_s22 = scalar_select %p2652_p2, 1, 0 }
  0x7d   :  { %1042 = vmatpush.bf16.msrb.mxu1 %v3604_v53 }
  0x7f   :  { %992 = vmatmul.bf16.gmra.mxu3 %v4806_v51  ;;  %v3740_v51 = vor.u32 %v3957_v32, %v3737_v12 }
  0x81   :  { %1099 = vmatpush.bf16.msra.mxu3 %v3740_v51  ;;  %1043 = vmatpush.bf16.msrb.mxu1 %v3596_v3 }
  0x88   :  { %929 = vmatmul.bf16.vlgmr.msra.gmra.mxu1 %v5002_v31  ;;  %1016 = vmatmul.bf16.vlgmr.msra.gmra.mxu0 %v4545_v49  ;;  %v3955_v49 = vld [vmem:[%s6268_s3 + $0x2a4] sm:$0xf] }
  0x89   :  { %v3732_v45 = vor.u32 %v3955_v49, %v3729_v43 }
  0x8a   :  { %968 = vmatmul.bf16.gmra.mxu2 %v4478_v19  ;;  %v3953_v19 = vld [vmem:[%s6268_s3 + $0x294] sm:$0xf] }
  0x8b   :  { %1100 = vmatpush.bf16.msra.mxu3 %v3732_v45 }
  0x8f   :  { %997 = vmatmul.bf16.gmra.mxu3 %v4902_v40  ;;  %v3721_v40 = vld [vmem:[%s6268_s3 + $0x298] sm:$0xf0] }
  0x90   :  { %v3724_v58 = vor.u32 %v3953_v19, %v3721_v40 }
  0x92   :  { %1101 = vmatpush.bf16.msra.mxu3 %v3724_v58 }
  0x96   :  { %1102 = vmatpush.bf16.msra.mxu3 %v3716_v18 }
  0x98   :  { %934 = vmatmul.bf16.gmra.mxu1 %v3340_v57  ;;  %1021 = vmatmul.bf16.gmra.mxu0 %v4656_v36  ;;  %v3919_v36 = vld [vmem:[%s6268_s3 + $0x184] sm:$0xf] }
  0x99   :  { %v3588_v7 = vor.u32 %v3919_v36, %v3585_v6 }
  0x9a   :  { %973 = vmatmul.bf16.gmra.mxu2 %v4604_v13  ;;  %v3867_v13 = vld [vmem:[%s6266_s1 + $0xa4] sm:$0xf] }
  0x9b   :  { %1044 = vmatpush.bf16.msrb.mxu1 %v3588_v7 }
  0x9f   :  { %1002 = vmatmul.bf16.gmra.mxu3 %v4958_v60  ;;  %v3385_v60 = vld [vmem:[%s6266_s1 + $0xb8] sm:$0xf0]  ;;  %s4216_s1 = smov 96  }
  0xa0   :  { %v3388_v23 = vor.u32 %v3867_v13, %v3385_v60 }
  0xa5   :  { %v5089_v11 = vpop.f32.mrf.mxu1 }
  0xa8   :  { %939 = vmatmul.bf16.gmra.mxu1 %v3364_v10  ;;  %1026 = vmatmul.bf16.gmra.mxu0 %v4743_v15 }
  0xaa   :  { %1074 = vmatmul.bf16.vlgmr.msra.gmra.mxu2 %v4700_v61  ;;  %v5109_v61 = vpop.f32.mrf.mxu0 }
  0xad   :  { %v5092_v14 = vpop.f32.mrf.mxu1  ;;  %v5102_v17 = vpop.f32.mrf.mxu2 }
  0xaf   :  { %1103 = vmatmul.bf16.vlgmr.msra.gmra.mxu3 %v5002_v31 }
  0xb2   :  { %v5104_v22 = vpop.f32.mrf.mxu3  ;;  %v5118_v29 = vpop.f32.mrf.mxu0 }
  0xb5   :  { %v5106_v15 = vpop.f32.mrf.mxu1  ;;  %v5111_v24 = vpop.f32.mrf.mxu2 }
  0xb8   :  { %944 = vmatmul.bf16.gmra.mxu1 %v3388_v23  ;;  %1031 = vmatmul.bf16.gmra.mxu0 %v4863_v20 }
  0xba   :  { %v5113_v25 = vpop.f32.mrf.mxu3  ;;  %1079 = vmatmul.bf16.gmra.mxu2 %v4808_v52  ;;  %v790_v32 = vpop.f32.mrf.mxu0 }
  0xbd   :  { %v5115_v26 = vpop.f32.mrf.mxu1  ;;  %v848_v27 = vpop.f32.mrf.mxu2 }
  0xbf   :  { %1108 = vmatmul.bf16.gmra.mxu3 %v3340_v57 }
  0xc2   :  { %v877_v28 = vpop.f32.mrf.mxu3  ;;  %v792_v34 = vpop.f32.mrf.mxu0 }
  0xc5   :  { %v5120_v30 = vpop.f32.mrf.mxu1  ;;  %v850_v20 = vpop.f32.mrf.mxu2 }
  0xc8   :  { %1045 = vmatmul.bf16.vlgmr.msrb.gmra.mxu1 %v4547_v50 }
  0xca   :  { %v879_v31 = vpop.f32.mrf.mxu3  ;;  %1084 = vmatmul.bf16.gmra.mxu2 %v4904_v41  ;;  %v5128_v50 = vpop.f32.mrf.mxu0 }
  0xcd   :  { %v5123_v12 = vpop.f32.mrf.mxu1  ;;  %v853_v51 = vpop.f32.mrf.mxu2 }
  0xcf   :  { %1113 = vmatmul.bf16.gmra.mxu3 %v3364_v10 }
  0xd2   :  { %v882_v33 = vpop.f32.mrf.mxu3  ;;  %v5137_v45 = vpop.f32.mrf.mxu0 }
  0xd5   :  { %v819_v52 = vpop.f32.mrf.mxu1  ;;  %v855_v35 = vpop.f32.mrf.mxu2 }
  0xd6   :  { %v820_v40 = vadd.f32 %v819_v52, %v790_v32 }
  0xd8   :  { %1050 = vmatmul.bf16.gmra.mxu1 %v4658_v37  ;;  %v849_v63 = vadd.f32 %v848_v27, %v820_v40 }
  0xda   :  { %v884_v38 = vpop.f32.mrf.mxu3  ;;  %1089 = vmatmul.bf16.gmra.mxu2 %v4960_v5  ;;  %v906_v48 = vpop.f32.mrf.mxu0  ;;  %v878_v0 = vadd.f32 %v877_v28, %v849_v63 }
  0xdc   :  { %v907_v3 = vadd.f32 %v906_v48, %v878_v0 }
  0xdd   :  { %v821_v39 = vpop.f32.mrf.mxu1  ;;  %v858_v42 = vpop.f32.mrf.mxu2 }
  0xde   :  { %v822_v1 = vadd.f32 %v821_v39, %v792_v34 }
  0xdf   :  { %1118 = vmatmul.bf16.gmra.mxu3 %v3388_v23 }
  0xe0   :  { %v851_v4 = vadd.f32 %v850_v20, %v822_v1 }
  0xe2   :  { %v5130_v49 = vpop.f32.mrf.mxu3  ;;  %v908_v55 = vpop.f32.mrf.mxu0  ;;  %v880_v9 = vadd.f32 %v879_v31, %v851_v4 }
  0xe4   :  { %v909_v23 = vadd.f32 %v908_v55, %v880_v9 }
  0xe5   :  { %v824_v43 = vpop.f32.mrf.mxu1  ;;  %v5133_v41 = vpop.f32.mrf.mxu2 }
  0xe6   :  { %v825_v10 = vadd.f32 %v824_v43, %v5089_v11 }
  0xe8   :  { %1055 = vmatmul.bf16.gmra.mxu1 %v4745_v16  ;;  %v854_v27 = vadd.f32 %v853_v51, %v825_v10 }
  0xea   :  { %v5135_v44 = vpop.f32.mrf.mxu3  ;;  %v911_v58 = vpop.f32.mrf.mxu0  ;;  %v883_v34 = vadd.f32 %v882_v33, %v854_v27  ;;  %v5228_v27 = vld [vmem:[%s6271_s6 + $0x8] sm:$0xff] }
  0xec   :  { %v912_v31 = vadd.f32 %v911_v58, %v883_v34  ;;  %v1209_v58 = vld [vmem:[%s6270_s5 + $0x10] sm:$0xff] }
  0xed   :  { %v826_v37 = vpop.f32.mrf.mxu1  ;;  %v5139_v46 = vpop.f32.mrf.mxu2 }
  0xee   :  { %v827_v39 = vadd.f32 %v826_v37, %v5092_v14 }
  0xf0   :  { %v856_v11 = vadd.f32 %v855_v35, %v827_v39  ;;  %v1210_v35 = vld [vmem:[%s6270_s5 + $0x18] sm:$0xff]  ;;  %v4213_v39 = vmov 0.0  }
  0xf1   :  { %3975 = vmatpush.msrb.mxu3 %v1210_v35  ;;  %1248 = vmatpush.msrb.mxu0 %v1210_v35 }
  0xf2   :  { %v5141_v47 = vpop.f32.mrf.mxu3  ;;  %v913_v18 = vpop.f32.mrf.mxu0  ;;  %v885_v0 = vadd.f32 %v884_v38, %v856_v11 }
  0xf3   :  { %1249 = vmatpush.msrb.mxu0 %v1209_v58  ;;  %3976 = vmatpush.msrb.mxu3 %v1209_v58 }
  0xf4   :  { %v914_v33 = vadd.f32 %v913_v18, %v885_v0  ;;  %v5217_v18 = vld [vmem:[%s6271_s6 + $0x10] sm:$0xff]  ;;  %v989_v0 = vadd.f32 %v5141_v47, %v5139_v46 }
  0xf5   :  { %v829_v5 = vpop.f32.mrf.mxu1  ;;  %v5144_v53 = vpop.f32.mrf.mxu2 }
  0xf6   :  { %v830_v51 = vadd.f32 %v829_v5, %v5106_v15 }
  0xf8   :  { %1060 = vmatmul.bf16.gmra.mxu1 %v4865_v21  ;;  %v859_v14 = vadd.f32 %v858_v42, %v830_v51  ;;  %v5202_v42 = vld [vmem:[%s6271_s6 + $0x18] sm:$0xff]  ;;  %v1156_v51 = vlaneseq }
  0xf9   :  { %1314 = vmatpush.msra.mxu1 %v5202_v42  ;;  %3979 = vmatpush.msrb.mxu2 %v5202_v42 }
  0xfa   :  { %v5146_v54 = vpop.f32.mrf.mxu3  ;;  %v916_v32 = vpop.f32.mrf.mxu0  ;;  %v888_v38 = vadd.f32 %v5130_v49, %v859_v14 }
  0xfb   :  { %1315 = vmatpush.msra.mxu1 %v5217_v18  ;;  %3980 = vmatpush.msrb.mxu2 %v5217_v18 }
  0xfd   :  { %v831_v16 = vpop.f32.mrf.mxu1  ;;  %v5148_v56 = vpop.f32.mrf.mxu2  ;;  %1316 = vmatpush.msra.mxu1 %v5228_v27  ;;  %3981 = vmatpush.msrb.mxu2 %v5228_v27 }
  0xfe   :  { %v832_v15 = vadd.f32 %v831_v16, %v5115_v26  ;;  %v1208_v16 = vld [vmem:[%s6270_s5 + $0x8] sm:$0xff] }
  0xff   :  { %1250 = vmatpush.msrb.mxu0 %v1208_v16  ;;  %3977 = vmatpush.msrb.mxu3 %v1208_v16 }
 0x100   :  { %v861_v9 = vadd.f32 %v5133_v41, %v832_v15  ;;  %v5235_v41 = vld [vmem:[%s6271_s6] sm:$0xff]  ;;  %v991_v15 = vadd.f32 %v5146_v54, %v5144_v53 }
 0x101   :  { %1317 = vmatpush.msra.mxu1 %v5235_v41  ;;  %3982 = vmatpush.msrb.mxu2 %v5235_v41 }
 0x102   :  { %v5150_v57 = vpop.f32.mrf.mxu3  ;;  %v918_v1 = vpop.f32.mrf.mxu0  ;;  %1321 = vmatmul.f32.vlgmr.msrb.gmra.mxu2 %v4213_v39 }
 0x103   :  { %1432 = vmatpush.msra.mxu2 %v5202_v42  ;;  %1666 = vmatpush.msrb.mxu1 %v5202_v42 }
 0x105   :  { %v5152_v19 = vpop.f32.mrf.mxu1  ;;  %v5154_v59 = vpop.f32.mrf.mxu2  ;;  %1433 = vmatpush.msra.mxu2 %v5217_v18  ;;  %1667 = vmatpush.msrb.mxu1 %v5217_v18 }
 0x107   :  { %1434 = vmatpush.msra.mxu2 %v5228_v27  ;;  %1668 = vmatpush.msrb.mxu1 %v5228_v27 }
 0x108   :  { %1318 = vmatmul.f32.vlgmr.msra.gmra.mxu1 %v4213_v39 }
 0x109   :  { %1435 = vmatpush.msra.mxu2 %v5235_v41  ;;  %1669 = vmatpush.msrb.mxu1 %v5235_v41 }
 0x10a   :  { %v5156_v62 = vpop.f32.mrf.mxu3  ;;  %v1017_v49 = vpop.f32.mrf.mxu0 }
 0x10b   :  { %1783 = vmatpush.msrb.mxu2 %v5202_v42  ;;  %2017 = vmatpush.msra.mxu1 %v5202_v42 }
 0x10d   :  { %v5158_v21 = vpop.f32.mrf.mxu1  ;;  %v5160_v2 = vpop.f32.mrf.mxu2  ;;  %1784 = vmatpush.msrb.mxu2 %v5217_v18  ;;  %2018 = vmatpush.msra.mxu1 %v5217_v18 }
 0x10f   :  { %1785 = vmatpush.msrb.mxu2 %v5228_v27  ;;  %2019 = vmatpush.msra.mxu1 %v5228_v27 }
 0x111   :  { %1786 = vmatpush.msrb.mxu2 %v5235_v41  ;;  %2020 = vmatpush.msra.mxu1 %v5235_v41 }
 0x112   :  { %v5162_v6 = vpop.f32.mrf.mxu3 }
 0x115   :  { %v935_v36 = vpop.f32.mrf.mxu1  ;;  %v5173_v60 = vpop.f32.mrf.mxu2 }
 0x116   :  { %v936_v7 = vadd.f32 %v935_v36, %v907_v3 }
 0x118   :  { %v5171_v13 = vadd.f32 %v5167_v8, %v936_v7  ;;  %v917_v7 = vadd.f32 %v916_v32, %v888_v38  ;;  %v5271_v38 = vld [vmem:[%s6269_s4] ss:$0 sm:$0xff]  ;;  %s4214_s4 = smov 32  }
 0x11a   :  { %v5175_v52 = vpop.f32.mrf.mxu3 }
 0x11d   :  { %v937_v28 = vpop.f32.mrf.mxu1  ;;  %v5181_v40 = vpop.f32.mrf.mxu2 }
 0x11e   :  { %v938_v20 = vadd.f32 %v937_v28, %v909_v23  ;;  %v1207_v23 = vld [vmem:[%s6270_s5] sm:$0xff]  ;;  %s2570_s5 = scalar_select %p2568_p1, 1, 0 }
 0x11f   :  { %1251 = vmatpush.msrb.mxu0 %v1207_v23  ;;  %3978 = vmatpush.msrb.mxu3 %v1207_v23 }
 0x120   :  { %v5179_v48 = vadd.f32 %v5167_v8, %v938_v20  ;;  %v890_v20 = vadd.f32 %v5135_v44, %v861_v9  ;;  %v1019_v44 = vpop.f32.mrf.mxu0 }
 0x121   :  { %1549 = vmatpush.msra.mxu3 %v5202_v42 }
 0x122   :  { %v5187_v3 = vpop.f32.mrf.mxu3  ;;  %v919_v11 = vadd.f32 %v918_v1, %v890_v20 }
 0x123   :  { %1550 = vmatpush.msra.mxu3 %v5217_v18 }
 0x125   :  { %v940_v43 = vpop.f32.mrf.mxu1  ;;  %v5189_v36 = vpop.f32.mrf.mxu2  ;;  %1551 = vmatpush.msra.mxu3 %v5228_v27 }
 0x126   :  { %v941_v63 = vadd.f32 %v940_v43, %v912_v31 }
 0x127   :  { %1552 = vmatpush.msra.mxu3 %v5235_v41 }
 0x128   :  { %v5185_v55 = vadd.f32 %v5167_v8, %v941_v63  ;;  %v1022_v47 = vpop.f32.mrf.mxu0 }
 0x12a   :  { %v5209_v26 = vpop.f32.mrf.mxu3 }
 0x12d   :  { %v942_v37 = vpop.f32.mrf.mxu1  ;;  %v1075_v34 = vpop.f32.mrf.mxu2 }
 0x12e   :  { %v943_v4 = vadd.f32 %v942_v37, %v914_v33  ;;  %v1018_v33 = vadd.f32 %v1017_v49, %v989_v0  ;;  %v1020_v49 = vadd.f32 %v1019_v44, %v991_v15 }
 0x130   :  { %v5197_v5 = vadd.f32 %v5167_v8, %v943_v4  ;;  %v5265_v4 = vshrl.u32 %v1156_v51, 7 }
 0x132   :  { %v1104_v31 = vpop.f32.mrf.mxu3  ;;  %vm1158_vm0 = vcmp.lt.s32.totalorder %v5265_v4, 6  ;;  %v815_v4 = vadd.f32 %v5120_v30, %v5109_v61 }
 0x135   :  { %v945_v10 = vpop.f32.mrf.mxu1  ;;  %v1077_v1 = vpop.f32.mrf.mxu2 }
 0x136   :  { %v946_v28 = vadd.f32 %v945_v10, %v917_v7 }
 0x138   :  { %v5241_v32 = vadd.f32 %v5167_v8, %v946_v28 }
 0x13a   :  { %v1106_v37 = vpop.f32.mrf.mxu3 }
 0x13d   :  { %v947_v43 = vpop.f32.mrf.mxu1  ;;  %v1080_v9 = vpop.f32.mrf.mxu2 }
 0x13e   :  { %v5249_v63 = vadd.f32 %v947_v43, %v919_v11  ;;  %v1024_v11 = vpop.f32.mrf.mxu0 }
 0x142   :  { %v1109_v20 = vpop.f32.mrf.mxu3 }
 0x145   :  { %v1046_v14 = vpop.f32.mrf.mxu1 }
 0x146   :  { %v1047_v46 = vadd.f32 %v1046_v14, %v1018_v33  ;;  %v1027_v15 = vpop.f32.mrf.mxu0 }
 0x148   :  { %v1076_v35 = vadd.f32 %v1075_v34, %v1047_v46  ;;  %v994_v34 = vadd.f32 %v5150_v57, %v5148_v56  ;;  %v1082_v46 = vpop.f32.mrf.mxu2 }
 0x14a   :  { %v1105_v58 = vadd.f32 %v1104_v31, %v1076_v35  ;;  %v1023_v43 = vadd.f32 %v1022_v47, %v994_v34  ;;  %v1111_v57 = vpop.f32.mrf.mxu3  ;;  %v999_v34 = vadd.f32 %v5162_v6, %v5160_v2 }
 0x14c   :  { %v1148_v16 = vadd.f32 %v5271_v38, %v1105_v58 }
 0x14d   :  { %v1048_v7 = vpop.f32.mrf.mxu1 }
 0x14e   :  { %v1159_v10 = vsel %vm1158_vm0, %v1148_v16, -1e+30  ;;  %v1049_v23 = vadd.f32 %v1048_v7, %v1020_v49 }
 0x14f   :  { %v1160_v28 = vrot.slane %v1159_v10, 6 }
 0x150   :  { %v1078_v39 = vadd.f32 %v1077_v1, %v1049_v23 }
 0x151   :  { %v1161_v53 = vmax.f32 %v1159_v10, %v1160_v28 }
 0x152   :  { %v1107_v54 = vadd.f32 %v1106_v37, %v1078_v39  ;;  %v996_v37 = vadd.f32 %v5156_v62, %v5154_v59  ;;  %v1085_v59 = vpop.f32.mrf.mxu2 }
 0x153   :  { %v1162_v31 = vrot.slane %v1161_v53, 4 }
 0x154   :  { %v1149_v44 = vadd.f32 %v5271_v38, %v1107_v54  ;;  %v1025_v49 = vadd.f32 %v1024_v11, %v996_v37  ;;  %v1028_v54 = vadd.f32 %v1027_v15, %v999_v34 }
 0x155   :  { %v1163_v0 = vmax.f32 %v1161_v53, %v1162_v31  ;;  %v1051_v51 = vpop.f32.mrf.mxu1  ;;  %v1114_v53 = vpop.f32.mrf.mxu3 }
 0x156   :  { %v1052_v33 = vadd.f32 %v1051_v51, %v1023_v43  ;;  %v1164_v14 = vsel %vm1158_vm0, %v1149_v44, -1e+30  ;;  %v1029_v43 = vpop.f32.mrf.mxu0 }
 0x157   :  { %3773 = vmatmul.msk.f32.vlgmr.msrb.gmra.mxu0 %vm1211_vm1, %v1163_v0  ;;  %v1165_v35 = vrot.slane %v1164_v14, 6 }
 0x158   :  { %v1081_v56 = vadd.f32 %v1080_v9, %v1052_v33 }
 0x159   :  { %v1166_v1 = vmax.f32 %v1164_v14, %v1165_v35 }
 0x15a   :  { %v1110_v47 = vadd.f32 %v1109_v20, %v1081_v56  ;;  %v1087_v56 = vpop.f32.mrf.mxu2 }
 0x15b   :  { %v1167_v58 = vrot.slane %v1166_v1, 4 }
 0x15c   :  { %v1150_v16 = vadd.f32 %v5271_v38, %v1110_v47 }
 0x15d   :  { %v1053_v7 = vpop.f32.mrf.mxu1  ;;  %v1168_v10 = vmax.f32 %v1166_v1, %v1167_v58  ;;  %v1116_v47 = vpop.f32.mrf.mxu3 }
 0x15e   :  { %v1054_v23 = vadd.f32 %v1053_v7, %v1025_v49  ;;  %v1169_v28 = vsel %vm1158_vm0, %v1150_v16, -1e+30  ;;  %v1032_v7 = vpop.f32.mrf.mxu0 }
 0x15f   :  { %3774 = vmatmul.msk.f32.gmra.mxu0 %vm1211_vm1, %v1168_v10  ;;  %v1170_v9 = vrot.slane %v1169_v28, 6 }
 0x160   :  { %v1083_v39 = vadd.f32 %v1082_v46, %v1054_v23  ;;  %v1001_v46 = vadd.f32 %v5175_v52, %v5173_v60  ;;  %v1004_v60 = vadd.f32 %v5187_v3, %v5181_v40 }
 0x161   :  { %v1171_v62 = vmax.f32 %v1169_v28, %v1170_v9 }
 0x162   :  { %v1112_v20 = vadd.f32 %v1111_v57, %v1083_v39  ;;  %v1030_v1 = vadd.f32 %v1029_v43, %v1001_v46  ;;  %v1033_v34 = vadd.f32 %v1032_v7, %v1004_v60 }
 0x163   :  { %v1172_v11 = vrot.slane %v1171_v62, 4 }
 0x164   :  { %v1151_v31 = vadd.f32 %v5271_v38, %v1112_v20 }
 0x165   :  { %v1056_v44 = vpop.f32.mrf.mxu1  ;;  %v1173_v0 = vmax.f32 %v1171_v62, %v1172_v11 }
 0x166   :  { %v1057_v51 = vadd.f32 %v1056_v44, %v1028_v54  ;;  %v1174_v33 = vsel %vm1158_vm0, %v1151_v31, -1e+30  ;;  %v1119_v31 = vpop.f32.mrf.mxu3  ;;  %v1034_v40 = vpop.f32.mrf.mxu0  ;;  %v1006_v44 = vadd.f32 %v5209_v26, %v5189_v36 }
 0x167   :  { %3775 = vmatmul.msk.f32.gmra.mxu0 %vm1211_vm1, %v1173_v0  ;;  %v1175_v14 = vrot.slane %v1174_v33, 6 }
 0x168   :  { %v1086_v2 = vadd.f32 %v1085_v59, %v1057_v51  ;;  %v1090_v59 = vpop.f32.mrf.mxu2 }
 0x169   :  { %v1176_v6 = vmax.f32 %v1174_v33, %v1175_v14  ;;  %v1035_v33 = vadd.f32 %v1034_v40, %v1006_v44 }
 0x16a   :  { %v1115_v35 = vadd.f32 %v1114_v53, %v1086_v2 }
 0x16b   :  { %v1177_v57 = vrot.slane %v1176_v6, 4 }
 0x16c   :  { %v1152_v37 = vadd.f32 %v5271_v38, %v1115_v35 }
 0x16d   :  { %v1058_v15 = vpop.f32.mrf.mxu1  ;;  %v1178_v58 = vmax.f32 %v1176_v6, %v1177_v57 }
 0x16e   :  { %v1179_v49 = vsel %vm1158_vm0, %v1152_v37, -1e+30  ;;  %v1059_v16 = vadd.f32 %v1058_v15, %v1030_v1 }
 0x16f   :  { %v1180_v10 = vrot.slane %v1179_v49, 6  ;;  %3776 = vmatmul.msk.f32.gmra.mxu0 %vm1211_vm1, %v1178_v58 }
 0x170   :  { %v1088_v52 = vadd.f32 %v1087_v56, %v1059_v16  ;;  %v1092_v57 = vpop.f32.mrf.mxu2 }
 0x171   :  { %v1181_v23 = vmax.f32 %v1179_v49, %v1180_v10 }
 0x172   :  { %v1117_v28 = vadd.f32 %v1116_v47, %v1088_v52  ;;  %v1121_v47 = vpop.f32.mrf.mxu3 }
 0x173   :  { %v1182_v9 = vrot.slane %v1181_v23, 4 }
 0x174   :  { %v1153_v39 = vadd.f32 %v5271_v38, %v1117_v28 }
 0x175   :  { %v1061_v62 = vpop.f32.mrf.mxu1  ;;  %v1183_v20 = vmax.f32 %v1181_v23, %v1182_v9 }
 0x176   :  { %v1184_v53 = vsel %vm1158_vm0, %v1153_v39, -1e+30  ;;  %v1062_v11 = vadd.f32 %v1061_v62, %v1033_v34 }
 0x177   :  { %v1185_v54 = vrot.slane %v1184_v53, 6  ;;  %3777 = vmatmul.msk.f32.gmra.mxu0 %vm1211_vm1, %v1183_v20 }
 0x178   :  { %v1091_v43 = vadd.f32 %v1090_v59, %v1062_v11 }
 0x179   :  { %v1186_v3 = vmax.f32 %v1184_v53, %v1185_v54  ;;  %v1135_v54 = vadd.f32 %v5167_v8, %v5249_v63 }
 0x17a   :  { %v1120_v0 = vadd.f32 %v1119_v31, %v1091_v43 }
 0x17b   :  { %v1187_v51 = vrot.slane %v1186_v3, 4 }
 0x17c   :  { %v1154_v14 = vadd.f32 %v5271_v38, %v1120_v0 }
 0x17d   :  { %v1063_v2 = vpop.f32.mrf.mxu1  ;;  %v1188_v6 = vmax.f32 %v1186_v3, %v1187_v51 }
 0x17e   :  { %v1189_v46 = vsel %vm1158_vm0, %v1154_v14, -1e+30  ;;  %v1064_v35 = vadd.f32 %v1063_v2, %v1035_v33 }
 0x17f   :  { %v1190_v56 = vrot.slane %v1189_v46, 6  ;;  %3778 = vmatmul.msk.f32.gmra.mxu0 %vm1211_vm1, %v1188_v6 }
 0x180   :  { %v1093_v1 = vadd.f32 %v1092_v57, %v1064_v35 }
 0x181   :  { %v1191_v37 = vmax.f32 %v1189_v46, %v1190_v56 }
 0x182   :  { %v1122_v15 = vadd.f32 %v1121_v47, %v1093_v1 }
 0x183   :  { %v1192_v36 = vrot.slane %v1191_v37, 4 }
 0x184   :  { %v1155_v26 = vadd.f32 %v5271_v38, %v1122_v15  ;;  %v844_v38 = vadd.f32 %v5102_v17, %v815_v4 }
 0x185   :  { %v1193_v58 = vmax.f32 %v1191_v37, %v1192_v36  ;;  %v1319_v39 = vpop.f32.mrf.mxu1  ;;  %v1322_v43 = vpop.f32.mrf.mxu2 }
 0x186   :  { %v1194_v49 = vsel %vm1158_vm0, %v1155_v26, -1e+30  ;;  %v873_v52 = vadd.f32 %v5104_v22, %v844_v38 }
 0x187   :  { %v1195_v16 = vrot.slane %v1194_v49, 6  ;;  %3779 = vmatmul.msk.f32.vlgmr.msrb.gmra.mxu3 %vm1211_vm1, %v1193_v58 }
 0x188   :  { %1900 = vmatpush.msrb.mxu3 %v5202_v42  ;;  %v902_v23 = vadd.f32 %v5128_v50, %v873_v52 }
 0x189   :  { %v1196_v7 = vmax.f32 %v1194_v49, %v1195_v16 }
 0x18a   :  { %1901 = vmatpush.msrb.mxu3 %v5217_v18  ;;  %v931_v28 = vadd.f32 %v5152_v19, %v902_v23 }
 0x18b   :  { %v1197_v10 = vrot.slane %v1196_v7, 4 }
 0x18c   :  { %1902 = vmatpush.msrb.mxu3 %v5228_v27  ;;  %v1128_v9 = vadd.f32 %v5167_v8, %v931_v28 }
 0x18d   :  { %v1198_v60 = vmax.f32 %v1196_v7, %v1197_v10 }
 0x18e   :  { %1903 = vmatpush.msrb.mxu3 %v5235_v41 }
 0x18f   :  { %3780 = vmatmul.msk.f32.gmra.mxu3 %vm1211_vm1, %v1198_v60 }
 0x1d4   :  { %v1253_v34 = vpop.f32.mrf.mxu0 }
 0x1d5   :  { %v5332_v59 = vadd.f32 %v1253_v34, %v1128_v9 }
 0x1d7   :  { %v1325_v62 = vadd.f32 %v1319_v39, %v5332_v59 }
 0x1d9   :  { %3999 = vtanh.f32 %v1325_v62  ;;  %v3781_v44 = vmul.f32 -1.442695, %v1325_v62 }
 0x1dc   :  { %v5335_v20 = vpop.f32.mrf.mxu0 }
 0x1df   :  { %v4000_v61 = vpop.eup %3999 }
 0x1e0   :  { %1371 = vrot.lane.b32.xlu0 %v4000_v61, %s4214_s4 }
 0x1e4   :  { %v5338_v17 = vpop.f32.mrf.mxu0 }
 0x1ec   :  { %v1262_v22 = vpop.f32.mrf.mxu0 }
 0x1ed   :  { %v5341_v30 = vadd.f32 %v1262_v22, %v5179_v48 }
 0x1f4   :  { %v1265_v50 = vpop.f32.mrf.mxu0 }
 0x1f5   :  { %v5344_v19 = vadd.f32 %v1265_v50, %v5185_v55 }
 0x20a   :  { %v1271_v53 = vpop.f32.mrf.mxu3 }
 0x20b   :  { %v5347_v11 = vadd.f32 %v1271_v53, %v5241_v32 }
 0x212   :  { %v1274_v31 = vpop.f32.mrf.mxu3 }
 0x213   :  { %v5351_v40 = vadd.f32 %v1274_v31, %v1135_v54 }
 0x215   :  { %v1326_v3 = vadd.f32 %v1322_v43, %v5351_v40 }
 0x217   :  { %4001 = vtanh.f32 %v1326_v3  ;;  %v3782_v37 = vmul.f32 -1.442695, %v1326_v3 }
 0x218   :  { %4003 = vpow2.f32 %v3781_v44  ;;  %v817_v44 = vadd.f32 %v5123_v12, %v5118_v29 }
 0x21d   :  { %v4002_v48 = vpop.eup %4001 }
 0x21e   :  { %1373 = vrot.lane.b32.xlu0 %v4002_v48, %s4214_s4  ;;  %v4004_v55 = vpop.eup %4003 }
 0x21f   :  { %v1333_v0 = vadd.f32 1.0, %v4004_v55  ;;  %v846_v55 = vadd.f32 %v5111_v24, %v817_v44 }
 0x221   :  { %4005 = vrcp.f32 %v1333_v0  ;;  %v1346_v2 = vand.u32 2147483648, %v1333_v0  ;;  %vm1340_vm3 = vweird.f32 %v1333_v0  ;;  %v1344_v6 = vand.u32 2147483647, %v1333_v0 }
 0x222   :  { %4007 = vpow2.f32 %v3782_v37 }
 0x223   :  { %v1347_v35 = vor.u32 1.1754944e-38, %v1346_v2  ;;  %vm1345_vm5 = vcmp.eq.f32.partialorder %v1344_v6, 8.507059e+37 }
 0x227   :  { %v4006_v32 = vpop.eup %4005 }
 0x228   :  { %v1336_v51 = vmul.f32 %v4006_v32, %v1333_v0  ;;  %vm1341_vm2 = vweird.f32 %v4006_v32  ;;  %v4008_v47 = vpop.eup %4007  ;;  %v875_v0 = vadd.f32 %v5113_v25, %v846_v55 }
 0x229   :  { %vm1342_vm4 = vmor %vm1340_vm3, %vm1341_vm2  ;;  %v1334_v15 = vadd.f32 1.0, %v4008_v47 }
 0x22a   :  { %v1337_v33 = vsub.f32 1.0, %v1336_v51 }
 0x22b   :  { %4009 = vrcp.f32 %v1334_v15  ;;  %v1361_v7 = vand.u32 2147483648, %v1334_v15  ;;  %vm1355_vm7 = vweird.f32 %v1334_v15  ;;  %v1359_v10 = vand.u32 2147483647, %v1334_v15 }
 0x22c   :  { %v1338_v14 = vmul.f32 %v4006_v32, %v1337_v33 }
 0x22d   :  { %v1362_v4 = vor.u32 1.1754944e-38, %v1361_v7  ;;  %vm1360_vm9 = vcmp.eq.f32.partialorder %v1359_v10, 8.507059e+37 }
 0x22e   :  { %v1339_v63 = vadd.f32 %v4006_v32, %v1338_v14 }
 0x230   :  { %v1343_v46 = vsel %vm1342_vm4, %v4006_v32, %v1339_v63  ;;  %v904_v32 = vadd.f32 %v5137_v45, %v875_v0 }
 0x231   :  { %v1348_v57 = vsel %vm1345_vm5, %v1347_v35, %v1343_v46  ;;  %v4010_v36 = vpop.eup %4009 }
 0x232   :  { %v1351_v26 = vmul.f32 %v4010_v36, %v1334_v15  ;;  %vm1356_vm6 = vweird.f32 %v4010_v36  ;;  %v1367_v28 = vmul.f32 0.0, %v1348_v57 }
 0x233   :  { %vm1357_vm8 = vmor %vm1355_vm7, %vm1356_vm6 }
 0x234   :  { %v1352_v58 = vsub.f32 1.0, %v1351_v26 }
 0x236   :  { %v1353_v49 = vmul.f32 %v4010_v36, %v1352_v58 }
 0x238   :  { %v1354_v16 = vadd.f32 %v4010_v36, %v1353_v49 }
 0x23a   :  { %v1358_v60 = vsel %vm1357_vm8, %v4010_v36, %v1354_v16 }
 0x23b   :  { %v1363_v38 = vsel %vm1360_vm9, %v1362_v4, %v1358_v60 }
 0x23c   :  { %v1368_v62 = vmul.f32 0.0, %v1363_v38 }
 0x252   :  { %v1372_v56 = vpop.permute.xlu0 %1371 }
 0x253   :  { %v1377_v1 = vmul.f32 %v1372_v56, %v1348_v57 }
 0x255   :  { %1381 = vrot.lane.b32.xlu1 %v1377_v1, %s4214_s4 }
 0x290   :  { %v1374_v52 = vpop.permute.xlu0 %1373 }
 0x291   :  { %v1378_v23 = vmul.f32 %v1374_v52, %v1363_v38 }
 0x293   :  { %1383 = vrot.lane.b32.xlu1 %v1378_v23, %s4214_s4 }
 0x2c7   :  { %v1382_v9 = vpop.permute.xlu1 %1381 }
 0x2c8   :  { %v5357_v34 = vadd.f32 %v1382_v9, %v1367_v28 }
 0x2ca   :  { %4011 = vtanh.f32 %v5357_v34 }
 0x2d0   :  { %v4012_v39 = vpop.eup %4011 }
 0x2d1   :  { %1393 = vrot.lane.b32.xlu2 %v4012_v39, %s4214_s4 }
 0x305   :  { %v1384_v61 = vpop.permute.xlu1 %1383 }
 0x306   :  { %v5361_v22 = vadd.f32 %v1384_v61, %v1368_v62 }
 0x308   :  { %4013 = vtanh.f32 %v5361_v22 }
 0x30e   :  { %v4014_v50 = vpop.eup %4013 }
 0x30f   :  { %1395 = vrot.lane.b32.xlu2 %v4014_v50, %s4214_s4 }
 0x32b   :  { %v1394_v53 = vpop.permute.xlu2 %1393 }
 0x32c   :  { %v1399_v54 = vmul.f32 %v1394_v53, %v1348_v57 }
 0x32e   :  { %1402 = vrot.lane.b32.xlu0 %v1399_v54, %s4215_s20 }
 0x369   :  { %v1396_v31 = vpop.permute.xlu2 %1395 }
 0x36a   :  { %v5366_v43 = vmul.f32 %v1396_v31, %v1363_v38 }
 0x36c   :  { %1414 = vrot.lane.b32.xlu1 %v5366_v43, %s4215_s20 }
 0x3a0   :  { %v5370_v3 = vpop.permute.xlu0 %1402 }
 0x3a1   :  { %3783 = vmatmul.msk.f32.vlgmr.msra.gmra.mxu2 %vm1211_vm1, %v5370_v3 }
 0x3a2   :  { %2134 = vmatpush.msra.mxu2 %v5202_v42  ;;  %v933_v42 = vadd.f32 %v5158_v21, %v904_v32  ;;  %v5417_v32 = vadd.f32 %v5338_v17, %v5171_v13 }
 0x3a4   :  { %2135 = vmatpush.msra.mxu2 %v5217_v18  ;;  %v1129_v18 = vadd.f32 %v5167_v8, %v933_v42 }
 0x3a6   :  { %2136 = vmatpush.msra.mxu2 %v5228_v27  ;;  %v5387_v27 = vadd.f32 %v5335_v20, %v1129_v18 }
 0x3a8   :  { %2137 = vmatpush.msra.mxu2 %v5235_v41 }
 0x3de   :  { %v1415_v48 = vpop.permute.xlu1 %1414 }
 0x3df   :  { %3784 = vmatmul.msk.f32.gmra.mxu2 %vm1211_vm1, %v1415_v48 }
 0x424   :  { %v1437_v41 = vpop.f32.mrf.mxu2 }
 0x425   :  { %v1443_v51 = vadd.f32 %v1437_v41, %v5387_v27 }
 0x427   :  { %4015 = vtanh.f32 %v1443_v51  ;;  %v3785_v29 = vmul.f32 -1.442695, %v1443_v51 }
 0x429   :  { %4017 = vpow2.f32 %v3785_v29 }
 0x42d   :  { %v4016_v33 = vpop.eup %4015 }
 0x42e   :  { %1489 = vrot.lane.b32.xlu2 %v4016_v33, %s4214_s4  ;;  %v1268_v33 = vpop.f32.mrf.mxu0 }
 0x42f   :  { %v4018_v12 = vpop.eup %4017  ;;  %v5422_v29 = vadd.f32 %v1268_v33, %v5197_v5 }
 0x430   :  { %v1451_v45 = vadd.f32 1.0, %v4018_v12 }
 0x432   :  { %v1464_v6 = vand.u32 2147483648, %v1451_v45  ;;  %vm1458_vm11 = vweird.f32 %v1451_v45  ;;  %v1462_v46 = vand.u32 2147483647, %v1451_v45 }
 0x434   :  { %v1465_v56 = vor.u32 1.1754944e-38, %v1464_v6  ;;  %vm1463_vm13 = vcmp.eq.f32.partialorder %v1462_v46, 8.507059e+37 }
 0x462   :  { %v1440_v24 = vpop.f32.mrf.mxu2 }
 0x463   :  { %v1444_v25 = vadd.f32 %v1440_v24, %v5347_v11 }
 0x465   :  { %4019 = vtanh.f32 %v1444_v25  ;;  %v3786_v47 = vmul.f32 -1.442695, %v1444_v25 }
 0x466   :  { %4021 = vrcp.f32 %v1451_v45 }
 0x467   :  { %4023 = vpow2.f32 %v3786_v47 }
 0x46b   :  { %v4020_v21 = vpop.eup %4019 }
 0x46c   :  { %1491 = vrot.lane.b32.xlu0 %v4020_v21, %s4214_s4  ;;  %v4022_v8 = vpop.eup %4021 }
 0x46d   :  { %v1454_v20 = vmul.f32 %v4022_v8, %v1451_v45  ;;  %vm1459_vm10 = vweird.f32 %v4022_v8  ;;  %v4024_v15 = vpop.eup %4023 }
 0x46e   :  { %vm1460_vm12 = vmor %vm1458_vm11, %vm1459_vm10  ;;  %v1452_v36 = vadd.f32 1.0, %v4024_v15 }
 0x46f   :  { %v1455_v14 = vsub.f32 1.0, %v1454_v20 }
 0x470   :  { %4025 = vrcp.f32 %v1452_v36  ;;  %v1479_v10 = vand.u32 2147483648, %v1452_v36  ;;  %vm1473_vm15 = vweird.f32 %v1452_v36  ;;  %v1477_v60 = vand.u32 2147483647, %v1452_v36 }
 0x471   :  { %v1456_v63 = vmul.f32 %v4022_v8, %v1455_v14 }
 0x472   :  { %v1480_v38 = vor.u32 1.1754944e-38, %v1479_v10  ;;  %vm1478_vm2 = vcmp.eq.f32.partialorder %v1477_v60, 8.507059e+37 }
 0x473   :  { %v1457_v2 = vadd.f32 %v4022_v8, %v1456_v63 }
 0x475   :  { %v1461_v35 = vsel %vm1460_vm12, %v4022_v8, %v1457_v2 }
 0x476   :  { %v1466_v57 = vsel %vm1463_vm13, %v1465_v56, %v1461_v35  ;;  %v4026_v26 = vpop.eup %4025 }
 0x477   :  { %v1469_v58 = vmul.f32 %v4026_v26, %v1452_v36  ;;  %vm1474_vm14 = vweird.f32 %v4026_v26  ;;  %v1485_v9 = vmul.f32 %v1466_v57, %v5357_v34 }
 0x478   :  { %vm1475_vm0 = vmor %vm1473_vm15, %vm1474_vm14 }
 0x479   :  { %v1470_v49 = vsub.f32 1.0, %v1469_v58 }
 0x47b   :  { %v1471_v16 = vmul.f32 %v4026_v26, %v1470_v49 }
 0x47d   :  { %v1472_v7 = vadd.f32 %v4026_v26, %v1471_v16 }
 0x47f   :  { %v1476_v4 = vsel %vm1475_vm0, %v4026_v26, %v1472_v7 }
 0x480   :  { %v1481_v23 = vsel %vm1478_vm2, %v1480_v38, %v1476_v4 }
 0x481   :  { %v1486_v50 = vmul.f32 %v1481_v23, %v5361_v22 }
 0x488   :  { %v1490_v1 = vpop.permute.xlu2 %1489 }
 0x489   :  { %v1495_v37 = vmul.f32 %v1490_v1, %v1466_v57 }
 0x48b   :  { %1499 = vrot.lane.b32.xlu1 %v1495_v37, %s4214_s4 }
 0x4de   :  { %v1492_v52 = vpop.permute.xlu0 %1491 }
 0x4df   :  { %v1496_v28 = vmul.f32 %v1492_v52, %v1481_v23 }
 0x4e1   :  { %1501 = vrot.lane.b32.xlu2 %v1496_v28, %s4214_s4 }
 0x4fd   :  { %v1500_v39 = vpop.permute.xlu1 %1499 }
 0x4fe   :  { %v5396_v62 = vadd.f32 %v1500_v39, %v1485_v9 }
 0x500   :  { %4027 = vtanh.f32 %v5396_v62 }
 0x506   :  { %v4028_v61 = vpop.eup %4027 }
 0x507   :  { %1511 = vrot.lane.b32.xlu0 %v4028_v61, %s4214_s4 }
 0x53b   :  { %v1502_v53 = vpop.permute.xlu2 %1501 }
 0x53c   :  { %v5401_v54 = vadd.f32 %v1502_v53, %v1486_v50 }
 0x53e   :  { %4029 = vtanh.f32 %v5401_v54 }
 0x544   :  { %v4030_v31 = vpop.eup %4029 }
 0x545   :  { %1513 = vrot.lane.b32.xlu1 %v4030_v31, %s4214_s4 }
 0x579   :  { %v1512_v48 = vpop.permute.xlu0 %1511 }
 0x57a   :  { %v1517_v34 = vmul.f32 %v1512_v48, %v1466_v57 }
 0x57c   :  { %1520 = vrot.lane.b32.xlu2 %v1517_v34, %s4215_s20 }
 0x5b7   :  { %v1514_v44 = vpop.permute.xlu1 %1513 }
 0x5b8   :  { %v5406_v55 = vmul.f32 %v1514_v44, %v1481_v23 }
 0x5ba   :  { %1531 = vrot.lane.b32.xlu0 %v5406_v55, %s4215_s20 }
 0x5d6   :  { %v5410_v0 = vpop.permute.xlu2 %1520 }
 0x5d7   :  { %3787 = vmatmul.msk.f32.vlgmr.msra.gmra.mxu3 %vm1211_vm1, %v5410_v0 }
 0x62c   :  { %v1532_v22 = vpop.permute.xlu0 %1531 }
 0x62d   :  { %3788 = vmatmul.msk.f32.gmra.mxu3 %vm1211_vm1, %v1532_v22 }
 0x65a   :  { %v1554_v42 = vpop.f32.mrf.mxu3 }
 0x65b   :  { %v1560_v18 = vadd.f32 %v1554_v42, %v5417_v32 }
 0x65d   :  { %4031 = vtanh.f32 %v1560_v18  ;;  %v3789_v51 = vmul.f32 -1.442695, %v1560_v18 }
 0x65f   :  { %4033 = vpow2.f32 %v3789_v51 }
 0x663   :  { %v4032_v41 = vpop.eup %4031 }
 0x664   :  { %1606 = vrot.lane.b32.xlu1 %v4032_v41, %s4214_s4 }
 0x665   :  { %v4034_v12 = vpop.eup %4033 }
 0x666   :  { %v1568_v13 = vadd.f32 1.0, %v4034_v12 }
 0x668   :  { %v1581_v63 = vand.u32 2147483648, %v1568_v13  ;;  %vm1575_vm4 = vweird.f32 %v1568_v13  ;;  %v1579_v5 = vand.u32 2147483647, %v1568_v13 }
 0x66a   :  { %v1582_v6 = vor.u32 1.1754944e-38, %v1581_v63  ;;  %vm1580_vm6 = vcmp.eq.f32.partialorder %v1579_v5, 8.507059e+37 }
 0x6b0   :  { %v1557_v24 = vpop.f32.mrf.mxu3 }
 0x6b1   :  { %v1561_v25 = vadd.f32 %v1557_v24, %v5422_v29 }
 0x6b3   :  { %4035 = vtanh.f32 %v1561_v25  ;;  %v3790_v57 = vmul.f32 -1.442695, %v1561_v25 }
 0x6b4   :  { %4037 = vrcp.f32 %v1568_v13 }
 0x6b5   :  { %4039 = vpow2.f32 %v3790_v57 }
 0x6b9   :  { %v4036_v17 = vpop.eup %4035 }
 0x6ba   :  { %1608 = vrot.lane.b32.xlu2 %v4036_v17, %s4214_s4  ;;  %v4038_v45 = vpop.eup %4037 }
 0x6bb   :  { %v1571_v21 = vmul.f32 %v4038_v45, %v1568_v13  ;;  %vm1576_vm3 = vweird.f32 %v4038_v45  ;;  %v4040_v1 = vpop.eup %4039 }
 0x6bc   :  { %vm1577_vm5 = vmor %vm1575_vm4, %vm1576_vm3  ;;  %v1569_v37 = vadd.f32 1.0, %v4040_v1 }
 0x6bd   :  { %v1572_v8 = vsub.f32 1.0, %v1571_v21 }
 0x6be   :  { %4041 = vrcp.f32 %v1569_v37  ;;  %v1596_v49 = vand.u32 2147483648, %v1569_v37  ;;  %vm1590_vm8 = vweird.f32 %v1569_v37  ;;  %v1594_v16 = vand.u32 2147483647, %v1569_v37 }
 0x6bf   :  { %v1573_v20 = vmul.f32 %v4038_v45, %v1572_v8 }
 0x6c0   :  { %v1597_v10 = vor.u32 1.1754944e-38, %v1596_v49  ;;  %vm1595_vm10 = vcmp.eq.f32.partialorder %v1594_v16, 8.507059e+37 }
 0x6c1   :  { %v1574_v14 = vadd.f32 %v4038_v45, %v1573_v20 }
 0x6c3   :  { %v1578_v2 = vsel %vm1577_vm5, %v4038_v45, %v1574_v14 }
 0x6c4   :  { %v1583_v35 = vsel %vm1580_vm6, %v1582_v6, %v1578_v2  ;;  %v4042_v47 = vpop.eup %4041 }
 0x6c5   :  { %v1586_v15 = vmul.f32 %v4042_v47, %v1569_v37  ;;  %vm1591_vm7 = vweird.f32 %v4042_v47  ;;  %v1602_v52 = vmul.f32 %v1583_v35, %v5396_v62 }
 0x6c6   :  { %vm1592_vm9 = vmor %vm1590_vm8, %vm1591_vm7 }
 0x6c7   :  { %v1587_v36 = vsub.f32 1.0, %v1586_v15 }
 0x6c9   :  { %v1588_v26 = vmul.f32 %v4042_v47, %v1587_v36 }
 0x6cb   :  { %v1589_v58 = vadd.f32 %v4042_v47, %v1588_v26 }
 0x6cd   :  { %v1593_v7 = vsel %vm1592_vm9, %v4042_v47, %v1589_v58 }
 0x6ce   :  { %v1598_v4 = vsel %vm1595_vm10, %v1597_v10, %v1593_v7 }
 0x6cf   :  { %v1603_v39 = vmul.f32 %v1598_v4, %v5401_v54 }
 0x6d6   :  { %v1607_v46 = vpop.permute.xlu1 %1606 }
 0x6d7   :  { %v1612_v56 = vmul.f32 %v1607_v46, %v1583_v35 }
 0x6d9   :  { %1616 = vrot.lane.b32.xlu0 %v1612_v56, %s4214_s4 }
 0x714   :  { %v1609_v60 = vpop.permute.xlu2 %1608 }
 0x715   :  { %v1613_v38 = vmul.f32 %v1609_v60, %v1598_v4 }
 0x717   :  { %1618 = vrot.lane.b32.xlu1 %v1613_v38, %s4214_s4 }
 0x74b   :  { %v1617_v23 = vpop.permute.xlu0 %1616 }
 0x74c   :  { %v5429_v28 = vadd.f32 %v1617_v23, %v1602_v52 }
 0x74e   :  { %4043 = vtanh.f32 %v5429_v28 }
 0x754   :  { %v4044_v9 = vpop.eup %4043 }
 0x755   :  { %1628 = vrot.lane.b32.xlu2 %v4044_v9, %s4214_s4 }
 0x789   :  { %v1619_v61 = vpop.permute.xlu1 %1618 }
 0x78a   :  { %v5434_v50 = vadd.f32 %v1619_v61, %v1603_v39 }
 0x78c   :  { %4045 = vtanh.f32 %v5434_v50 }
 0x792   :  { %v4046_v53 = vpop.eup %4045 }
 0x793   :  { %1630 = vrot.lane.b32.xlu0 %v4046_v53, %s4214_s4 }
 0x7af   :  { %v1629_v31 = vpop.permute.xlu2 %1628 }
 0x7b0   :  { %v1634_v62 = vmul.f32 %v1629_v31, %v1583_v35 }
 0x7b2   :  { %1637 = vrot.lane.b32.xlu1 %v1634_v62, %s4215_s20 }
 0x805   :  { %v1631_v48 = vpop.permute.xlu0 %1630 }
 0x806   :  { %v5439_v34 = vmul.f32 %v1631_v48, %v1598_v4 }
 0x808   :  { %1648 = vrot.lane.b32.xlu2 %v5439_v34, %s4215_s20 }
 0x824   :  { %v5443_v44 = vpop.permute.xlu1 %1637 }
 0x825   :  { %3791 = vmatmul.msk.f32.vlgmr.msrb.gmra.mxu1 %vm1211_vm1, %v5443_v44 }
 0x862   :  { %v1649_v54 = vpop.permute.xlu2 %1648 }
 0x863   :  { %3792 = vmatmul.msk.f32.gmra.mxu1 %vm1211_vm1, %v1649_v54 }
 0x8a2   :  { %v1671_v22 = vpop.f32.mrf.mxu1 }
 0x8a3   :  { %v1677_v42 = vadd.f32 %v1671_v22, %v5341_v30 }
 0x8a5   :  { %4047 = vtanh.f32 %v1677_v42  ;;  %v3793_v24 = vmul.f32 -1.442695, %v1677_v42 }
 0x8ab   :  { %v4048_v18 = vpop.eup %4047 }
 0x8ac   :  { %1723 = vrot.lane.b32.xlu0 %v4048_v18, %s4214_s4 }
 0x8e0   :  { %v1674_v41 = vpop.f32.mrf.mxu1 }
 0x8e1   :  { %v1678_v51 = vadd.f32 %v1674_v41, %v5344_v19 }
 0x8e3   :  { %4049 = vtanh.f32 %v1678_v51  ;;  %v3794_v35 = vmul.f32 -1.442695, %v1678_v51 }
 0x8e4   :  { %4051 = vpow2.f32 %v3793_v24 }
 0x8e9   :  { %v4050_v33 = vpop.eup %4049 }
 0x8ea   :  { %1725 = vrot.lane.b32.xlu1 %v4050_v33, %s4214_s4  ;;  %v4052_v25 = vpop.eup %4051 }
 0x8eb   :  { %v1685_v12 = vadd.f32 1.0, %v4052_v25 }
 0x8ed   :  { %4053 = vrcp.f32 %v1685_v12  ;;  %v1698_v20 = vand.u32 2147483648, %v1685_v12  ;;  %vm1692_vm12 = vweird.f32 %v1685_v12  ;;  %v1696_v14 = vand.u32 2147483647, %v1685_v12 }
 0x8ee   :  { %4055 = vpow2.f32 %v3794_v35 }
 0x8ef   :  { %v1699_v5 = vor.u32 1.1754944e-38, %v1698_v20  ;;  %vm1697_vm14 = vcmp.eq.f32.partialorder %v1696_v14, 8.507059e+37 }
 0x8f3   :  { %v4054_v13 = vpop.eup %4053 }
 0x8f4   :  { %v1688_v17 = vmul.f32 %v4054_v13, %v1685_v12  ;;  %vm1693_vm11 = vweird.f32 %v4054_v13  ;;  %v4056_v56 = vpop.eup %4055 }
 0x8f5   :  { %vm1694_vm13 = vmor %vm1692_vm12, %vm1693_vm11  ;;  %v1686_v57 = vadd.f32 1.0, %v4056_v56  ;;  %vm1410_vm12 = vcmask 523264  }
 0x8f6   :  { %v1689_v45 = vsub.f32 1.0, %v1688_v17 }
 0x8f7   :  { %4057 = vrcp.f32 %v1686_v57  ;;  %v1713_v26 = vand.u32 2147483648, %v1686_v57  ;;  %vm1707_vm0 = vweird.f32 %v1686_v57  ;;  %v1711_v58 = vand.u32 2147483647, %v1686_v57 }
 0x8f8   :  { %v1690_v21 = vmul.f32 %v4054_v13, %v1689_v45 }
 0x8f9   :  { %v1714_v16 = vor.u32 1.1754944e-38, %v1713_v26  ;;  %vm1712_vm3 = vcmp.eq.f32.partialorder %v1711_v58, 8.507059e+37 }
 0x8fa   :  { %v1691_v8 = vadd.f32 %v4054_v13, %v1690_v21 }
 0x8fc   :  { %v1695_v63 = vsel %vm1694_vm13, %v4054_v13, %v1691_v8 }
 0x8fd   :  { %v1700_v2 = vsel %vm1697_vm14, %v1699_v5, %v1695_v63  ;;  %v4058_v1 = vpop.eup %4057 }
 0x8fe   :  { %v1703_v37 = vmul.f32 %v4058_v1, %v1686_v57  ;;  %vm1708_vm15 = vweird.f32 %v4058_v1  ;;  %v1719_v4 = vmul.f32 %v1700_v2, %v5429_v28 }
 0x8ff   :  { %vm1709_vm2 = vmor %vm1707_vm0, %vm1708_vm15 }
 0x900   :  { %v1704_v47 = vsub.f32 1.0, %v1703_v37 }
 0x902   :  { %v1705_v15 = vmul.f32 %v4058_v1, %v1704_v47 }
 0x904   :  { %v1706_v36 = vadd.f32 %v4058_v1, %v1705_v15 }
 0x906   :  { %v1710_v49 = vsel %vm1709_vm2, %v4058_v1, %v1706_v36 }
 0x907   :  { %v1715_v10 = vsel %vm1712_vm3, %v1714_v16, %v1710_v49 }
 0x908   :  { %v1720_v9 = vmul.f32 %v1715_v10, %v5434_v50 }
 0x91e   :  { %v1724_v6 = vpop.permute.xlu0 %1723 }
 0x91f   :  { %v1729_v46 = vmul.f32 %v1724_v6, %v1700_v2 }
 0x921   :  { %1733 = vrot.lane.b32.xlu2 %v1729_v46, %s4214_s4 }
 0x95c   :  { %v1726_v7 = vpop.permute.xlu1 %1725 }
 0x95d   :  { %v1730_v60 = vmul.f32 %v1726_v7, %v1715_v10 }
 0x95f   :  { %1735 = vrot.lane.b32.xlu0 %v1730_v60, %s4214_s4 }
 0x97b   :  { %v1734_v38 = vpop.permute.xlu2 %1733 }
 0x97c   :  { %v5455_v52 = vadd.f32 %v1734_v38, %v1719_v4 }
 0x97e   :  { %4059 = vtanh.f32 %v5455_v52 }
 0x984   :  { %v4060_v23 = vpop.eup %4059 }
 0x985   :  { %1745 = vrot.lane.b32.xlu1 %v4060_v23, %s4214_s4 }
 0x9d1   :  { %v1736_v39 = vpop.permute.xlu0 %1735 }
 0x9d2   :  { %v5460_v61 = vadd.f32 %v1736_v39, %v1720_v9 }
 0x9d4   :  { %4061 = vtanh.f32 %v5460_v61 }
 0x9da   :  { %v4062_v53 = vpop.eup %4061 }
 0x9db   :  { %1747 = vrot.lane.b32.xlu2 %v4062_v53, %s4214_s4 }
 0x9f7   :  { %v1746_v31 = vpop.permute.xlu1 %1745 }
 0x9f8   :  { %v1751_v28 = vmul.f32 %v1746_v31, %v1700_v2 }
 0x9fa   :  { %1754 = vrot.lane.b32.xlu0 %v1751_v28, %s4215_s20 }
 0xa35   :  { %v1748_v62 = vpop.permute.xlu2 %1747 }
 0xa36   :  { %v5465_v48 = vmul.f32 %v1748_v62, %v1715_v10  ;;  %v2245_v62 = vld [vmem:[%s6273_s8 + $0x30] sm:$0xff] }
 0xa38   :  { %1765 = vrot.lane.b32.xlu1 %v5465_v48, %s4215_s20 }
 0xa6c   :  { %v5469_v54 = vpop.permute.xlu0 %1754 }
 0xa6d   :  { %3795 = vmatmul.msk.f32.vlgmr.msrb.gmra.mxu2 %vm1211_vm1, %v5469_v54 }
 0xaaa   :  { %v1766_v50 = vpop.permute.xlu1 %1765 }
 0xaab   :  { %3796 = vmatmul.msk.f32.gmra.mxu2 %vm1211_vm1, %v1766_v50 }
 0xaf0   :  { %v1788_v22 = vpop.f32.mrf.mxu2 }
 0xaf1   :  { %v1794_v42 = vadd.f32 %v1788_v22, %v5344_v19  ;;  %v2243_v22 = vld [vmem:[%s6273_s8 + $0x20] sm:$0xff] }
 0xaf3   :  { %4063 = vtanh.f32 %v1794_v42  ;;  %v3797_v41 = vmul.f32 -1.442695, %v1794_v42 }
 0xaf5   :  { %4065 = vpow2.f32 %v3797_v41 }
 0xaf9   :  { %v4064_v18 = vpop.eup %4063 }
 0xafa   :  { %1840 = vrot.lane.b32.xlu2 %v4064_v18, %s4214_s4 }
 0xafb   :  { %v4066_v24 = vpop.eup %4065 }
 0xafc   :  { %v1802_v25 = vadd.f32 1.0, %v4066_v24  ;;  %v2239_v24 = vld [vmem:[%s6273_s8] sm:$0xff] }
 0xafe   :  { %v1815_v8 = vand.u32 2147483648, %v1802_v25  ;;  %vm1809_vm5 = vweird.f32 %v1802_v25  ;;  %v1813_v20 = vand.u32 2147483647, %v1802_v25 }
 0xb00   :  { %v1816_v63 = vor.u32 1.1754944e-38, %v1815_v8  ;;  %vm1814_vm7 = vcmp.eq.f32.partialorder %v1813_v20, 8.507059e+37 }
 0xb2e   :  { %v1791_v51 = vpop.f32.mrf.mxu2 }
 0xb2f   :  { %v1795_v33 = vadd.f32 %v1791_v51, %v5341_v30  ;;  %v2242_v51 = vld [vmem:[%s6273_s8 + $0x18] sm:$0xff] }
 0xb31   :  { %4067 = vtanh.f32 %v1795_v33  ;;  %v3798_v6 = vmul.f32 -1.442695, %v1795_v33  ;;  %v2241_v33 = vld [vmem:[%s6273_s8 + $0x10] sm:$0xff] }
 0xb32   :  { %4069 = vrcp.f32 %v1802_v25 }
 0xb33   :  { %4071 = vpow2.f32 %v3798_v6 }
 0xb37   :  { %v4068_v12 = vpop.eup %4067 }
 0xb38   :  { %1842 = vrot.lane.b32.xlu0 %v4068_v12, %s4214_s4  ;;  %v4070_v13 = vpop.eup %4069 }
 0xb39   :  { %v1805_v17 = vmul.f32 %v4070_v13, %v1802_v25  ;;  %vm1810_vm4 = vweird.f32 %v4070_v13  ;;  %v4072_v46 = vpop.eup %4071 }
 0xb3a   :  { %vm1811_vm6 = vmor %vm1809_vm5, %vm1810_vm4  ;;  %v1803_v35 = vadd.f32 1.0, %v4072_v46 }
 0xb3b   :  { %v1806_v45 = vsub.f32 1.0, %v1805_v17 }
 0xb3c   :  { %4073 = vrcp.f32 %v1803_v35  ;;  %v1830_v15 = vand.u32 2147483648, %v1803_v35  ;;  %vm1824_vm9 = vweird.f32 %v1803_v35  ;;  %v1828_v36 = vand.u32 2147483647, %v1803_v35 }
 0xb3d   :  { %v1807_v19 = vmul.f32 %v4070_v13, %v1806_v45 }
 0xb3e   :  { %v1831_v58 = vor.u32 1.1754944e-38, %v1830_v15  ;;  %vm1829_vm11 = vcmp.eq.f32.partialorder %v1828_v36, 8.507059e+37 }
 0xb3f   :  { %v1808_v21 = vadd.f32 %v4070_v13, %v1807_v19 }
 0xb41   :  { %v1812_v14 = vsel %vm1811_vm6, %v4070_v13, %v1808_v21 }
 0xb42   :  { %v1817_v5 = vsel %vm1814_vm7, %v1816_v63, %v1812_v14  ;;  %v4074_v56 = vpop.eup %4073 }
 0xb43   :  { %v1820_v57 = vmul.f32 %v4074_v56, %v1803_v35  ;;  %vm1825_vm8 = vweird.f32 %v4074_v56  ;;  %v1836_v10 = vmul.f32 %v1817_v5, %v5455_v52 }
 0xb44   :  { %vm1826_vm10 = vmor %vm1824_vm9, %vm1825_vm8 }
 0xb45   :  { %v1821_v1 = vsub.f32 1.0, %v1820_v57 }
 0xb47   :  { %v1822_v37 = vmul.f32 %v4074_v56, %v1821_v1 }
 0xb49   :  { %v1823_v47 = vadd.f32 %v4074_v56, %v1822_v37 }
 0xb4b   :  { %v1827_v26 = vsel %vm1826_vm10, %v4074_v56, %v1823_v47 }
 0xb4c   :  { %v1832_v16 = vsel %vm1829_vm11, %v1831_v58, %v1827_v26  ;;  %v4217_v58 = vmov 0  }
 0xb4d   :  { %v1837_v23 = vmul.f32 %v1832_v16, %v5460_v61  ;;  %v2246_v61 = vld [vmem:[%s6273_s8 + $0x38] sm:$0xff]  ;;  %3990 = vset.pattern.permute.xlu2 %v4217_v58  ;;  %3991 = vset.pattern.permute.xlu1 %v4217_v58 }
 0xb4e   :  { %2283 = vmatpush.msra.mxu3 %v2246_v61  ;;  %3992 = vset.pattern.permute.xlu0 %v4217_v58  ;;  %v5585_v61 = vld [vmem:[%s6276_s11 + $0x48] sm:$0xff] }
 0xb50   :  { %2284 = vmatpush.msra.mxu3 %v2245_v62 }
 0xb54   :  { %v1841_v30 = vpop.permute.xlu2 %1840 }
 0xb55   :  { %v1846_v2 = vmul.f32 %v1841_v30, %v1817_v5 }
 0xb57   :  { %1850 = vrot.lane.b32.xlu1 %v1846_v2, %s4214_s4 }
 0xbaa   :  { %v1843_v49 = vpop.permute.xlu0 %1842 }
 0xbab   :  { %v1847_v7 = vmul.f32 %v1843_v49, %v1832_v16 }
 0xbad   :  { %1852 = vrot.lane.b32.xlu2 %v1847_v7, %s4214_s4  ;;  %v5541_v7 = vld [vmem:[%s6276_s11 + $0x78] sm:$0xff] }
 0xbae   :  { %2414 = vmatpush.msra.mxu0 %v5541_v7  ;;  %2501 = vmatpush.msrb.mxu2 %v5541_v7 }
 0xbc9   :  { %v1851_v60 = vpop.permute.xlu1 %1850 }
 0xbca   :  { %v5481_v4 = vadd.f32 %v1851_v60, %v1836_v10  ;;  %v5546_v10 = vld [vmem:[%s6276_s11 + $0x70] sm:$0xff]  ;;  %v5553_v60 = vld [vmem:[%s6276_s11 + $0x68] sm:$0xff] }
 0xbcb   :  { %2415 = vmatpush.msra.mxu0 %v5546_v10  ;;  %2502 = vmatpush.msrb.mxu2 %v5546_v10 }
 0xbcc   :  { %4075 = vtanh.f32 %v5481_v4 }
 0xbcd   :  { %2416 = vmatpush.msra.mxu0 %v5553_v60  ;;  %2503 = vmatpush.msrb.mxu2 %v5553_v60 }
 0xbd2   :  { %v4076_v38 = vpop.eup %4075 }
 0xbd3   :  { %1862 = vrot.lane.b32.xlu0 %v4076_v38, %s4214_s4 }
 0xc07   :  { %v1853_v9 = vpop.permute.xlu2 %1852 }
 0xc08   :  { %v5486_v39 = vadd.f32 %v1853_v9, %v1837_v23  ;;  %v5561_v23 = vld [vmem:[%s6276_s11 + $0x60] sm:$0xff]  ;;  %v5569_v9 = vld [vmem:[%s6276_s11 + $0x58] sm:$0xff] }
 0xc09   :  { %2417 = vmatpush.msra.mxu0 %v5561_v23  ;;  %2504 = vmatpush.msrb.mxu2 %v5561_v23 }
 0xc0a   :  { %4077 = vtanh.f32 %v5486_v39 }
 0xc0b   :  { %2418 = vmatpush.msra.mxu0 %v5569_v9  ;;  %2505 = vmatpush.msrb.mxu2 %v5569_v9 }
 0xc10   :  { %v4078_v53 = vpop.eup %4077 }
 0xc11   :  { %1864 = vrot.lane.b32.xlu1 %v4078_v53, %s4214_s4 }
 0xc19   :  { %1406 = vrot.lane.b32.xlu1 %v5366_v43, %s4216_s1  ;;  %v2244_v43 = vld [vmem:[%s6273_s8 + $0x28] sm:$0xff] }
 0xc1a   :  { %2285 = vmatpush.msra.mxu3 %v2244_v43  ;;  %v5593_v43 = vld [vmem:[%s6276_s11 + $0x40] sm:$0xff] }
 0xc1c   :  { %2286 = vmatpush.msra.mxu3 %v2243_v22 }
 0xc1e   :  { %2287 = vmatpush.msra.mxu3 %v2242_v51 }
 0xc20   :  { %2288 = vmatpush.msra.mxu3 %v2241_v33 }
 0xc45   :  { %v1863_v52 = vpop.permute.xlu0 %1862 }
 0xc46   :  { %v1868_v31 = vmul.f32 %v1863_v52, %v1817_v5  ;;  %v5577_v52 = vld [vmem:[%s6276_s11 + $0x50] sm:$0xff] }
 0xc47   :  { %2419 = vmatpush.msra.mxu0 %v5577_v52  ;;  %2506 = vmatpush.msrb.mxu2 %v5577_v52 }
 0xc48   :  { %1871 = vrot.lane.b32.xlu2 %v1868_v31, %s4215_s20 }
 0xc49   :  { %2420 = vmatpush.msra.mxu0 %v5585_v61  ;;  %2507 = vmatpush.msrb.mxu2 %v5585_v61 }
 0xc4b   :  { %2421 = vmatpush.msra.mxu0 %v5593_v43  ;;  %2508 = vmatpush.msrb.mxu2 %v5593_v43 }
 0xc83   :  { %v1865_v28 = vpop.permute.xlu1 %1864 }
 0xc84   :  { %v5499_v50 = vmul.f32 %v1865_v28, %v1832_v16 }
 0xc86   :  { %1882 = vrot.lane.b32.xlu0 %v5499_v50, %s4215_s20 }
 0xc8b   :  { %v1407_v42 = vpop.permute.xlu1 %1406 }
 0xc8c   :  { %v1409_v18 = vsel %vm1211_vm1, %v5370_v3, %v1407_v42  ;;  %v2240_v3 = vld [vmem:[%s6273_s8 + $0x8] sm:$0xff]  ;;  %s4218_s8 = smov 127  }
 0xc8d   :  { %1411 = vst.msk [vmem:[#allocation2] sm:$0xff] %vm1410_vm12, %v1409_v18  ;;  %2289 = vmatpush.msra.mxu3 %v2240_v3 }
 0xc8f   :  { %2290 = vmatpush.msra.mxu3 %v2239_v24 }
 0xc94   :  { %v2231_v12 = vld [vmem:[#allocation2] sm:$0xff] }
 0xca2   :  { %v5512_v41 = vpop.permute.xlu2 %1871 }
 0xca3   :  { %3799 = vmatmul.msk.f32.vlgmr.msrb.gmra.mxu3 %vm1211_vm1, %v5512_v41 }
 0xca4   :  { %2753 = vmatpush.msrb.mxu3 %v5541_v7 }
 0xca6   :  { %2754 = vmatpush.msrb.mxu3 %v5546_v10 }
 0xca8   :  { %2755 = vmatpush.msrb.mxu3 %v5553_v60 }
 0xcaa   :  { %2756 = vmatpush.msrb.mxu3 %v5561_v23 }
 0xcac   :  { %2757 = vmatpush.msrb.mxu3 %v5569_v9 }
 0xcae   :  { %2758 = vmatpush.msrb.mxu3 %v5577_v52 }
 0xcb0   :  { %2759 = vmatpush.msrb.mxu3 %v5585_v61 }
 0xcb2   :  { %2760 = vmatpush.msrb.mxu3 %v5593_v43 }
 0xcf8   :  { %v1883_v25 = vpop.permute.xlu0 %1882 }
 0xcf9   :  { %3800 = vmatmul.msk.f32.gmra.mxu3 %vm1211_vm1, %v1883_v25  ;;  %v5613_v25 = vld [vmem:[%s6267_s2] sm:$0xff] }
 0xd01   :  { %3811 = vmatmul.msk.f32.vlgmr.msra.gmra.mxu3 %vm1410_vm12, %v2231_v12 }
 0xd26   :  { %v1905_v13 = vpop.f32.mrf.mxu3 }
 0xd27   :  { %v1911_v17 = vadd.f32 %v1905_v13, %v5422_v29  ;;  %v5621_v13 = vld [vmem:[%s6276_s11 + $0x38] sm:$0xff] }
 0xd28   :  { %2422 = vmatpush.msra.mxu0 %v5621_v13  ;;  %2509 = vmatpush.msrb.mxu2 %v5621_v13 }
 0xd29   :  { %4079 = vtanh.f32 %v1911_v17  ;;  %v3801_v19 = vmul.f32 -1.442695, %v1911_v17  ;;  %2761 = vmatpush.msrb.mxu3 %v5621_v13  ;;  %v5635_v17 = vld [vmem:[%s6276_s11 + $0x28] sm:$0xff] }
 0xd2b   :  { %4081 = vpow2.f32 %v3801_v19  ;;  %v5652_v19 = vld [vmem:[%s6276_s11 + $0x18] sm:$0xff] }
 0xd2f   :  { %v4080_v45 = vpop.eup %4079 }
 0xd30   :  { %1957 = vrot.lane.b32.xlu2 %v4080_v45, %s4214_s4  ;;  %v5641_v45 = vld [vmem:[%s6276_s11 + $0x20] sm:$0xff] }
 0xd31   :  { %v4082_v21 = vpop.eup %4081 }
 0xd32   :  { %v1919_v8 = vadd.f32 1.0, %v4082_v21  ;;  %v5660_v21 = vld [vmem:[%s6276_s11 + $0x10] sm:$0xff] }
 0xd34   :  { %4083 = vrcp.f32 %v1919_v8  ;;  %v1932_v29 = vand.u32 2147483648, %v1919_v8  ;;  %vm1926_vm14 = vweird.f32 %v1919_v8  ;;  %v1930_v35 = vand.u32 2147483647, %v1919_v8 }
 0xd36   :  { %v1933_v57 = vor.u32 1.1754944e-38, %v1932_v29  ;;  %vm1931_vm0 = vcmp.eq.f32.partialorder %v1930_v35, 8.507059e+37 }
 0xd3a   :  { %v4084_v20 = vpop.eup %4083 }
 0xd3b   :  { %v1922_v14 = vmul.f32 %v4084_v20, %v1919_v8  ;;  %vm1927_vm13 = vweird.f32 %v4084_v20  ;;  %v5668_v8 = vld [vmem:[%s6276_s11 + $0x8] sm:$0xff] }
 0xd3c   :  { %vm1928_vm15 = vmor %vm1926_vm14, %vm1927_vm13 }
 0xd3d   :  { %v1923_v63 = vsub.f32 1.0, %v1922_v14 }
 0xd3f   :  { %v1924_v2 = vmul.f32 %v4084_v20, %v1923_v63 }
 0xd41   :  { %v1925_v6 = vadd.f32 %v4084_v20, %v1924_v2 }
 0xd43   :  { %v1929_v56 = vsel %vm1928_vm15, %v4084_v20, %v1925_v6  ;;  %v5675_v20 = vld [vmem:[%s6276_s11] sm:$0xff] }
 0xd44   :  { %v5534_v37 = vsel %vm1931_vm0, %v1933_v57, %v1929_v56 }
 0xd45   :  { %v1953_v33 = vmul.f32 %v5534_v37, %v5481_v4  ;;  %v5628_v4 = vld [vmem:[%s6276_s11 + $0x30] sm:$0xff] }
 0xd46   :  { %2423 = vmatpush.msra.mxu0 %v5628_v4  ;;  %2510 = vmatpush.msrb.mxu2 %v5628_v4 }
 0xd47   :  { %2762 = vmatpush.msrb.mxu3 %v5628_v4 }
 0xd48   :  { %2424 = vmatpush.msra.mxu0 %v5635_v17  ;;  %2511 = vmatpush.msrb.mxu2 %v5635_v17 }
 0xd49   :  { %2763 = vmatpush.msrb.mxu3 %v5635_v17 }
 0xd4a   :  { %2425 = vmatpush.msra.mxu0 %v5641_v45  ;;  %2512 = vmatpush.msrb.mxu2 %v5641_v45 }
 0xd4b   :  { %2764 = vmatpush.msrb.mxu3 %v5641_v45 }
 0xd4c   :  { %2426 = vmatpush.msra.mxu0 %v5652_v19  ;;  %2513 = vmatpush.msrb.mxu2 %v5652_v19 }
 0xd4d   :  { %2765 = vmatpush.msrb.mxu3 %v5652_v19 }
 0xd4e   :  { %2427 = vmatpush.msra.mxu0 %v5660_v21  ;;  %2514 = vmatpush.msrb.mxu2 %v5660_v21 }
 0xd4f   :  { %2766 = vmatpush.msrb.mxu3 %v5660_v21 }
 0xd50   :  { %2428 = vmatpush.msra.mxu0 %v5668_v8  ;;  %2515 = vmatpush.msrb.mxu2 %v5668_v8 }
 0xd51   :  { %2767 = vmatpush.msrb.mxu3 %v5668_v8 }
 0xd52   :  { %2429 = vmatpush.msra.mxu0 %v5675_v20  ;;  %2516 = vmatpush.msrb.mxu2 %v5675_v20 }
 0xd53   :  { %2768 = vmatpush.msrb.mxu3 %v5675_v20 }
 0xd54   :  { %2585 = vmatpush.msrb.mxu0 %v5541_v7 }
 0xd55   :  { %2921 = vmatpush.msra.mxu3 %v5541_v7 }
 0xd56   :  { %2586 = vmatpush.msrb.mxu0 %v5546_v10 }
 0xd57   :  { %2922 = vmatpush.msra.mxu3 %v5546_v10 }
 0xd58   :  { %2587 = vmatpush.msrb.mxu0 %v5553_v60 }
 0xd59   :  { %2923 = vmatpush.msra.mxu3 %v5553_v60 }
 0xd5a   :  { %2588 = vmatpush.msrb.mxu0 %v5561_v23 }
 0xd5b   :  { %2924 = vmatpush.msra.mxu3 %v5561_v23 }
 0xd5c   :  { %2589 = vmatpush.msrb.mxu0 %v5569_v9 }
 0xd5d   :  { %2925 = vmatpush.msra.mxu3 %v5569_v9 }
 0xd5e   :  { %2590 = vmatpush.msrb.mxu0 %v5577_v52 }
 0xd5f   :  { %2926 = vmatpush.msra.mxu3 %v5577_v52 }
 0xd60   :  { %2591 = vmatpush.msrb.mxu0 %v5585_v61 }
 0xd61   :  { %2927 = vmatpush.msra.mxu3 %v5585_v61 }
 0xd62   :  { %2592 = vmatpush.msrb.mxu0 %v5593_v43 }
 0xd63   :  { %2928 = vmatpush.msra.mxu3 %v5593_v43 }
 0xd64   :  { %2593 = vmatpush.msrb.mxu0 %v5621_v13 }
 0xd65   :  { %2929 = vmatpush.msra.mxu3 %v5621_v13 }
 0xd66   :  { %2594 = vmatpush.msrb.mxu0 %v5628_v4 }
 0xd67   :  { %2930 = vmatpush.msra.mxu3 %v5628_v4 }
 0xd68   :  { %2595 = vmatpush.msrb.mxu0 %v5635_v17 }
 0xd69   :  { %2931 = vmatpush.msra.mxu3 %v5635_v17 }
 0xd6a   :  { %2596 = vmatpush.msrb.mxu0 %v5641_v45 }
 0xd6b   :  { %2932 = vmatpush.msra.mxu3 %v5641_v45 }
 0xd6c   :  { %2597 = vmatpush.msrb.mxu0 %v5652_v19 }
 0xd6d   :  { %2933 = vmatpush.msra.mxu3 %v5652_v19 }
 0xd6e   :  { %2598 = vmatpush.msrb.mxu0 %v5660_v21 }
 0xd6f   :  { %2934 = vmatpush.msra.mxu3 %v5660_v21 }
 0xd70   :  { %2599 = vmatpush.msrb.mxu0 %v5668_v8 }
 0xd71   :  { %2935 = vmatpush.msra.mxu3 %v5668_v8 }
 0xd72   :  { %2600 = vmatpush.msrb.mxu0 %v5675_v20 }
 0xd73   :  { %2936 = vmatpush.msra.mxu3 %v5675_v20 }
 0xd7c   :  { %v1908_v30 = vpop.f32.mrf.mxu3 }
 0xd7d   :  { %v1912_v5 = vadd.f32 %v1908_v30, %v5417_v32 }
 0xd7f   :  { %4085 = vtanh.f32 %v1912_v5  ;;  %v3802_v32 = vmul.f32 -1.442695, %v1912_v5  ;;  %v5716_v5 = vld [vmem:[%s6274_s9] ss:$0 sm:$0xff] }
 0xd81   :  { %4087 = vpow2.f32 %v3802_v32 }
 0xd84   :  { %v2292_v2 = vpop.f32.mrf.mxu3 }
 0xd85   :  { %v4086_v46 = vpop.eup %4085 }
 0xd86   :  { %1959 = vrot.lane.b32.xlu0 %v4086_v46, %s4214_s4 }
 0xd87   :  { %v4088_v15 = vpop.eup %4087 }
 0xd88   :  { %v1920_v36 = vadd.f32 1.0, %v4088_v15  ;;  %v2354_v15 = vld [vmem:[%s6278_s13 + $0x30] sm:$0xff] }
 0xd8a   :  { %v1958_v1 = vpop.permute.xlu2 %1957  ;;  %4089 = vrcp.f32 %v1920_v36  ;;  %v1947_v31 = vand.u32 2147483648, %v1920_v36  ;;  %vm1941_vm3 = vweird.f32 %v1920_v36  ;;  %v1945_v28 = vand.u32 2147483647, %v1920_v36 }
 0xd8b   :  { %v1963_v47 = vmul.f32 %v1958_v1, %v5534_v37 }
 0xd8c   :  { %v1948_v22 = vor.u32 1.1754944e-38, %v1947_v31  ;;  %vm1946_vm5 = vcmp.eq.f32.partialorder %v1945_v28, 8.507059e+37  ;;  %v5770_v31 = vld [vmem:[%s6277_s12] ss:$0 sm:$0xff]  ;;  %v2350_v28 = vld [vmem:[%s6278_s13 + $0x10] sm:$0xff] }
 0xd8d   :  { %1967 = vrot.lane.b32.xlu1 %v1963_v47, %s4214_s4 }
 0xd90   :  { %v4090_v26 = vpop.eup %4089 }
 0xd91   :  { %v1937_v49 = vmul.f32 %v4090_v26, %v1920_v36  ;;  %vm1942_vm2 = vweird.f32 %v4090_v26  ;;  %v2351_v36 = vld [vmem:[%s6278_s13 + $0x18] sm:$0xff] }
 0xd92   :  { %vm1943_vm4 = vmor %vm1941_vm3, %vm1942_vm2 }
 0xd93   :  { %v1938_v16 = vsub.f32 1.0, %v1937_v49 }
 0xd95   :  { %v1939_v38 = vmul.f32 %v4090_v26, %v1938_v16  ;;  %v2352_v16 = vld [vmem:[%s6278_s13 + $0x20] sm:$0xff] }
 0xd97   :  { %v1940_v53 = vadd.f32 %v4090_v26, %v1939_v38  ;;  %v2353_v38 = vld [vmem:[%s6278_s13 + $0x28] sm:$0xff] }
 0xd99   :  { %v1944_v62 = vsel %vm1943_vm4, %v4090_v26, %v1940_v53  ;;  %v2348_v26 = vld [vmem:[%s6278_s13] sm:$0xff]  ;;  %v2349_v53 = vld [vmem:[%s6278_s13 + $0x8] sm:$0xff] }
 0xd9a   :  { %v5599_v18 = vsel %vm1946_vm5, %v1948_v22, %v1944_v62 }
 0xd9b   :  { %v1954_v14 = vmul.f32 %v5599_v18, %v5486_v39  ;;  %v5711_v39 = vld [vmem:[%s6275_s10] ss:$0 sm:$0xff] }
 0xd9c   :  { %v2293_v46 = vadd.f32 %v5711_v39, %v2292_v2 }
 0xdf8   :  { %v1960_v42 = vpop.permute.xlu0 %1959 }
 0xdf9   :  { %v1964_v51 = vmul.f32 %v1960_v42, %v5599_v18 }
 0xdfb   :  { %1969 = vrot.lane.b32.xlu2 %v1964_v51, %s4214_s4 }
 0xdff   :  { %v1968_v3 = vpop.permute.xlu1 %1967 }
 0xe00   :  { %v5608_v24 = vadd.f32 %v1968_v3, %v1953_v33 }
 0xe02   :  { %4091 = vtanh.f32 %v5608_v24 }
 0xe03   :  { %2406 = vperm.xlu2 %3990, %v5613_v25  }
 0xe08   :  { %v4092_v12 = vpop.eup %4091 }
 0xe09   :  { %1979 = vrot.lane.b32.xlu0 %v4092_v12, %s4214_s4 }
 0xe55   :  { %v1970_v63 = vpop.permute.xlu2 %1969 }
 0xe56   :  { %v5701_v30 = vadd.f32 %v1970_v63, %v1954_v14 }
 0xe58   :  { %4093 = vtanh.f32 %v5701_v30 }
 0xe5d   :  { %v2407_v6 = vpop.permute.xlu2 %2406 }
 0xe5e   :  { %v4094_v29 = vpop.eup %4093  ;;  %v2409_v35 = vmul.f32 %v5716_v5, %v2407_v6 }
 0xe5f   :  { %1981 = vrot.lane.b32.xlu1 %v4094_v29, %s4214_s4 }
 0xe60   :  { %v2410_v56 = vadd.f32 %v2409_v35, %v2293_v46 }
 0xe62   :  { %vm2411_vm6 = vcmp.gt.f32.partialorder %v2410_v56, 0.0  ;;  %v2412_v57 = vmul.f32 0.01, %v2410_v56 }
 0xe64   :  { %v2413_v1 = vsel %vm2411_vm6, %v2410_v56, %v2412_v57 }
 0xe65   :  { %2430 = vmatmul.f32.vlgmr.msra.gmra.mxu0 %v2413_v1 }
 0xe7b   :  { %v1980_v47 = vpop.permute.xlu0 %1979 }
 0xe7c   :  { %v1985_v32 = vmul.f32 %v1980_v47, %v5534_v37  ;;  %v2355_v37 = vld [vmem:[%s6278_s13 + $0x38] sm:$0xff] }
 0xe7d   :  { %2379 = vrot.lane.b32.xlu2 %v2355_v37, %s4218_s8 }
 0xe7e   :  { %1988 = vrot.lane.b32.xlu0 %v1985_v32, %s4215_s20 }
 0xe85   :  { %2373 = vrot.lane.b32.xlu2 %v2352_v16, %s4218_s8 }
 0xe86   :  { %2377 = vrot.lane.b32.xlu0 %v2354_v15, %s4218_s8 }
 0xe8d   :  { %2367 = vrot.lane.b32.xlu2 %v2349_v53, %s4218_s8 }
 0xe8e   :  { %2371 = vrot.lane.b32.xlu0 %v2351_v36, %s4218_s8 }
 0xe96   :  { %2365 = vrot.lane.b32.xlu0 %v2348_v26, %s4218_s8 }
 0xed1   :  { %v1982_v58 = vpop.permute.xlu1 %1981 }
 0xed2   :  { %v5751_v49 = vmul.f32 %v1982_v58, %v5599_v18 }
 0xed4   :  { %1999 = vrot.lane.b32.xlu1 %v5751_v49, %s4215_s20 }
 0xed7   :  { %v2380_v33 = vpop.permute.xlu2 %2379 }
 0xed8   :  { %v5784_v12 = vsub.f32 %v2355_v37, %v2380_v33 }
 0xeda   :  { %2452 = vmatpush.msrb.mxu1 %v5784_v12  ;;  %2788 = vmatpush.msra.mxu0 %v5784_v12 }
 0xedc   :  { %2375 = vrot.lane.b32.xlu1 %v2353_v38, %s4218_s8 }
 0xedf   :  { %v2374_v63 = vpop.permute.xlu2 %2373 }
 0xee0   :  { %v5795_v46 = vsub.f32 %v2352_v16, %v2374_v63 }
 0xee2   :  { %v2431_v62 = vpop.f32.mrf.mxu0 }
 0xee3   :  { %v2432_v22 = vadd.f32 %v5770_v31, %v2431_v62 }
 0xee4   :  { %2369 = vrot.lane.b32.xlu1 %v2350_v28, %s4218_s8 }
 0xee5   :  { %vm2434_vm7 = vcmp.gt.f32.partialorder %v2432_v22, 0.0  ;;  %v2435_v42 = vmul.f32 0.01, %v2432_v22 }
 0xee7   :  { %v2436_v18 = vsel %vm2434_vm7, %v2432_v22, %v2435_v42  ;;  %v2368_v56 = vpop.permute.xlu2 %2367 }
 0xee8   :  { %2437 = vst.msk [vmem:[#allocation3] sm:$0xff] %vm1410_vm12, %v2436_v18  ;;  %v5807_v32 = vsub.f32 %v2349_v53, %v2368_v56 }
 0xeec   :  { %1524 = vrot.lane.b32.xlu1 %v5406_v55, %s4216_s1 }
 0xef0   :  { %v5780_v51 = vpop.permute.xlu0 %1988 }
 0xef1   :  { %3803 = vmatmul.msk.f32.vlgmr.msra.gmra.mxu1 %vm1211_vm1, %v5780_v51 }
 0xef8   :  { %v2378_v3 = vpop.permute.xlu0 %2377 }
 0xef9   :  { %v5786_v14 = vsub.f32 %v2354_v15, %v2378_v3 }
 0xefb   :  { %2453 = vmatpush.msrb.mxu1 %v5786_v14  ;;  %2789 = vmatpush.msra.mxu0 %v5786_v14 }
 0xf00   :  { %v2372_v2 = vpop.permute.xlu0 %2371 }
 0xf01   :  { %v5797_v35 = vsub.f32 %v2351_v36, %v2372_v2 }
 0xf08   :  { %v2366_v1 = vpop.permute.xlu0 %2365 }
 0xf09   :  { %v5810_v15 = vsub.f32 %v2348_v26, %v2366_v1 }
 0xf46   :  { %v2000_v55 = vpop.permute.xlu1 %1999 }
 0xf47   :  { %3804 = vmatmul.msk.f32.gmra.mxu1 %vm1211_vm1, %v2000_v55 }
 0xf4e   :  { %v2376_v6 = vpop.permute.xlu1 %2375 }
 0xf4f   :  { %v5793_v29 = vsub.f32 %v2353_v38, %v2376_v6 }
 0xf51   :  { %2454 = vmatpush.msrb.mxu1 %v5793_v29  ;;  %2790 = vmatpush.msra.mxu0 %v5793_v29 }
 0xf53   :  { %2455 = vmatpush.msrb.mxu1 %v5795_v46  ;;  %2791 = vmatpush.msra.mxu0 %v5795_v46 }
 0xf55   :  { %2456 = vmatpush.msrb.mxu1 %v5797_v35  ;;  %2792 = vmatpush.msra.mxu0 %v5797_v35 }
 0xf56   :  { %v2370_v57 = vpop.permute.xlu1 %2369 }
 0xf57   :  { %v5805_v47 = vsub.f32 %v2350_v28, %v2370_v57 }
 0xf59   :  { %2457 = vmatpush.msrb.mxu1 %v5805_v47  ;;  %2793 = vmatpush.msra.mxu0 %v5805_v47 }
 0xf5b   :  { %2458 = vmatpush.msrb.mxu1 %v5807_v32  ;;  %2794 = vmatpush.msra.mxu0 %v5807_v32 }
 0xf5d   :  { %2459 = vmatpush.msrb.mxu1 %v5810_v15  ;;  %2795 = vmatpush.msra.mxu0 %v5810_v15 }
 0xf5e   :  { %3819 = vmatmul.msk.f32.vlgmr.msrb.gmra.mxu1 %vm1410_vm12, %v2436_v18  ;;  %v1525_v36 = vpop.permute.xlu1 %1524 }
 0xf5f   :  { %v1527_v37 = vsel %vm1211_vm1, %v5410_v0, %v1525_v36  ;;  %2536 = vmatpush.msra.mxu1 %v5784_v12 }
 0xf60   :  { %1528 = vst.msk [vmem:[#allocation2 + $0x8] sm:$0xff] %vm1410_vm12, %v1527_v37 }
 0xf61   :  { %2537 = vmatpush.msra.mxu1 %v5786_v14 }
 0xf63   :  { %2538 = vmatpush.msra.mxu1 %v5793_v29 }
 0xf65   :  { %2539 = vmatpush.msra.mxu1 %v5795_v46 }
 0xf67   :  { %v2232_v26 = vld [vmem:[#allocation2 + $0x8] sm:$0xff]  ;;  %2540 = vmatpush.msra.mxu1 %v5797_v35 }
 0xf68   :  { %3812 = vmatmul.msk.f32.gmra.mxu3 %vm1410_vm12, %v2232_v26 }
 0xf69   :  { %2541 = vmatpush.msra.mxu1 %v5805_v47 }
 0xf6b   :  { %2542 = vmatpush.msra.mxu1 %v5807_v32 }
 0xf6d   :  { %2543 = vmatpush.msra.mxu1 %v5810_v15 }
 0xf6e   :  { %v2022_v0 = vpop.f32.mrf.mxu1 }
 0xf6f   :  { %2620 = vmatpush.msrb.mxu1 %v5784_v12  ;;  %v2028_v58 = vadd.f32 %v2022_v0, %v5347_v11 }
 0xf71   :  { %2621 = vmatpush.msrb.mxu1 %v5786_v14  ;;  %4095 = vtanh.f32 %v2028_v58  ;;  %v3805_v38 = vmul.f32 -1.442695, %v2028_v58 }
 0xf73   :  { %2622 = vmatpush.msrb.mxu1 %v5793_v29  ;;  %4097 = vpow2.f32 %v3805_v38 }
 0xf75   :  { %2623 = vmatpush.msrb.mxu1 %v5795_v46 }
 0xf77   :  { %2624 = vmatpush.msrb.mxu1 %v5797_v35  ;;  %v4096_v16 = vpop.eup %4095 }
 0xf78   :  { %2074 = vrot.lane.b32.xlu2 %v4096_v16, %s4214_s4 }
 0xf79   :  { %2625 = vmatpush.msrb.mxu1 %v5805_v47  ;;  %v4098_v11 = vpop.eup %4097 }
 0xf7a   :  { %v2036_v53 = vadd.f32 1.0, %v4098_v11 }
 0xf7b   :  { %2626 = vmatpush.msrb.mxu1 %v5807_v32 }
 0xf7c   :  { %4099 = vrcp.f32 %v2036_v53  ;;  %v2049_v55 = vand.u32 2147483648, %v2036_v53  ;;  %vm2043_vm9 = vweird.f32 %v2036_v53  ;;  %v2047_v2 = vand.u32 2147483647, %v2036_v53 }
 0xf7d   :  { %2627 = vmatpush.msrb.mxu1 %v5810_v15 }
 0xf7e   :  { %v2050_v56 = vor.u32 1.1754944e-38, %v2049_v55  ;;  %vm2048_vm11 = vcmp.eq.f32.partialorder %v2047_v2, 8.507059e+37 }
 0xf82   :  { %v4100_v28 = vpop.eup %4099 }
 0xf83   :  { %v2039_v62 = vmul.f32 %v4100_v28, %v2036_v53  ;;  %vm2044_vm8 = vweird.f32 %v4100_v28 }
 0xf84   :  { %vm2045_vm10 = vmor %vm2043_vm9, %vm2044_vm8 }
 0xf85   :  { %v2040_v22 = vsub.f32 1.0, %v2039_v62 }
 0xf87   :  { %v2041_v33 = vmul.f32 %v4100_v28, %v2040_v22 }
 0xf89   :  { %v2042_v3 = vadd.f32 %v4100_v28, %v2041_v33 }
 0xf8b   :  { %v2046_v6 = vsel %vm2045_vm10, %v4100_v28, %v2042_v3 }
 0xf8c   :  { %v5842_v1 = vsel %vm2048_vm11, %v2050_v56, %v2046_v6 }
 0xf8d   :  { %v2070_v55 = vmul.f32 %v5842_v1, %v5608_v24 }
 0xfc4   :  { %v2025_v42 = vpop.f32.mrf.mxu1 }
 0xfc5   :  { %v2029_v18 = vadd.f32 %v2025_v42, %v5387_v27  ;;  %v2356_v27 = vld [vmem:[%s6279_s14] sm:$0x1] }
 0xfc7   :  { %4101 = vtanh.f32 %v2029_v18  ;;  %v3806_v37 = vmul.f32 -1.442695, %v2029_v18 }
 0xfc9   :  { %4103 = vpow2.f32 %v3806_v37 }
 0xfcd   :  { %v4102_v63 = vpop.eup %4101 }
 0xfce   :  { %2076 = vrot.lane.b32.xlu0 %v4102_v63, %s4214_s4 }
 0xfcf   :  { %v4104_v26 = vpop.eup %4103 }
 0xfd0   :  { %v2037_v0 = vadd.f32 1.0, %v4104_v26 }
 0xfd2   :  { %v2075_v57 = vpop.permute.xlu2 %2074  ;;  %4105 = vrcp.f32 %v2037_v0  ;;  %v2064_v28 = vand.u32 2147483648, %v2037_v0  ;;  %vm2058_vm14 = vweird.f32 %v2037_v0  ;;  %v2062_v62 = vand.u32 2147483647, %v2037_v0 }
 0xfd3   :  { %v2080_v36 = vmul.f32 %v2075_v57, %v5842_v1 }
 0xfd4   :  { %v2065_v42 = vor.u32 1.1754944e-38, %v2064_v28  ;;  %vm2063_vm0 = vcmp.eq.f32.partialorder %v2062_v62, 8.507059e+37 }
 0xfd5   :  { %2084 = vrot.lane.b32.xlu1 %v2080_v36, %s4214_s4 }
 0xfd6   :  { %2398 = vrot.lane.b32.xlu0 %v2356_v27, %s4218_s8  ;;  %s2486_s8 = scalar_select %p2484_p0, 1, 0 }
 0xfd8   :  { %v4106_v58 = vpop.eup %4105 }
 0xfd9   :  { %v2054_v16 = vmul.f32 %v4106_v58, %v2037_v0  ;;  %vm2059_vm13 = vweird.f32 %v4106_v58 }
 0xfda   :  { %vm2060_vm15 = vmor %vm2058_vm14, %vm2059_vm13 }
 0xfdb   :  { %v2055_v38 = vsub.f32 1.0, %v2054_v16  ;;  %v2461_v37 = vpop.f32.mrf.mxu1 }
 0xfdd   :  { %v2056_v11 = vmul.f32 %v4106_v58, %v2055_v38 }
 0xfdf   :  { %v2057_v53 = vadd.f32 %v4106_v58, %v2056_v11 }
 0xfe1   :  { %v2061_v22 = vsel %vm2060_vm15, %v4106_v58, %v2057_v53 }
 0xfe2   :  { %v2066_v3 = vsel %vm2063_vm0, %v2065_v42, %v2061_v22 }
 0xfe3   :  { %v2071_v11 = vmul.f32 %v2066_v3, %v5701_v30  ;;  %v2487_v30 = vstv %s2486_s8 }
 0xfe4   :  { %vm2488_vm6 = vcmp.eq.s32.totalorder %v2487_v30, 1 }
0x1040   :  { %v2077_v33 = vpop.permute.xlu0 %2076 }
0x1041   :  { %v2081_v18 = vmul.f32 %v2077_v33, %v2066_v3 }
0x1043   :  { %2086 = vrot.lane.b32.xlu2 %v2081_v18, %s4214_s4 }
0x1047   :  { %v2085_v63 = vpop.permute.xlu1 %2084 }
0x1048   :  { %v5853_v2 = vadd.f32 %v2085_v63, %v2070_v55  ;;  %v2399_v56 = vpop.permute.xlu0 %2398 }
0x1049   :  { %v2401_v57 = vsub.f32 %v2356_v27, %v2399_v56 }
0x104a   :  { %4107 = vtanh.f32 %v5853_v2 }
0x104b   :  { %v5857_v36 = vperm.slane %v2401_v57, 0 }
0x104d   :  { %v2462_v26 = vadd.f32 %v2461_v37, %v5857_v36 }
0x104f   :  { %v3820_v0 = vmul.f32 -1.442695, %v2462_v26 }
0x1050   :  { %v4108_v6 = vpop.eup %4107 }
0x1051   :  { %2096 = vrot.lane.b32.xlu1 %v4108_v6, %s4214_s4  ;;  %4109 = vpow2.f32 %v3820_v0 }
0x1057   :  { %v4110_v58 = vpop.eup %4109 }
0x1058   :  { %v2467_v16 = vadd.f32 1.0, %v4110_v58 }
0x105a   :  { %4111 = vrcp.f32 %v2467_v16  ;;  %v2479_v42 = vand.u32 2147483648, %v2467_v16  ;;  %vm2473_vm3 = vweird.f32 %v2467_v16  ;;  %v2477_v18 = vand.u32 2147483647, %v2467_v16 }
0x105c   :  { %v2480_v63 = vor.u32 1.1754944e-38, %v2479_v42  ;;  %vm2478_vm5 = vcmp.eq.f32.partialorder %v2477_v18, 8.507059e+37 }
0x1060   :  { %v4112_v24 = vpop.eup %4111 }
0x1061   :  { %v2469_v38 = vmul.f32 %v4112_v24, %v2467_v16  ;;  %vm2474_vm2 = vweird.f32 %v4112_v24 }
0x1062   :  { %vm2475_vm4 = vmor %vm2473_vm3, %vm2474_vm2 }
0x1063   :  { %v2470_v53 = vsub.f32 1.0, %v2469_v38 }
0x1065   :  { %v2471_v27 = vmul.f32 %v4112_v24, %v2470_v53 }
0x1067   :  { %v2472_v22 = vadd.f32 %v4112_v24, %v2471_v27 }
0x1069   :  { %v2476_v55 = vsel %vm2475_vm4, %v4112_v24, %v2472_v22 }
0x106a   :  { %v2481_v6 = vsel %vm2478_vm5, %v2480_v63, %v2476_v55 }
0x106b   :  { %v2489_v56 = vsel %vm2488_vm6, %v5613_v25, %v2481_v6 }
0x109d   :  { %v2087_v28 = vpop.permute.xlu2 %2086 }
0x109e   :  { %v5861_v62 = vadd.f32 %v2087_v28, %v2071_v11 }
0x10a0   :  { %4113 = vtanh.f32 %v5861_v62 }
0x10a6   :  { %v4114_v33 = vpop.eup %4113 }
0x10a7   :  { %2098 = vrot.lane.b32.xlu2 %v4114_v33, %s4214_s4 }
0x10af   :  { %2493 = vperm.xlu2 %3990, %v2489_v56  }
0x10b7   :  { %1758 = vrot.lane.b32.xlu2 %v5465_v48, %s4216_s1 }
0x10c3   :  { %v2097_v57 = vpop.permute.xlu1 %2096 }
0x10c4   :  { %v2102_v37 = vmul.f32 %v2097_v57, %v5842_v1 }
0x10c6   :  { %2105 = vrot.lane.b32.xlu0 %v2102_v37, %s4215_s20 }
0x10ce   :  { %1641 = vrot.lane.b32.xlu0 %v5439_v34, %s4216_s1 }
0x1101   :  { %v2099_v26 = vpop.permute.xlu2 %2098 }
0x1102   :  { %v5872_v0 = vmul.f32 %v2099_v26, %v2066_v3  ;;  %v2295_v3 = vpop.f32.mrf.mxu3 }
0x1103   :  { %v2296_v38 = vadd.f32 %v5711_v39, %v2295_v3 }
0x1104   :  { %2116 = vrot.lane.b32.xlu1 %v5872_v0, %s4215_s20 }
0x1109   :  { %v2494_v58 = vpop.permute.xlu2 %2493 }
0x110a   :  { %v2496_v24 = vmul.f32 %v5716_v5, %v2494_v58 }
0x110c   :  { %v2497_v11 = vadd.f32 %v2496_v24, %v2296_v38 }
0x110e   :  { %v2499_v28 = vmul.f32 0.01, %v2497_v11  ;;  %vm2498_vm7 = vcmp.gt.f32.partialorder %v2497_v11, 0.0 }
0x1110   :  { %v2500_v27 = vsel %vm2498_vm7, %v2497_v11, %v2499_v28 }
0x1111   :  { %v1759_v25 = vpop.permute.xlu2 %1758 }
0x1112   :  { %v1761_v16 = vsel %vm1211_vm1, %v5469_v54, %v1759_v25 }
0x1113   :  { %1762 = vst.msk [vmem:[#allocation2 + $0x18] sm:$0xff] %vm1410_vm12, %v1761_v16 }
0x1138   :  { %v5879_v48 = vpop.permute.xlu0 %2105 }
0x1139   :  { %3807 = vmatmul.msk.f32.vlgmr.msra.gmra.mxu2 %vm1211_vm1, %v5879_v48 }
0x113a   :  { %2669 = vmatpush.msra.mxu2 %v5541_v7 }
0x113c   :  { %2670 = vmatpush.msra.mxu2 %v5546_v10 }
0x113e   :  { %2671 = vmatpush.msra.mxu2 %v5553_v60 }
0x1140   :  { %v1642_v34 = vpop.permute.xlu0 %1641  ;;  %2672 = vmatpush.msra.mxu2 %v5561_v23 }
0x1141   :  { %v1644_v1 = vsel %vm1211_vm1, %v5443_v44, %v1642_v34  ;;  %v2234_v44 = vld [vmem:[#allocation2 + $0x18] sm:$0xff] }
0x1142   :  { %1645 = vst.msk [vmem:[#allocation2 + $0x10] sm:$0xff] %vm1410_vm12, %v1644_v1  ;;  %2673 = vmatpush.msra.mxu2 %v5569_v9 }
0x1144   :  { %2674 = vmatpush.msra.mxu2 %v5577_v52 }
0x1146   :  { %2675 = vmatpush.msra.mxu2 %v5585_v61 }
0x1148   :  { %2676 = vmatpush.msra.mxu2 %v5593_v43 }
0x1149   :  { %v2233_v54 = vld [vmem:[#allocation2 + $0x10] sm:$0xff] }
0x114a   :  { %3813 = vmatmul.msk.f32.gmra.mxu3 %vm1410_vm12, %v2233_v54  ;;  %2677 = vmatpush.msra.mxu2 %v5621_v13 }
0x114c   :  { %2678 = vmatpush.msra.mxu2 %v5628_v4 }
0x114e   :  { %2679 = vmatpush.msra.mxu2 %v5635_v17 }
0x1150   :  { %2680 = vmatpush.msra.mxu2 %v5641_v45 }
0x1152   :  { %3814 = vmatmul.msk.f32.gmra.mxu3 %vm1410_vm12, %v2234_v44  ;;  %2681 = vmatpush.msra.mxu2 %v5652_v19 }
0x1154   :  { %2682 = vmatpush.msra.mxu2 %v5660_v21 }
0x1156   :  { %2683 = vmatpush.msra.mxu2 %v5668_v8 }
0x1158   :  { %2684 = vmatpush.msra.mxu2 %v5675_v20 }
0x1176   :  { %v2117_v53 = vpop.permute.xlu1 %2116 }
0x1177   :  { %3808 = vmatmul.msk.f32.gmra.mxu2 %vm1211_vm1, %v2117_v53 }
0x117f   :  { %2517 = vmatmul.f32.vlgmr.msrb.gmra.mxu2 %v2500_v27 }
0x1180   :  { %2872 = vmatpush.msrb.mxu2 %v5784_v12 }
0x1182   :  { %2873 = vmatpush.msrb.mxu2 %v5786_v14 }
0x1184   :  { %2874 = vmatpush.msrb.mxu2 %v5793_v29 }
0x1186   :  { %2875 = vmatpush.msrb.mxu2 %v5795_v46 }
0x1188   :  { %2876 = vmatpush.msrb.mxu2 %v5797_v35 }
0x118a   :  { %2877 = vmatpush.msrb.mxu2 %v5805_v47 }
0x118c   :  { %2878 = vmatpush.msrb.mxu2 %v5807_v32 }
0x118e   :  { %2879 = vmatpush.msrb.mxu2 %v5810_v15 }
0x11bc   :  { %v2139_v22 = vpop.f32.mrf.mxu2 }
0x11bd   :  { %v2145_v42 = vadd.f32 %v2139_v22, %v5351_v40 }
0x11bf   :  { %4115 = vtanh.f32 %v2145_v42  ;;  %v3809_v18 = vmul.f32 -1.442695, %v2145_v42 }
0x11c1   :  { %4117 = vpow2.f32 %v3809_v18 }
0x11c5   :  { %v4116_v33 = vpop.eup %4115 }
0x11c6   :  { %2191 = vrot.lane.b32.xlu2 %v4116_v33, %s4214_s4 }
0x11c7   :  { %v4118_v30 = vpop.eup %4117 }
0x11c8   :  { %v2153_v63 = vadd.f32 1.0, %v4118_v30 }
0x11ca   :  { %4119 = vrcp.f32 %v2153_v63  ;;  %v2166_v34 = vand.u32 2147483648, %v2153_v63  ;;  %vm2160_vm10 = vweird.f32 %v2153_v63  ;;  %v2164_v1 = vand.u32 2147483647, %v2153_v63 }
0x11cc   :  { %v2167_v44 = vor.u32 1.1754944e-38, %v2166_v34  ;;  %vm2165_vm13 = vcmp.eq.f32.partialorder %v2164_v1, 8.507059e+37 }
0x11d0   :  { %v4120_v40 = vpop.eup %4119 }
0x11d1   :  { %v2156_v26 = vmul.f32 %v4120_v40, %v2153_v63  ;;  %vm2161_vm9 = vweird.f32 %v4120_v40 }
0x11d2   :  { %vm2162_vm11 = vmor %vm2160_vm10, %vm2161_vm9 }
0x11d3   :  { %v2157_v58 = vsub.f32 1.0, %v2156_v26 }
0x11d5   :  { %v2158_v25 = vmul.f32 %v4120_v40, %v2157_v58 }
0x11d7   :  { %v2159_v16 = vadd.f32 %v4120_v40, %v2158_v25 }
0x11d9   :  { %v2163_v54 = vsel %vm2162_vm11, %v4120_v40, %v2159_v16  ;;  %v2569_v40 = vld [vmem:[%s6267_s2 + $0x8] sm:$0xff] }
0x11da   :  { %v5930_v24 = vsel %vm2165_vm13, %v2167_v44, %v2163_v54 }
0x11db   :  { %v2187_v1 = vmul.f32 %v5930_v24, %v5853_v2 }
0x11fa   :  { %v5917_v55 = vpop.f32.mrf.mxu2 }
0x11fb   :  { %v2146_v16 = vadd.f32 %v5917_v55, %v5332_v59  ;;  %v2298_v59 = vpop.f32.mrf.mxu3 }
0x1202   :  { %v2518_v6 = vpop.f32.mrf.mxu2 }
0x1203   :  { %v2519_v56 = vadd.f32 %v5770_v31, %v2518_v6 }
0x1205   :  { %vm2521_vm8 = vcmp.gt.f32.partialorder %v2519_v56, 0.0  ;;  %v2522_v57 = vmul.f32 0.01, %v2519_v56 }
0x1207   :  { %v2523_v37 = vsel %vm2521_vm8, %v2519_v56, %v2522_v57  ;;  %v2571_v56 = vstv %s2570_s5  ;;  %s3835_s5 = sld [smem:[#allocation6 + $0x5]] }
0x1208   :  { %2524 = vst.msk [vmem:[#allocation3 + $0x8] sm:$0xff] %vm1410_vm12, %v2523_v37  ;;  %3821 = vmatmul.msk.f32.vlgmr.msra.gmra.mxu1 %vm1410_vm12, %v2523_v37  ;;  %vm2572_vm2 = vcmp.eq.s32.totalorder %v2571_v56, 1 }
0x1209   :  { %2704 = vmatpush.msra.mxu1 %v5784_v12 }
0x120b   :  { %2705 = vmatpush.msra.mxu1 %v5786_v14 }
0x120d   :  { %2706 = vmatpush.msra.mxu1 %v5793_v29  ;;  %p2904_p5 = scmp.eq.s32.totalorder %s3835_s5, 1 }
0x120f   :  { %2707 = vmatpush.msra.mxu1 %v5795_v46 }
0x1211   :  { %2708 = vmatpush.msra.mxu1 %v5797_v35 }
0x1213   :  { %2709 = vmatpush.msra.mxu1 %v5805_v47 }
0x1215   :  { %2710 = vmatpush.msra.mxu1 %v5807_v32 }
0x1217   :  { %2711 = vmatpush.msra.mxu1 %v5810_v15 }
0x1220   :  { %v2192_v3 = vpop.permute.xlu2 %2191 }
0x1221   :  { %v2197_v38 = vmul.f32 %v2192_v3, %v5930_v24 }
0x1223   :  { %2201 = vrot.lane.b32.xlu2 %v2197_v38, %s4214_s4 }
0x127d   :  { %v2202_v34 = vpop.permute.xlu2 %2201 }
0x127e   :  { %v2207_v54 = vadd.f32 %v2202_v34, %v2187_v1 }
0x1285   :  { %v2545_v11 = vpop.f32.mrf.mxu1 }
0x1286   :  { %v2546_v53 = vadd.f32 %v2545_v11, %v5857_v36 }
0x1288   :  { %v3822_v28 = vmul.f32 -1.442695, %v2546_v53 }
0x128a   :  { %4121 = vpow2.f32 %v3822_v28 }
0x1290   :  { %v4122_v27 = vpop.eup %4121 }
0x1291   :  { %v2551_v22 = vadd.f32 1.0, %v4122_v27 }
0x1293   :  { %4123 = vrcp.f32 %v2551_v22  ;;  %v2563_v30 = vand.u32 2147483648, %v2551_v22  ;;  %v2561_v6 = vand.u32 2147483647, %v2551_v22  ;;  %vm2557_vm15 = vweird.f32 %v2551_v22 }
0x1294   :  { %4125 = vtanh.f32 %v2146_v16 }
0x1295   :  { %v2564_v37 = vor.u32 1.1754944e-38, %v2563_v30  ;;  %vm2562_vm3 = vcmp.eq.f32.partialorder %v2561_v6, 8.507059e+37  ;;  %4127 = vtanh.f32 %v2207_v54 }
0x1299   :  { %v4124_v42 = vpop.eup %4123 }
0x129a   :  { %v2553_v33 = vmul.f32 %v4124_v42, %v2551_v22  ;;  %vm2558_vm14 = vweird.f32 %v4124_v42  ;;  %v4126_v44 = vpop.eup %4125 }
0x129b   :  { %vm2559_vm0 = vmor %vm2557_vm15, %vm2558_vm14  ;;  %v4128_v3 = vpop.eup %4127 }
0x129c   :  { %v2554_v18 = vsub.f32 1.0, %v2553_v33 }
0x129e   :  { %v2555_v63 = vmul.f32 %v4124_v42, %v2554_v18  ;;  %v2653_v18 = vld [vmem:[%s6267_s2 + $0x10] sm:$0xff] }
0x12a0   :  { %v2556_v57 = vadd.f32 %v4124_v42, %v2555_v63 }
0x12a2   :  { %v2560_v26 = vsel %vm2559_vm0, %v4124_v42, %v2556_v57 }
0x12a3   :  { %v2565_v58 = vsel %vm2562_vm3, %v2564_v37, %v2560_v26 }
0x12a4   :  { %v2573_v25 = vsel %vm2572_vm2, %v2569_v40, %v2565_v58 }
0x12a5   :  { %2577 = vperm.xlu1 %3991, %v2573_v25  }
0x12ad   :  { %1875 = vrot.lane.b32.xlu1 %v5499_v50, %s4216_s1  ;;  %v2299_v50 = vadd.f32 %v5711_v39, %v2298_v59 }
0x12b5   :  { %2193 = vrot.lane.b32.xlu1 %v4126_v44, %s4214_s4 }
0x12bd   :  { %2213 = vrot.lane.b32.xlu1 %v4128_v3, %s4214_s4 }
0x12c5   :  { %2109 = vrot.lane.b32.xlu1 %v5872_v0, %s4216_s1 }
0x1317   :  { %v2578_v55 = vpop.permute.xlu1 %2577 }
0x1318   :  { %v2580_v38 = vmul.f32 %v5716_v5, %v2578_v55 }
0x131a   :  { %v2581_v11 = vadd.f32 %v2580_v38, %v2299_v50 }
0x131c   :  { %vm2582_vm4 = vcmp.gt.f32.partialorder %v2581_v11, 0.0  ;;  %v2583_v2 = vmul.f32 0.01, %v2581_v11 }
0x131e   :  { %v2584_v53 = vsel %vm2582_vm4, %v2581_v11, %v2583_v2  ;;  %v4171_v11 = vld [vmem:[%s6276_s11 + $0x78] sm:$0xff] }
0x131f   :  { %2601 = vmatmul.f32.vlgmr.msrb.gmra.mxu0 %v2584_v53  ;;  %v1876_v28 = vpop.permute.xlu1 %1875 }
0x1320   :  { %2956 = vmatpush.msrb.mxu0 %v5784_v12  ;;  %v1878_v27 = vsel %vm1211_vm1, %v5512_v41, %v1876_v28  ;;  %v4175_v28 = vld [vmem:[%s6276_s11 + $0x58] sm:$0xff] }
0x1321   :  { %1879 = vst.msk [vmem:[#allocation2 + $0x20] sm:$0xff] %vm1410_vm12, %v1878_v27  ;;  %v4176_v27 = vld [vmem:[%s6276_s11 + $0x50] sm:$0xff] }
0x1322   :  { %2957 = vmatpush.msrb.mxu0 %v5786_v14 }
0x1324   :  { %2958 = vmatpush.msrb.mxu0 %v5793_v29 }
0x1326   :  { %2959 = vmatpush.msrb.mxu0 %v5795_v46 }
0x1327   :  { %v5957_v0 = vpop.permute.xlu1 %2193 }
0x1328   :  { %2960 = vmatpush.msrb.mxu0 %v5797_v35  ;;  %v2235_v22 = vld [vmem:[#allocation2 + $0x20] sm:$0xff] }
0x1329   :  { %3815 = vmatmul.msk.f32.gmra.mxu3 %vm1410_vm12, %v2235_v22 }
0x132a   :  { %2961 = vmatpush.msrb.mxu0 %v5805_v47 }
0x132c   :  { %2962 = vmatpush.msrb.mxu0 %v5807_v32  ;;  %v2655_v32 = vstv %s2654_s22 }
0x132d   :  { %vm2656_vm9 = vcmp.eq.s32.totalorder %v2655_v32, 1 }
0x132e   :  { %2963 = vmatpush.msrb.mxu0 %v5810_v15 }
0x132f   :  { %v5964_v41 = vpop.permute.xlu1 %2213 }
0x1330   :  { %v2219_v22 = vmul.f32 %v5964_v41, %v5930_v24  ;;  %v4182_v24 = vld [vmem:[%s6276_s11 + $0x20] sm:$0xff] }
0x1337   :  { %v2110_v12 = vpop.permute.xlu1 %2109 }
0x1338   :  { %v2112_v14 = vsel %vm1211_vm1, %v5879_v48, %v2110_v12 }
0x1339   :  { %2113 = vst.msk [vmem:[#allocation2 + $0x30] sm:$0xff] %vm1410_vm12, %v2112_v14  ;;  %v4179_v14 = vld [vmem:[%s6276_s11 + $0x38] sm:$0xff] }
0x1340   :  { %v2237_v41 = vld [vmem:[#allocation2 + $0x30] sm:$0xff] }
0x139c   :  { %v2602_v29 = vpop.f32.mrf.mxu0 }
0x139d   :  { %v2603_v46 = vadd.f32 %v5770_v31, %v2602_v29  ;;  %v4180_v29 = vld [vmem:[%s6276_s11 + $0x30] sm:$0xff] }
0x139f   :  { %vm2605_vm5 = vcmp.gt.f32.partialorder %v2603_v46, 0.0  ;;  %v2606_v35 = vmul.f32 0.01, %v2603_v46 }
0x13a1   :  { %v2607_v42 = vsel %vm2605_vm5, %v2603_v46, %v2606_v35  ;;  %v4181_v46 = vld [vmem:[%s6276_s11 + $0x28] sm:$0xff]  ;;  %v4183_v35 = vld [vmem:[%s6276_s11 + $0x18] sm:$0xff] }
0x13a2   :  { %2608 = vst.msk [vmem:[#allocation3 + $0x10] sm:$0xff] %vm1410_vm12, %v2607_v42  ;;  %3824 = vmatmul.msk.f32.vlgmr.msrb.gmra.mxu1 %vm1410_vm12, %v2607_v42  ;;  %v4184_v42 = vld [vmem:[%s6276_s11 + $0x10] sm:$0xff] }
0x13a3   :  { %2837 = vmatpush.msrb.mxu1 %v5541_v7  ;;  %v3810_v7 = vmul.f32 -1.442695, %v2146_v16  ;;  %v2301_v16 = vpop.f32.mrf.mxu3 }
0x13a4   :  { %v2302_v1 = vadd.f32 %v5711_v39, %v2301_v16  ;;  %v4172_v39 = vld [vmem:[%s6276_s11 + $0x70] sm:$0xff]  ;;  %v6070_v16 = vld [vmem:[%s6275_s10] ss:$0 sm:$0xff]  ;;  %s3838_s10 = sld [smem:[#allocation6 + $0x6]] }
0x13a5   :  { %2838 = vmatpush.msrb.mxu1 %v5546_v10  ;;  %4129 = vpow2.f32 %v3810_v7  ;;  %v4185_v7 = vld [vmem:[%s6276_s11 + $0x8] sm:$0xff] }
0x13a7   :  { %2839 = vmatpush.msrb.mxu1 %v5553_v60 }
0x13a9   :  { %2840 = vmatpush.msrb.mxu1 %v5561_v23 }
0x13aa   :  { %p2988_p6 = scmp.eq.s32.totalorder %s3838_s10, 1 }
0x13ab   :  { %2841 = vmatpush.msrb.mxu1 %v5569_v9  ;;  %v4130_v23 = vpop.eup %4129 }
0x13ac   :  { %s2990_s7 = scalar_select %p2988_p6, 1, 0 }
0x13ad   :  { %2842 = vmatpush.msrb.mxu1 %v5577_v52  ;;  %v2154_v52 = vadd.f32 1.0, %v4130_v23 }
0x13af   :  { %2843 = vmatpush.msrb.mxu1 %v5585_v61  ;;  %v2181_v56 = vand.u32 2147483648, %v2154_v52  ;;  %vm2175_vm13 = vweird.f32 %v2154_v52  ;;  %v2179_v37 = vand.u32 2147483647, %v2154_v52 }
0x13b1   :  { %2844 = vmatpush.msrb.mxu1 %v5593_v43  ;;  %v2182_v26 = vor.u32 1.1754944e-38, %v2181_v56  ;;  %vm2180_vm15 = vcmp.eq.f32.partialorder %v2179_v37, 8.507059e+37 }
0x13b3   :  { %2845 = vmatpush.msrb.mxu1 %v5621_v13 }
0x13b5   :  { %2846 = vmatpush.msrb.mxu1 %v5628_v4 }
0x13b7   :  { %2847 = vmatpush.msrb.mxu1 %v5635_v17 }
0x13b9   :  { %2848 = vmatpush.msrb.mxu1 %v5641_v45 }
0x13bb   :  { %2849 = vmatpush.msrb.mxu1 %v5652_v19 }
0x13bd   :  { %2850 = vmatpush.msrb.mxu1 %v5660_v21 }
0x13bf   :  { %2851 = vmatpush.msrb.mxu1 %v5668_v8 }
0x13c1   :  { %2852 = vmatpush.msrb.mxu1 %v5675_v20 }
0x141f   :  { %v2629_v10 = vpop.f32.mrf.mxu1 }
0x1420   :  { %v2630_v60 = vadd.f32 %v2629_v10, %v5857_v36  ;;  %v4186_v10 = vld [vmem:[%s6276_s11] sm:$0xff] }
0x1422   :  { %v3825_v9 = vmul.f32 -1.442695, %v2630_v60 }
0x1424   :  { %4131 = vpow2.f32 %v3825_v9 }
0x1425   :  { %4133 = vrcp.f32 %v2154_v52 }
0x142a   :  { %v4132_v61 = vpop.eup %4131 }
0x142b   :  { %v2635_v43 = vadd.f32 1.0, %v4132_v61  ;;  %v4134_v13 = vpop.eup %4133 }
0x142c   :  { %v2171_v4 = vmul.f32 %v4134_v13, %v2154_v52  ;;  %vm2176_vm11 = vweird.f32 %v4134_v13 }
0x142d   :  { %4135 = vrcp.f32 %v2635_v43  ;;  %v2647_v8 = vand.u32 2147483648, %v2635_v43  ;;  %v2645_v47 = vand.u32 2147483647, %v2635_v43  ;;  %vm2641_vm7 = vweird.f32 %v2635_v43  ;;  %vm2177_vm14 = vmor %vm2175_vm13, %vm2176_vm11 }
0x142e   :  { %v2172_v19 = vsub.f32 1.0, %v2171_v4 }
0x142f   :  { %v2648_v33 = vor.u32 1.1754944e-38, %v2647_v8  ;;  %vm2646_vm10 = vcmp.eq.f32.partialorder %v2645_v47, 8.507059e+37 }
0x1430   :  { %v2173_v15 = vmul.f32 %v4134_v13, %v2172_v19 }
0x1432   :  { %v2174_v63 = vadd.f32 %v4134_v13, %v2173_v15 }
0x1433   :  { %v4136_v17 = vpop.eup %4135 }
0x1434   :  { %v2637_v45 = vmul.f32 %v4136_v17, %v2635_v43  ;;  %vm2642_vm6 = vweird.f32 %v4136_v17  ;;  %v2178_v40 = vsel %vm2177_vm14, %v4134_v13, %v2174_v63 }
0x1435   :  { %vm2643_vm8 = vmor %vm2641_vm7, %vm2642_vm6  ;;  %v2183_v58 = vsel %vm2180_vm15, %v2182_v26, %v2178_v40 }
0x1436   :  { %v2638_v21 = vsub.f32 1.0, %v2637_v45  ;;  %v2198_v25 = vmul.f32 %v5957_v0, %v2183_v58  ;;  %v2188_v55 = vmul.f32 %v2183_v58, %v5861_v62  ;;  %v4177_v0 = vld [vmem:[%s6276_s11 + $0x48] sm:$0xff] }
0x1438   :  { %v2639_v20 = vmul.f32 %v4136_v17, %v2638_v21 }
0x143a   :  { %v2640_v48 = vadd.f32 %v4136_v17, %v2639_v20 }
0x143c   :  { %v2644_v30 = vsel %vm2643_vm8, %v4136_v17, %v2640_v48 }
0x143d   :  { %v2649_v6 = vsel %vm2646_vm10, %v2648_v33, %v2644_v30 }
0x143e   :  { %v2657_v57 = vsel %vm2656_vm9, %v2653_v18, %v2649_v6 }
0x143f   :  { %2661 = vperm.xlu0 %3992, %v2657_v57   ;;  %v2737_v57 = vld [vmem:[%s6267_s2 + $0x18] sm:$0xff] }
0x1447   :  { %2203 = vrot.lane.b32.xlu0 %v2198_v25, %s4214_s4 }
0x144f   :  { %1992 = vrot.lane.b32.xlu0 %v5751_v49, %s4216_s1  ;;  %v4174_v49 = vld [vmem:[%s6276_s11 + $0x60] sm:$0xff] }
0x14b1   :  { %v2662_v34 = vpop.permute.xlu0 %2661 }
0x14b2   :  { %v2664_v54 = vmul.f32 %v5716_v5, %v2662_v34  ;;  %v4173_v5 = vld [vmem:[%s6276_s11 + $0x68] sm:$0xff] }
0x14b4   :  { %v2665_v44 = vadd.f32 %v2664_v54, %v2302_v1  ;;  %v6076_v1 = vld [vmem:[%s6274_s9] ss:$0 sm:$0xff] }
0x14b6   :  { %vm2666_vm0 = vcmp.gt.f32.partialorder %v2665_v44, 0.0  ;;  %v2667_v3 = vmul.f32 0.01, %v2665_v44 }
0x14b8   :  { %v2668_v59 = vsel %vm2666_vm0, %v2665_v44, %v2667_v3 }
0x14b9   :  { %2685 = vmatmul.f32.vlgmr.msra.gmra.mxu2 %v2668_v59  ;;  %v2204_v50 = vpop.permute.xlu0 %2203 }
0x14ba   :  { %v2208_v38 = vadd.f32 %v2204_v50, %v2188_v55  ;;  %3005 = vmatpush.msra.mxu2 %v4171_v11 }
0x14bc   :  { %4137 = vtanh.f32 %v2208_v38  ;;  %3006 = vmatpush.msra.mxu2 %v4172_v39 }
0x14be   :  { %3007 = vmatpush.msra.mxu2 %v4173_v5 }
0x14c0   :  { %3008 = vmatpush.msra.mxu2 %v4174_v49 }
0x14c1   :  { %v1993_v62 = vpop.permute.xlu0 %1992 }
0x14c2   :  { %v4138_v2 = vpop.eup %4137  ;;  %v1995_v53 = vsel %vm1211_vm1, %v5780_v51, %v1993_v62  ;;  %3009 = vmatpush.msra.mxu2 %v4175_v28  ;;  %v4178_v51 = vld [vmem:[%s6276_s11 + $0x40] sm:$0xff]  ;;  %s3829_s11 = sld [smem:[#allocation6 + $0x3]]  ;;  %v4189_v62 = vld [vmem:[%s6278_s13 + $0x38] sm:$0xff] }
0x14c3   :  { %1996 = vst.msk [vmem:[#allocation2 + $0x28] sm:$0xff] %vm1410_vm12, %v1995_v53  ;;  %2215 = vrot.lane.b32.xlu2 %v4138_v2, %s4214_s4  ;;  %v4190_v2 = vld [vmem:[%s6278_s13 + $0x30] sm:$0xff]  ;;  %v4192_v53 = vld [vmem:[%s6278_s13 + $0x20] sm:$0xff]  ;;  %v4193_v28 = vld [vmem:[%s6278_s13 + $0x18] sm:$0xff] }
0x14c4   :  { %3010 = vmatpush.msra.mxu2 %v4176_v27  ;;  %v4194_v27 = vld [vmem:[%s6278_s13 + $0x10] sm:$0xff] }
0x14c6   :  { %3011 = vmatpush.msra.mxu2 %v4177_v0  ;;  %v4195_v0 = vld [vmem:[%s6278_s13 + $0x8] sm:$0xff] }
0x14c8   :  { %3012 = vmatpush.msra.mxu2 %v4178_v51  ;;  %p2736_p3 = scmp.eq.s32.totalorder %s3829_s11, 1  ;;  %v4196_v51 = vld [vmem:[%s6278_s13] sm:$0xff] }
0x14c9   :  { %s2822_s11 = scalar_select %p2820_p4, 1, 0 }
0x14ca   :  { %v2236_v12 = vld [vmem:[#allocation2 + $0x28] sm:$0xff]  ;;  %3013 = vmatpush.msra.mxu2 %v4179_v14 }
0x14cb   :  { %3816 = vmatmul.msk.f32.gmra.mxu3 %vm1410_vm12, %v2236_v12  ;;  %2222 = vrot.lane.b32.xlu2 %v2219_v22, %s4215_s20 }
0x14cc   :  { %3014 = vmatpush.msra.mxu2 %v4180_v29 }
0x14ce   :  { %3015 = vmatpush.msra.mxu2 %v4181_v46 }
0x14d0   :  { %3016 = vmatpush.msra.mxu2 %v4182_v24 }
0x14d2   :  { %3017 = vmatpush.msra.mxu2 %v4183_v35 }
0x14d3   :  { %3817 = vmatmul.msk.f32.gmra.mxu3 %vm1410_vm12, %v2237_v41 }
0x14d4   :  { %3018 = vmatpush.msra.mxu2 %v4184_v42 }
0x14d6   :  { %3019 = vmatpush.msra.mxu2 %v4185_v7 }
0x14d8   :  { %3020 = vmatpush.msra.mxu2 %v4186_v10 }
0x151d   :  { %v2216_v60 = vpop.permute.xlu2 %2215 }
0x151e   :  { %v2220_v23 = vmul.f32 %v2216_v60, %v2183_v58  ;;  %v2304_v58 = vpop.f32.mrf.mxu3  ;;  %v2823_v60 = vstv %s2822_s11 }
0x151f   :  { %v2305_v34 = vadd.f32 %v6070_v16, %v2304_v58  ;;  %vm2824_vm13 = vcmp.eq.s32.totalorder %v2823_v60, 1 }
0x1520   :  { %2226 = vrot.lane.b32.xlu0 %v2220_v23, %s4216_s1  ;;  %s2738_s1 = scalar_select %p2736_p3, 1, 0 }
0x1522   :  { %v2739_v63 = vstv %s2738_s1 }
0x1523   :  { %vm2740_vm5 = vcmp.eq.s32.totalorder %v2739_v63, 1 }
0x1525   :  { %v2223_v13 = vpop.permute.xlu2 %2222 }
0x153c   :  { %v2686_v9 = vpop.f32.mrf.mxu2 }
0x153d   :  { %v2687_v52 = vadd.f32 %v5770_v31, %v2686_v9 }
0x153f   :  { %vm2689_vm2 = vcmp.gt.f32.partialorder %v2687_v52, 0.0  ;;  %v2690_v61 = vmul.f32 0.01, %v2687_v52 }
0x1541   :  { %v2691_v43 = vsel %vm2689_vm2, %v2687_v52, %v2690_v61  ;;  %v2821_v52 = vld [vmem:[%s6267_s2 + $0x20] sm:$0xff] }
0x1542   :  { %2692 = vst.msk [vmem:[#allocation3 + $0x18] sm:$0xff] %vm1410_vm12, %v2691_v43  ;;  %3827 = vmatmul.msk.f32.vlgmr.msra.gmra.mxu1 %vm1410_vm12, %v2691_v43 }
0x154e   :  { %v6079_v55 = vpop.f32.mrf.mxu3 }
0x1556   :  { %v6081_v50 = vpop.f32.mrf.mxu3 }
0x1592   :  { %v2227_v4 = vpop.permute.xlu0 %2226 }
0x1593   :  { %v2229_v17 = vsel %vm1211_vm1, %v2223_v13, %v2227_v4  ;;  %v6116_v4 = vld [vmem:[#allocation3] sm:$0xff] }
0x1594   :  { %2230 = vst.msk [vmem:[#allocation2 + $0x38] sm:$0xff] %vm1410_vm12, %v2229_v17  ;;  %v3104_v17 = vmul.f32 %v6116_v4, %v6116_v4 }
0x159b   :  { %v2238_v45 = vld [vmem:[#allocation2 + $0x38] sm:$0xff] }
0x159c   :  { %3818 = vmatmul.msk.f32.gmra.mxu3 %vm1410_vm12, %v2238_v45  ;;  %v3112_v45 = vsel %vm1410_vm12, %v3104_v17, 0.0 }
0x15bf   :  { %v2713_v19 = vpop.f32.mrf.mxu1 }
0x15c0   :  { %v2714_v21 = vadd.f32 %v2713_v19, %v5857_v36  ;;  %v6121_v19 = vld [vmem:[#allocation3 + $0x18] sm:$0xff] }
0x15c2   :  { %v3828_v8 = vmul.f32 -1.442695, %v2714_v21  ;;  %v3107_v21 = vmul.f32 %v6121_v19, %v6121_v19 }
0x15c4   :  { %4139 = vpow2.f32 %v3828_v8  ;;  %v3121_v8 = vsel %vm1410_vm12, %v3107_v21, 0.0 }
0x15ca   :  { %v4140_v20 = vpop.eup %4139 }
0x15cb   :  { %v2719_v47 = vadd.f32 1.0, %v4140_v20 }
0x15cd   :  { %4141 = vrcp.f32 %v2719_v47  ;;  %v2731_v33 = vand.u32 2147483648, %v2719_v47  ;;  %v2729_v30 = vand.u32 2147483647, %v2719_v47  ;;  %vm2725_vm3 = vweird.f32 %v2719_v47 }
0x15cf   :  { %v2732_v56 = vor.u32 1.1754944e-38, %v2731_v33  ;;  %vm2730_vm6 = vcmp.eq.f32.partialorder %v2729_v30, 8.507059e+37 }
0x15d3   :  { %v4142_v32 = vpop.eup %4141 }
0x15d4   :  { %v2721_v15 = vmul.f32 %v4142_v32, %v2719_v47  ;;  %vm2726_vm1 = vweird.f32 %v4142_v32 }
0x15d5   :  { %vm2727_vm4 = vmor %vm2725_vm3, %vm2726_vm1 }
0x15d6   :  { %v2722_v48 = vsub.f32 1.0, %v2721_v15 }
0x15d8   :  { %v2723_v18 = vmul.f32 %v4142_v32, %v2722_v48  ;;  %v2308_v48 = vadd.f32 %v6070_v16, %v6079_v55 }
0x15da   :  { %v2724_v6 = vadd.f32 %v4142_v32, %v2723_v18 }
0x15dc   :  { %v2728_v37 = vsel %vm2727_vm4, %v4142_v32, %v2724_v6 }
0x15dd   :  { %v2733_v40 = vsel %vm2730_vm6, %v2732_v56, %v2728_v37  ;;  %v6137_v56 = vld [vmem:[%s6277_s12] ss:$0 sm:$0xff]  ;;  %s2906_s12 = scalar_select %p2904_p5, 1, 0 }
0x15de   :  { %v2741_v26 = vsel %vm2740_vm5, %v2737_v57, %v2733_v40 }
0x15df   :  { %2745 = vperm.xlu1 %3991, %v2741_v26  }
0x161f   :  { %v6083_v38 = vpop.f32.mrf.mxu3 }
0x1651   :  { %v2746_v25 = vpop.permute.xlu1 %2745 }
0x1652   :  { %v2748_v54 = vmul.f32 %v6076_v1, %v2746_v25 }
0x1654   :  { %v2749_v44 = vadd.f32 %v2748_v54, %v2305_v34 }
0x1656   :  { %vm2750_vm7 = vcmp.gt.f32.partialorder %v2749_v44, 0.0  ;;  %v2751_v3 = vmul.f32 0.01, %v2749_v44 }
0x1658   :  { %v2752_v59 = vsel %vm2750_vm7, %v2749_v44, %v2751_v3 }
0x1659   :  { %2769 = vmatmul.f32.vlgmr.msrb.gmra.mxu3 %v2752_v59 }
0x16dc   :  { %v2770_v11 = vpop.f32.mrf.mxu3 }
0x16dd   :  { %v2771_v39 = vadd.f32 %v5770_v31, %v2770_v11  ;;  %v4191_v31 = vld [vmem:[%s6278_s13 + $0x28] sm:$0xff] }
0x16df   :  { %vm2773_vm8 = vcmp.gt.f32.partialorder %v2771_v39, 0.0  ;;  %v2774_v5 = vmul.f32 0.01, %v2771_v39 }
0x16e1   :  { %v2775_v49 = vsel %vm2773_vm8, %v2771_v39, %v2774_v5  ;;  %v2907_v5 = vstv %s2906_s12 }
0x16e2   :  { %2776 = vst.msk [vmem:[#allocation3 + $0x20] sm:$0xff] %vm1410_vm12, %v2775_v49  ;;  %3830 = vmatmul.msk.f32.vlgmr.msra.gmra.mxu0 %vm1410_vm12, %v2775_v49  ;;  %vm2908_vm4 = vcmp.eq.s32.totalorder %v2907_v5, 1 }
0x16e3   :  { %3071 = vmatpush.msra.mxu0 %v4189_v62 }
0x16e5   :  { %3072 = vmatpush.msra.mxu0 %v4190_v2  ;;  %v2905_v2 = vld [vmem:[%s6267_s2 + $0x28] sm:$0xff] }
0x16e7   :  { %3073 = vmatpush.msra.mxu0 %v4191_v31 }
0x16e9   :  { %3074 = vmatpush.msra.mxu0 %v4192_v53  ;;  %v6126_v20 = vld [vmem:[#allocation3 + $0x20] sm:$0xff] }
0x16ea   :  { %v3108_v47 = vmul.f32 %v6126_v20, %v6126_v20 }
0x16eb   :  { %3075 = vmatpush.msra.mxu0 %v4193_v28 }
0x16ec   :  { %v3124_v32 = vsel %vm1410_vm12, %v3108_v47, 0.0 }
0x16ed   :  { %3076 = vmatpush.msra.mxu0 %v4194_v27  ;;  %v6146_v27 = vld [vmem:[#allocation3 + $0x8] sm:$0xff] }
0x16ef   :  { %3077 = vmatpush.msra.mxu0 %v4195_v0  ;;  %v3105_v0 = vmul.f32 %v6146_v27, %v6146_v27 }
0x16f1   :  { %3078 = vmatpush.msra.mxu0 %v4196_v51  ;;  %v3115_v51 = vsel %vm1410_vm12, %v3105_v0, 0.0 }
0x175f   :  { %v2797_v22 = vpop.f32.mrf.mxu0 }
0x1760   :  { %v2798_v12 = vadd.f32 %v2797_v22, %v5857_v36 }
0x1762   :  { %v3831_v14 = vmul.f32 -1.442695, %v2798_v12 }
0x1764   :  { %4143 = vpow2.f32 %v3831_v14 }
0x176a   :  { %v4144_v29 = vpop.eup %4143 }
0x176b   :  { %v2803_v46 = vadd.f32 1.0, %v4144_v29 }
0x176d   :  { %4145 = vrcp.f32 %v2803_v46  ;;  %v2815_v42 = vand.u32 2147483648, %v2803_v46  ;;  %v2813_v10 = vand.u32 2147483647, %v2803_v46  ;;  %vm2809_vm10 = vweird.f32 %v2803_v46 }
0x176f   :  { %v2816_v9 = vor.u32 1.1754944e-38, %v2815_v42  ;;  %vm2814_vm14 = vcmp.eq.f32.partialorder %v2813_v10, 8.507059e+37 }
0x1773   :  { %v4146_v24 = vpop.eup %4145 }
0x1774   :  { %v2805_v41 = vmul.f32 %v4146_v24, %v2803_v46  ;;  %vm2810_vm9 = vweird.f32 %v4146_v24  ;;  %v2311_v46 = vadd.f32 %v6070_v16, %v6081_v50  ;;  %v6166_v50 = vld [vmem:[#allocation3 + $0x10] sm:$0xff] }
0x1775   :  { %vm2811_vm11 = vmor %vm2809_vm10, %vm2810_vm9 }
0x1776   :  { %v2806_v35 = vsub.f32 1.0, %v2805_v41 }
0x1778   :  { %v2807_v7 = vmul.f32 %v4146_v24, %v2806_v35 }
0x177a   :  { %v2808_v23 = vadd.f32 %v4146_v24, %v2807_v7 }
0x177c   :  { %v2812_v61 = vsel %vm2811_vm11, %v4146_v24, %v2808_v23 }
0x177d   :  { %v2817_v43 = vsel %vm2814_vm14, %v2816_v9, %v2812_v61 }
0x177e   :  { %v2825_v13 = vsel %vm2824_vm13, %v2821_v52, %v2817_v43 }
0x177f   :  { %2829 = vperm.xlu2 %3990, %v2825_v13   ;;  %v6184_v13 = vld [vmem:[%s6279_s14] ss:$0 sm:$0xff] }
0x17a8   :  { %3113 = vadd.xlane.f32.xlu2 %v3112_v45 }
0x17b0   :  { %3122 = vadd.xlane.f32.xlu2 %v3121_v8 }
0x17b8   :  { %3125 = vadd.xlane.f32.xlu2 %v3124_v32 }
0x17d9   :  { %v2830_v15 = vpop.permute.xlu2 %2829 }
0x17da   :  { %v2832_v33 = vmul.f32 %v6076_v1, %v2830_v15 }
0x17dc   :  { %v2833_v18 = vadd.f32 %v2832_v33, %v2308_v48 }
0x17de   :  { %vm2834_vm15 = vcmp.gt.f32.partialorder %v2833_v18, 0.0  ;;  %v2835_v30 = vmul.f32 0.01, %v2833_v18 }
0x17e0   :  { %v2836_v63 = vsel %vm2834_vm15, %v2833_v18, %v2835_v30  ;;  %v2991_v18 = vstv %s2990_s7 }
0x17e1   :  { %2853 = vmatmul.f32.vlgmr.msrb.gmra.mxu1 %v2836_v63  ;;  %vm2992_vm11 = vcmp.eq.s32.totalorder %v2991_v18, 1 }
0x185e   :  { %v2854_v6 = vpop.f32.mrf.mxu1 }
0x185f   :  { %v2855_v57 = vadd.f32 %v6137_v56, %v2854_v6 }
0x1861   :  { %vm2857_vm0 = vcmp.gt.f32.partialorder %v2855_v57, 0.0  ;;  %v2858_v37 = vmul.f32 0.01, %v2855_v57 }
0x1863   :  { %v2859_v40 = vsel %vm2857_vm0, %v2855_v57, %v2858_v37 }
0x1864   :  { %2860 = vst.msk [vmem:[#allocation3 + $0x28] sm:$0xff] %vm1410_vm12, %v2859_v40  ;;  %3833 = vmatmul.msk.f32.vlgmr.msrb.gmra.mxu2 %vm1410_vm12, %v2859_v40  ;;  %v2989_v40 = vld [vmem:[%s6267_s2 + $0x30] sm:$0xff] }
0x186b   :  { %v6151_v22 = vld [vmem:[#allocation3 + $0x28] sm:$0xff] }
0x186c   :  { %v3109_v12 = vmul.f32 %v6151_v22, %v6151_v22 }
0x186e   :  { %v3127_v14 = vsel %vm1410_vm12, %v3109_v12, 0.0 }
0x18e7   :  { %v2881_v26 = vpop.f32.mrf.mxu2 }
0x18e8   :  { %v2882_v58 = vadd.f32 %v2881_v26, %v5857_v36 }
0x18ea   :  { %v3834_v25 = vmul.f32 -1.442695, %v2882_v58 }
0x18ec   :  { %4147 = vpow2.f32 %v3834_v25 }
0x18f2   :  { %v4148_v34 = vpop.eup %4147 }
0x18f3   :  { %v2887_v54 = vadd.f32 1.0, %v4148_v34 }
0x18f5   :  { %4149 = vrcp.f32 %v2887_v54  ;;  %v2899_v55 = vand.u32 2147483648, %v2887_v54  ;;  %v2897_v39 = vand.u32 2147483647, %v2887_v54  ;;  %vm2893_vm1 = vweird.f32 %v2887_v54 }
0x18f7   :  { %v2900_v62 = vor.u32 1.1754944e-38, %v2899_v55  ;;  %vm2898_vm5 = vcmp.eq.f32.partialorder %v2897_v39, 8.507059e+37  ;;  %v3106_v55 = vmul.f32 %v6166_v50, %v6166_v50 }
0x18fb   :  { %v4150_v44 = vpop.eup %4149 }
0x18fc   :  { %v2889_v3 = vmul.f32 %v4150_v44, %v2887_v54  ;;  %vm2894_vm2 = vweird.f32 %v4150_v44 }
0x18fd   :  { %vm2895_vm3 = vmor %vm2893_vm1, %vm2894_vm2  ;;  %vm3272_vm2 = vcmask 539648  }
0x18fe   :  { %v2890_v59 = vsub.f32 1.0, %v2889_v3 }
0x1900   :  { %v2891_v11 = vmul.f32 %v4150_v44, %v2890_v59 }
0x1902   :  { %v2892_v49 = vadd.f32 %v4150_v44, %v2891_v11  ;;  %v3118_v11 = vsel %vm1410_vm12, %v3106_v55, 0.0 }
0x1904   :  { %v2896_v31 = vsel %vm2895_vm3, %v4150_v44, %v2892_v49  ;;  %v3114_v49 = vpop.xlane.xlu2 %3113 }
0x1905   :  { %v2901_v53 = vsel %vm2898_vm5, %v2900_v62, %v2896_v31  ;;  %v3136_v62 = vmax.f32 %v3114_v49, 1e-24 }
0x1906   :  { %v2909_v28 = vsel %vm2908_vm4, %v2905_v2, %v2901_v53 }
0x1907   :  { %2913 = vperm.xlu0 %3992, %v2909_v28   ;;  %vm3150_vm15 = vweird.f32 %v3136_v62 }
0x190c   :  { %v3123_v12 = vpop.xlane.xlu2 %3122 }
0x1931   :  { %3116 = vadd.xlane.f32.xlu0 %v3115_v51 }
0x1939   :  { %3128 = vadd.xlane.f32.xlu0 %v3127_v14  ;;  %v3139_v14 = vmax.f32 %v3123_v12, 1e-24 }
0x193b   :  { %vm3180_vm3 = vweird.f32 %v3139_v14 }
0x1979   :  { %v2914_v29 = vpop.permute.xlu0 %2913 }
0x197a   :  { %v2916_v24 = vmul.f32 %v6076_v1, %v2914_v29 }
0x197c   :  { %v2917_v41 = vadd.f32 %v2916_v24, %v2311_v46 }
0x197e   :  { %vm2918_vm6 = vcmp.gt.f32.partialorder %v2917_v41, 0.0  ;;  %v2919_v35 = vmul.f32 0.01, %v2917_v41 }
0x1980   :  { %v2920_v42 = vsel %vm2918_vm6, %v2917_v41, %v2919_v35 }
0x1981   :  { %2937 = vmatmul.f32.vlgmr.msra.gmra.mxu3 %v2920_v42 }
0x19a4   :  { %v3117_v0 = vpop.xlane.xlu0 %3116 }
0x19ac   :  { %v3129_v41 = vpop.xlane.xlu0 %3128 }
0x1a04   :  { %v2938_v7 = vpop.f32.mrf.mxu3 }
0x1a05   :  { %v2939_v10 = vadd.f32 %v6137_v56, %v2938_v7 }
0x1a07   :  { %vm2941_vm7 = vcmp.gt.f32.partialorder %v2939_v10, 0.0  ;;  %v2942_v60 = vmul.f32 0.01, %v2939_v10 }
0x1a09   :  { %v2943_v23 = vsel %vm2941_vm7, %v2939_v10, %v2942_v60 }
0x1a0a   :  { %2944 = vst.msk [vmem:[#allocation3 + $0x30] sm:$0xff] %vm1410_vm12, %v2943_v23  ;;  %3836 = vmatmul.msk.f32.vlgmr.msrb.gmra.mxu0 %vm1410_vm12, %v2943_v23 }
0x1a11   :  { %v6176_v9 = vld [vmem:[#allocation3 + $0x30] sm:$0xff] }
0x1a12   :  { %3839 = vmatmul.msk.f32.vlgmr.msra.gmra.mxu0 %vm1410_vm12, %v6116_v4  ;;  %v3110_v39 = vmul.f32 %v6176_v9, %v6176_v9 }
0x1a14   :  { %v3130_v5 = vsel %vm1410_vm12, %v3110_v39, 0.0 }
0x1a1a   :  { %3840 = vmatmul.msk.f32.gmra.mxu0 %vm1410_vm12, %v6146_v27 }
0x1a22   :  { %3841 = vmatmul.msk.f32.gmra.mxu0 %vm1410_vm12, %v6166_v50 }
0x1a2a   :  { %3842 = vmatmul.msk.f32.gmra.mxu0 %vm1410_vm12, %v6121_v19 }
0x1a32   :  { %3843 = vmatmul.msk.f32.gmra.mxu0 %vm1410_vm12, %v6126_v20 }
0x1a3a   :  { %3844 = vmatmul.msk.f32.gmra.mxu0 %vm1410_vm12, %v6151_v22 }
0x1a42   :  { %3845 = vmatmul.msk.f32.gmra.mxu0 %vm1410_vm12, %v6176_v9 }
0x1a87   :  { %v2965_v52 = vpop.f32.mrf.mxu0 }
0x1a88   :  { %v2966_v61 = vadd.f32 %v2965_v52, %v5857_v36 }
0x1a8a   :  { %v3837_v43 = vmul.f32 -1.442695, %v2966_v61  ;;  %v3141_v61 = vmax.f32 %v3129_v41, 1e-24 }
0x1a8c   :  { %4151 = vpow2.f32 %v3837_v43  ;;  %vm3200_vm7 = vweird.f32 %v3141_v61 }
0x1a8f   :  { %v3080_v17 = vpop.f32.mrf.mxu0 }
0x1a90   :  { %v3081_v45 = vadd.f32 %v6184_v13, %v3080_v17 }
0x1a92   :  { %v4152_v21 = vpop.eup %4151  ;;  %3240 = vrot.lane.b32.xlu0 %v3081_v45, %s4215_s20 }
0x1a93   :  { %v2971_v8 = vadd.f32 1.0, %v4152_v21 }
0x1a95   :  { %4153 = vrcp.f32 %v2971_v8  ;;  %v2983_v33 = vand.u32 2147483648, %v2971_v8  ;;  %v2981_v6 = vand.u32 2147483647, %v2971_v8  ;;  %vm2977_vm9 = vweird.f32 %v2971_v8 }
0x1a96   :  { %4155 = vrsqrt.f32 %v3136_v62 }
0x1a97   :  { %v3083_v47 = vpop.f32.mrf.mxu0  ;;  %v2984_v37 = vor.u32 1.1754944e-38, %v2983_v33  ;;  %vm2982_vm13 = vcmp.eq.f32.partialorder %v2981_v6, 8.507059e+37  ;;  %4157 = vrsqrt.f32 %v3139_v14 }
0x1a98   :  { %v3084_v28 = vadd.f32 %v6184_v13, %v3083_v47  ;;  %4159 = vrsqrt.f32 %v3141_v61 }
0x1a9b   :  { %v4154_v32 = vpop.eup %4153 }
0x1a9c   :  { %v2973_v36 = vmul.f32 %v4154_v32, %v2971_v8  ;;  %vm2978_vm8 = vweird.f32 %v4154_v32  ;;  %v4156_v2 = vpop.eup %4155 }
0x1a9d   :  { %vm2979_vm10 = vmor %vm2977_vm9, %vm2978_vm8  ;;  %v3145_v31 = vmul.f32 %v4156_v2, %v3136_v62  ;;  %vm3151_vm14 = vweird.f32 %v4156_v2  ;;  %v4158_v42 = vpop.eup %4157 }
0x1a9e   :  { %v2974_v15 = vsub.f32 1.0, %v2973_v36  ;;  %vm3152_vm0 = vmor %vm3150_vm15, %vm3151_vm14  ;;  %v3175_v10 = vmul.f32 %v4158_v42, %v3139_v14  ;;  %v4160_v21 = vpop.eup %4159  ;;  %vm3181_vm1 = vweird.f32 %v4158_v42 }
0x1a9f   :  { %v3086_v48 = vpop.f32.mrf.mxu0  ;;  %v3146_v53 = vmul.f32 %v4156_v2, %v3145_v31  ;;  %v3195_v47 = vmul.f32 %v4160_v21, %v3141_v61  ;;  %vm3182_vm4 = vmor %vm3180_vm3, %vm3181_vm1  ;;  %vm3201_vm6 = vweird.f32 %v4160_v21 }
0x1aa0   :  { %v3087_v30 = vadd.f32 %v6184_v13, %v3086_v48  ;;  %v2975_v63 = vmul.f32 %v4154_v32, %v2974_v15  ;;  %v3176_v43 = vmul.f32 %v4158_v42, %v3175_v10  ;;  %v2314_v15 = vadd.f32 %v6070_v16, %v6083_v38  ;;  %vm3202_vm8 = vmor %vm3200_vm7, %vm3201_vm6 }
0x1aa1   :  { %v3147_v51 = vmul.f32 0.5, %v3146_v53 }
0x1aa2   :  { %3244 = vrot.lane.b32.xlu2 %v3087_v30, %s4215_s20  ;;  %v2976_v57 = vadd.f32 %v4154_v32, %v2975_v63  ;;  %v3177_v17 = vmul.f32 0.5, %v3176_v43 }
0x1aa3   :  { %v3148_v29 = vsub.f32 1.5, %v3147_v51 }
0x1aa4   :  { %v2980_v26 = vsel %vm2979_vm10, %v4154_v32, %v2976_v57  ;;  %v3178_v45 = vsub.f32 1.5, %v3177_v17 }
0x1aa5   :  { %v2985_v58 = vsel %vm2982_vm13, %v2984_v37, %v2980_v26  ;;  %v3149_v24 = vmul.f32 %v4156_v2, %v3148_v29 }
0x1aa6   :  { %v2993_v25 = vsel %vm2992_vm11, %v2989_v40, %v2985_v58  ;;  %v3179_v8 = vmul.f32 %v4158_v42, %v3178_v45 }
0x1aa7   :  { %v3089_v34 = vpop.f32.mrf.mxu0  ;;  %2997 = vperm.xlu1 %3991, %v2993_v25   ;;  %v3153_v35 = vsel %vm3152_vm0, %v4156_v2, %v3149_v24 }
0x1aa8   :  { %v3090_v54 = vadd.f32 %v6184_v13, %v3089_v34  ;;  %v3224_v7 = vmul.f32 %v3153_v35, %v6116_v4  ;;  %v3196_v4 = vmul.f32 %v4160_v21, %v3195_v47  ;;  %v3183_v32 = vsel %vm3182_vm4, %v4158_v42, %v3179_v8 }
0x1aa9   :  { %v3227_v33 = vmul.f32 %v3183_v32, %v6121_v19  ;;  %v3137_v34 = vmax.f32 %v3117_v0, 1e-24 }
0x1aaa   :  { %3246 = vrot.lane.b32.xlu0 %v3090_v54, %s4215_s20  ;;  %v3197_v18 = vmul.f32 0.5, %v3196_v4  ;;  %v3126_v54 = vpop.xlane.xlu2 %3125 }
0x1aab   :  { %4161 = vrsqrt.f32 %v3137_v34  ;;  %vm3160_vm14 = vweird.f32 %v3137_v34 }
0x1aac   :  { %v3198_v40 = vsub.f32 1.5, %v3197_v18 }
0x1aae   :  { %v3199_v16 = vmul.f32 %v4160_v21, %v3198_v40 }
0x1aaf   :  { %v3092_v44 = vpop.f32.mrf.mxu0 }
0x1ab0   :  { %v3093_v46 = vadd.f32 %v6184_v13, %v3092_v44 }
0x1ab1   :  { %v4162_v55 = vpop.eup %4161 }
0x1ab2   :  { %vm3161_vm13 = vweird.f32 %v4162_v55 }
0x1ab3   :  { %vm3162_vm15 = vmor %vm3160_vm14, %vm3161_vm13 }
0x1ab7   :  { %v3095_v3 = vpop.f32.mrf.mxu0 }
0x1ab8   :  { %v3096_v59 = vadd.f32 %v6184_v13, %v3095_v3 }
0x1aba   :  { %3250 = vrot.lane.b32.xlu0 %v3096_v59, %s4215_s20  ;;  %v3140_v59 = vmax.f32 %v3126_v54, 1e-24 }
0x1abc   :  { %vm3190_vm1 = vweird.f32 %v3140_v59 }
0x1ad1   :  { %3119 = vadd.xlane.f32.xlu1 %v3118_v11  ;;  %v3155_v11 = vmul.f32 %v4162_v55, %v3137_v34 }
0x1ad9   :  { %3131 = vadd.xlane.f32.xlu1 %v3130_v5  ;;  %v3156_v5 = vmul.f32 %v4162_v55, %v3155_v11 }
0x1adb   :  { %v3157_v53 = vmul.f32 0.5, %v3156_v5 }
0x1add   :  { %v3158_v12 = vsub.f32 1.5, %v3157_v53 }
0x1adf   :  { %v3159_v35 = vmul.f32 %v4162_v55, %v3158_v12 }
0x1af2   :  { %3242 = vrot.lane.b32.xlu1 %v3084_v28, %s4215_s20 }
0x1afa   :  { %3248 = vrot.lane.b32.xlu1 %v3093_v46, %s4215_s20 }
0x1afc   :  { %v3245_v46 = vpop.permute.xlu2 %3244 }
0x1b04   :  { %v3241_v60 = vpop.permute.xlu0 %3240 }
0x1b05   :  { %v3264_v23 = vsel %vm1410_vm12, %v3224_v7, %v3241_v60  ;;  %v3163_v60 = vsel %vm3162_vm15, %v4162_v55, %v3159_v35 }
0x1b06   :  { %v3273_v52 = vsel %vm3272_vm2, %v3264_v23, 0.0  ;;  %v3225_v23 = vmul.f32 %v3163_v60, %v6146_v27 }
0x1b07   :  { %3281 = vst [vmem:[%s6280_s15] sm:$0xff] %v3273_v52 }
0x1b19   :  { %v2998_v36 = vpop.permute.xlu1 %2997 }
0x1b1a   :  { %v3000_v48 = vmul.f32 %v6076_v1, %v2998_v36  ;;  %v3203_v1 = vsel %vm3202_vm8, %v4160_v21, %v3199_v16 }
0x1b1b   :  { %v3229_v38 = vmul.f32 %v3203_v1, %v6151_v22 }
0x1b1c   :  { %v3001_v30 = vadd.f32 %v3000_v48, %v2314_v15  ;;  %v3247_v63 = vpop.permute.xlu0 %3246 }
0x1b1d   :  { %v3267_v6 = vsel %vm1410_vm12, %v3227_v33, %v3247_v63  ;;  %v3098_v33 = vpop.f32.mrf.mxu0 }
0x1b1e   :  { %vm3002_vm5 = vcmp.gt.f32.partialorder %v3001_v30, 0.0  ;;  %v3003_v57 = vmul.f32 0.01, %v3001_v30  ;;  %v3276_v37 = vsel %vm3272_vm2, %v3267_v6, 0.0  ;;  %v3099_v18 = vadd.f32 %v6184_v13, %v3098_v33 }
0x1b1f   :  { %3284 = vst [vmem:[%s6280_s15 + $0x18] sm:$0xff] %v3276_v37 }
0x1b20   :  { %v3004_v26 = vsel %vm3002_vm5, %v3001_v30, %v3003_v57 }
0x1b21   :  { %3021 = vmatmul.f32.vlgmr.msra.gmra.mxu2 %v3004_v26 }
0x1b2c   :  { %v3251_v19 = vpop.permute.xlu0 %3250 }
0x1b2d   :  { %v3269_v58 = vsel %vm1410_vm12, %v3229_v38, %v3251_v19 }
0x1b2e   :  { %v3278_v25 = vsel %vm3272_vm2, %v3269_v58, 0.0 }
0x1b2f   :  { %3286 = vst [vmem:[%s6280_s15 + $0x28] sm:$0xff] %v3278_v25 }
0x1b44   :  { %v3120_v44 = vpop.xlane.xlu1 %3119 }
0x1b45   :  { %v3138_v3 = vmax.f32 %v3120_v44, 1e-24 }
0x1b47   :  { %4163 = vrsqrt.f32 %v3138_v3  ;;  %vm3170_vm10 = vweird.f32 %v3138_v3 }
0x1b48   :  { %4165 = vrsqrt.f32 %v3140_v59 }
0x1b4c   :  { %v3132_v7 = vpop.xlane.xlu1 %3131 }
0x1b4d   :  { %v4164_v22 = vpop.eup %4163  ;;  %v3142_v30 = vmax.f32 %v3132_v7, 1e-24 }
0x1b4e   :  { %v3165_v39 = vmul.f32 %v4164_v22, %v3138_v3  ;;  %v4166_v62 = vpop.eup %4165  ;;  %vm3171_vm9 = vweird.f32 %v4164_v22 }
0x1b4f   :  { %v3185_v31 = vmul.f32 %v4166_v62, %v3140_v59  ;;  %vm3172_vm11 = vmor %vm3170_vm10, %vm3171_vm9  ;;  %vm3191_vm0 = vweird.f32 %v4166_v62  ;;  %4167 = vrsqrt.f32 %v3142_v30  ;;  %vm3210_vm6 = vweird.f32 %v3142_v30 }
0x1b50   :  { %v3166_v49 = vmul.f32 %v4164_v22, %v3165_v39  ;;  %vm3192_vm3 = vmor %vm3190_vm1, %vm3191_vm0 }
0x1b51   :  { %v3186_v51 = vmul.f32 %v4166_v62, %v3185_v31 }
0x1b52   :  { %v3167_v2 = vmul.f32 0.5, %v3166_v49 }
0x1b53   :  { %v3187_v41 = vmul.f32 0.5, %v3186_v51 }
0x1b54   :  { %v3168_v28 = vsub.f32 1.5, %v3167_v2 }
0x1b55   :  { %v3188_v10 = vsub.f32 1.5, %v3187_v41 }
0x1b56   :  { %v3169_v0 = vmul.f32 %v4164_v22, %v3168_v28 }
0x1b58   :  { %v3173_v14 = vsel %vm3172_vm11, %v4164_v22, %v3169_v0 }
0x1b59   :  { %v3226_v29 = vmul.f32 %v3173_v14, %v6166_v50  ;;  %v3189_v50 = vmul.f32 %v4166_v62, %v3188_v10 }
0x1b5b   :  { %v3266_v24 = vsel %vm1410_vm12, %v3226_v29, %v3245_v46  ;;  %v3193_v17 = vsel %vm3192_vm3, %v4166_v62, %v3189_v50 }
0x1b5c   :  { %v3275_v42 = vsel %vm3272_vm2, %v3266_v24, 0.0  ;;  %v3228_v45 = vmul.f32 %v3193_v17, %v6126_v20 }
0x1b5d   :  { %3283 = vst [vmem:[%s6280_s15 + $0x10] sm:$0xff] %v3275_v42 }
0x1b64   :  { %v3243_v52 = vpop.permute.xlu1 %3242 }
0x1b65   :  { %v3265_v61 = vsel %vm1410_vm12, %v3225_v23, %v3243_v52 }
0x1b66   :  { %v3274_v43 = vsel %vm3272_vm2, %v3265_v61, 0.0 }
0x1b67   :  { %3282 = vst [vmem:[%s6280_s15 + $0x8] sm:$0xff] %v3274_v43 }
0x1b6c   :  { %v3249_v21 = vpop.permute.xlu1 %3248 }
0x1b6d   :  { %v3268_v8 = vsel %vm1410_vm12, %v3228_v45, %v3249_v21 }
0x1b6e   :  { %v3277_v27 = vsel %vm3272_vm2, %v3268_v8, 0.0 }
0x1b6f   :  { %3285 = vst [vmem:[%s6280_s15 + $0x20] sm:$0xff] %v3277_v27 }
0x1ba4   :  { %v3022_v47 = vpop.f32.mrf.mxu2 }
0x1ba5   :  { %v3023_v4 = vadd.f32 %v6137_v56, %v3022_v47  ;;  %v4168_v56 = vpop.eup %4167 }
0x1ba6   :  { %v3205_v63 = vmul.f32 %v4168_v56, %v3142_v30  ;;  %vm3211_vm5 = vweird.f32 %v4168_v56 }
0x1ba7   :  { %vm3025_vm4 = vcmp.gt.f32.partialorder %v3023_v4, 0.0  ;;  %v3026_v32 = vmul.f32 0.01, %v3023_v4  ;;  %vm3212_vm7 = vmor %vm3210_vm6, %vm3211_vm5 }
0x1ba8   :  { %v3206_v6 = vmul.f32 %v4168_v56, %v3205_v63 }
0x1ba9   :  { %v3027_v36 = vsel %vm3025_vm4, %v3023_v4, %v3026_v32 }
0x1baa   :  { %3028 = vst.msk [vmem:[#allocation3 + $0x38] sm:$0xff] %vm1410_vm12, %v3027_v36  ;;  %v3207_v57 = vmul.f32 0.5, %v3206_v6 }
0x1bac   :  { %v3208_v37 = vsub.f32 1.5, %v3207_v57 }
0x1bae   :  { %v3209_v40 = vmul.f32 %v4168_v56, %v3208_v37 }
0x1bb0   :  { %v3213_v16 = vsel %vm3212_vm7, %v4168_v56, %v3209_v40 }
0x1bb1   :  { %v3036_v15 = vld [vmem:[#allocation3 + $0x38] sm:$0xff]  ;;  %v3230_v38 = vmul.f32 %v3213_v16, %v6176_v9 }
0x1bb2   :  { %3846 = vmatmul.msk.f32.gmra.mxu0 %vm1410_vm12, %v3036_v15  ;;  %v3111_v20 = vmul.f32 %v3036_v15, %v3036_v15 }
0x1bb4   :  { %v3133_v48 = vsel %vm1410_vm12, %v3111_v20, 0.0 }
0x1bb5   :  { %3134 = vadd.xlane.f32.xlu2 %v3133_v48 }
0x1bcd   :  { %3252 = vrot.lane.b32.xlu2 %v3099_v18, %s4215_s20 }
0x1c28   :  { %v3135_v26 = vpop.xlane.xlu2 %3134 }
0x1c29   :  { %v3143_v54 = vmax.f32 %v3135_v26, 1e-24 }
0x1c2b   :  { %4169 = vrsqrt.f32 %v3143_v54  ;;  %vm3220_vm9 = vweird.f32 %v3143_v54 }
0x1c2f   :  { %v3101_v1 = vpop.f32.mrf.mxu0 }
0x1c30   :  { %v3102_v19 = vadd.f32 %v6184_v13, %v3101_v1  ;;  %v3253_v58 = vpop.permute.xlu2 %3252 }
0x1c31   :  { %v3270_v25 = vsel %vm1410_vm12, %v3230_v38, %v3253_v58  ;;  %v4170_v44 = vpop.eup %4169 }
0x1c32   :  { %v3279_v34 = vsel %vm3272_vm2, %v3270_v25, 0.0  ;;  %3254 = vrot.lane.b32.xlu1 %v3102_v19, %s4215_s20  ;;  %v3215_v3 = vmul.f32 %v4170_v44, %v3143_v54  ;;  %vm3221_vm8 = vweird.f32 %v4170_v44 }
0x1c33   :  { %3287 = vst [vmem:[%s6280_s15 + $0x30] sm:$0xff] %v3279_v34  ;;  %vm3222_vm10 = vmor %vm3220_vm9, %vm3221_vm8 }
0x1c34   :  { %v3216_v59 = vmul.f32 %v4170_v44, %v3215_v3 }
0x1c36   :  { %v3217_v55 = vmul.f32 0.5, %v3216_v59 }
0x1c38   :  { %v3218_v9 = vsub.f32 1.5, %v3217_v55 }
0x1c3a   :  { %v3219_v11 = vmul.f32 %v4170_v44, %v3218_v9 }
0x1c3c   :  { %v3223_v13 = vsel %vm3222_vm10, %v4170_v44, %v3219_v11 }
0x1c3d   :  { %v3231_v22 = vmul.f32 %v3223_v13, %v3036_v15 }
0x1ca4   :  { %v3255_v39 = vpop.permute.xlu1 %3254 }
0x1ca5   :  { %v3271_v5 = vsel %vm1410_vm12, %v3231_v22, %v3255_v39 }
0x1ca6   :  { %v3280_v49 = vsel %vm3272_vm2, %v3271_v5, 0.0 }
0x1ca7   :  { %3288 = vst [vmem:[%s6280_s15 + $0x38] sm:$0xff] %v3280_v49 }

</bundles_post_ra>
